<compile_context>
chip_gen: v6e
topology: v6e:2x2x1
jax: 0.10.0
libtpu: 0.0.40
codegen_flags: <defaults>
</compile_context>

<pallas_src>
import functools

import numpy as np

import jax
import jax.numpy as jnp
from jax.experimental import pallas as pl
from jax.experimental.pallas import tpu as pltpu

BN_EPS = 1e-5
TAPS = [(dy, dx) for dy in range(3) for dx in range(3)]


# ------------------------------ Pallas kernel -------------------------------

def net_kernel(x_ref, mask1_ref, mask2_ref,
               w1_ref, e1_ref,
               w2_ref, e2_ref, q1_ref,
               w3a_ref, b3a_ref, w3b_ref, e3_ref, q2_ref,
               w4_ref, e4_ref,
               gap_ref, wct_ref, bct_ref,
               o_ref,
               taps2_ref, taps3_ref, taps4_ref,
               rows1_ref, rows2_ref, fm2_ref, fm3_ref,
               *, n, g, hp1, wp1, hp2, wp2, hp3, wp3):
    """Whole network, VMEM-resident.

    Layout: feature maps are (C, M) with M = N*Hp*Wp (+ 2*g guard zeros for
    maps that feed a 3x3 conv).  A 3x3 tap (dy,dx) of a guarded map is the
    contiguous slice [g+off, g+off+M) with off = (dy-1)*Wp + (dx-1).
    """
    mp1 = n * hp1 * wp1
    mp2 = n * hp2 * wp2
    mp3 = n * hp3 * wp3

    def epilogue(acc, e_ref):
        # conv bias + ReLU + BatchNorm (eval) affine; per-channel params are
        # packed as (Cout, 3) = [bias, scale, shift] and broadcast over lanes.
        e = e_ref[...]
        b, sc, sh = e[:, 0:1], e[:, 1:2], e[:, 2:3]
        return jnp.maximum(acc + b, 0.0) * sc + sh

    def stack_taps(dst_ref, src, wp, cin, width):
        # Write the 9 shifted views of the guarded map into a VMEM scratch so
        # one K=9*Cin MXU matmul replaces 9 accumulated K=Cin matmuls.
        for t, (dy, dx) in enumerate(TAPS):
            off = (dy - 1) * wp + (dx - 1)
            dst_ref[t * cin:(t + 1) * cin, :] = \
                src[:, g + off: g + off + width]

    def conv3x3(src, w_ref, taps_ref, cin, wp, width):
        stack_taps(taps_ref, src, wp, cin, width)
        return jnp.dot(w_ref[...], taps_ref[...],
                       preferred_element_type=jnp.float32)

    def pool2x2(y, q_ref, rows_ref, fm_ref, hp_in, wp_in, hp_out, wp_out):
        # Fused 2x2/2 maxpool + re-layout into the next stage's zero-padded,
        # guarded flat frame.  Row subsampling = static lane slices into a
        # small scratch (images stacked along sublanes); the only matmul is a
        # shared per-image 0/1 column-selector (K = h_out*wp_in), ~10x smaller
        # than the old full-frame selection matrix.
        c = y.shape[0]
        h_out = hp_out - 2
        fr_in, fr_out = hp_in * wp_in, hp_out * wp_out
        mp_in = n * fr_in
        l = mp_in - (wp_in + 1)
        m = jnp.maximum(jnp.maximum(y[:, 0:l], y[:, 1:1 + l]),
                        jnp.maximum(y[:, wp_in:wp_in + l],
                                    y[:, wp_in + 1:wp_in + 1 + l]))
        for b in range(n):
            base = b * fr_in
            for yo in range(h_out):
                s = base + (1 + 2 * yo) * wp_in
                rows_ref[b * c:(b + 1) * c,
                         yo * wp_in:(yo + 1) * wp_in] = m[:, s:s + wp_in]
        framed = jnp.dot(rows_ref[...], q_ref[...],
                         preferred_element_type=jnp.float32)   # (n*c, fr_out)
        fm_ref[...] = jnp.zeros(fm_ref.shape, jnp.float32)
        for b in range(n):
            fm_ref[:, g + b * fr_out: g + (b + 1) * fr_out] = \
                framed[b * c:(b + 1) * c, :]

    # ---- conv1 (1->16): in-kernel im2col via constant-offset slices of the
    #      flat padded+guarded input row; Cin=1 so use 9 broadcast-FMAs (VPU).
    xr = x_ref[...]
    w1 = w1_ref[...]
    base1 = wp1 + 1
    width1 = mp1 + 2 * g
    acc1 = None
    for t, (dy, dx) in enumerate(TAPS):
        off = (dy - 1) * wp1 + (dx - 1)
        term = w1[:, t:t + 1] * xr[:, base1 + off: base1 + off + width1]
        acc1 = term if acc1 is None else acc1 + term
    y1 = epilogue(acc1, e1_ref)
    fm1 = y1 * mask1_ref[...]                                   # (16, mp1+2g)

    # ---- conv2 (16->32): single K=144 matmul, then fused pool -> stage-2
    y2 = epilogue(conv3x3(fm1, w2_ref, taps2_ref, 16, wp1, mp1), e2_ref)
    pool2x2(y2, q1_ref, rows1_ref, fm2_ref, hp1, wp1, hp2, wp2)  # (32, mp2+2g)

    # ---- conv3: exact 1x1 (32->16, bias only at interior pixels), then
    #      3x3 (16->32, single K=144 matmul), then fused pool -> stage-3
    z = (jnp.dot(w3a_ref[...], fm2_ref[...],
                 preferred_element_type=jnp.float32)
         + b3a_ref[...] * mask2_ref[...])                       # (16, mp2+2g)
    y3 = epilogue(conv3x3(z, w3b_ref, taps3_ref, 16, wp2, mp2), e3_ref)
    pool2x2(y3, q2_ref, rows2_ref, fm3_ref, hp2, wp2, hp3, wp3)  # (32, mp3+2g)

    # ---- conv4 (32->16): single K=288 matmul
    y4 = epilogue(conv3x3(fm3_ref, w4_ref, taps4_ref, 32, wp3, mp3), e4_ref)

    # ---- head: GAP (matmul with averaging matrix over valid pixels),
    #      classifier computed transposed, log_softmax, transpose tiny result
    pooled = jnp.dot(y4, gap_ref[...],
                     preferred_element_type=jnp.float32)        # (16, n)
    logits_t = (jnp.dot(wct_ref[...], pooled,
                        preferred_element_type=jnp.float32)
                + bct_ref[...])                                 # (10, n)
    mx = jnp.max(logits_t, axis=0, keepdims=True)
    zl = logits_t - mx
    lse = jnp.log(jnp.sum(jnp.exp(zl), axis=0, keepdims=True))
    o_ref[...] = jnp.transpose(zl - lse).astype(o_ref.dtype)


# --------------------------- constant-matrix prep ---------------------------

def _interior_mask(n, hp, wp, guard):
    """(1, n*hp*wp + 2*guard) mask: 1 at valid pixels, 0 at padding/guard."""
    m = np.zeros((n, hp, wp), np.float32)
    m[:, 1:hp - 1, 1:wp - 1] = 1.0
    flat = np.concatenate([np.zeros(guard, np.float32), m.reshape(-1),
                           np.zeros(guard, np.float32)])
    return jnp.asarray(flat.reshape(1, -1))


def _pool_colsel(wp_in, hp_out, wp_out):
    """Shared per-image 0/1 column-selector (h_out*wp_in, hp_out*wp_out).

    Row yo*wp_in + (1+2*xo) -> output frame position (1+yo, 1+xo); pad rows
    and columns of the output frame stay exactly zero.
    """
    h_out, w_out = hp_out - 2, wp_out - 2
    q = np.zeros((h_out * wp_in, hp_out * wp_out), np.float32)
    for yo in range(h_out):
        for xo in range(w_out):
            q[yo * wp_in + 1 + 2 * xo, (1 + yo) * wp_out + (1 + xo)] = 1.0
    return jnp.asarray(q)


def _gap_matrix(n, hp, wp):
    """(n*hp*wp, n) averaging matrix over the valid pixels of each image."""
    h, w = hp - 2, wp - 2
    gm = np.zeros((n * hp * wp, n), np.float32)
    for b in range(n):
        for y in range(1, h + 1):
            for x in range(1, w + 1):
                gm[b * hp * wp + y * wp + x, b] = 1.0 / (h * w)
    return jnp.asarray(gm)


def _stack_tap_weights(w):
    # torch (Cout, Cin, 3, 3) -> (Cout, 9*Cin), column block t = dy*3+dx
    cout, cin, kh, kw = w.shape
    return jnp.transpose(w, (0, 2, 3, 1)).reshape(cout, kh * kw * cin)


def _epi(b, scale, shift):
    return jnp.stack([b, scale, shift], axis=1)      # (C, 3)


# ------------------------------- Forward ------------------------------------

def net_forward(x_nchw, p):
    n, cin, h, w = x_nchw.shape
    assert cin == 1 and h % 4 == 0 and w % 4 == 0
    hp1, wp1 = h + 2, w + 2
    hp2, wp2 = h // 2 + 2, w // 2 + 2
    hp3, wp3 = h // 4 + 2, w // 4 + 2
    mp1, mp2, mp3 = n * hp1 * wp1, n * hp2 * wp2, n * hp3 * wp3
    g = wp1 + 1           # guard >= largest tap offset (derived, not fixed)
    gin = g + wp1 + 1     # input guard so conv1 covers the guarded frame

    # input prep: zero-pad the image, flatten, add guard (tiny, fused by XLA);
    # the 9-tap im2col itself happens inside the kernel.
    xp = jnp.pad(x_nchw[:, 0], ((0, 0), (1, 1), (1, 1)))
    x_row = jnp.pad(xp.reshape(mp1), (gin, gin)).reshape(1, -1)

    # small constant layout helpers
    mask1 = _interior_mask(n, hp1, wp1, g)           # (1, mp1+2g)
    mask2 = _interior_mask(n, hp2, wp2, g)           # (1, mp2+2g)
    q1 = _pool_colsel(wp1, hp2, wp2)                 # (8*wp1, hp2*wp2)
    q2 = _pool_colsel(wp2, hp3, wp3)                 # (4*wp2, hp3*wp3)
    gapm = _gap_matrix(n, hp3, wp3)                  # (mp3, n)

    # weights / fused epilogue params
    w1 = p['c1_w'][:, 0, :, :].reshape(16, 9)
    e1 = _epi(p['c1_b'], p['c1_scale'], p['c1_shift'])
    w2s = _stack_tap_weights(p['c2_w'])              # (32, 144)
    e2 = _epi(p['c2_b'], p['c2_scale'], p['c2_shift'])
    w3a = p['c3a_w'][:, :, 0, 0]                     # (16, 32)
    b3a = p['c3a_b'].reshape(16, 1)
    w3b = _stack_tap_weights(p['c3b_w'])             # (32, 144)
    e3 = _epi(p['c3b_b'], p['c3_scale'], p['c3_shift'])
    w4s = _stack_tap_weights(p['c4_w'])              # (16, 288)
    e4 = _epi(p['c4_b'], p['c4_scale'], p['c4_shift'])
    wct = p['gap_w'][:, :, 0, 0]                     # (10, 16)
    bct = p['gap_b'].reshape(10, 1)

    kernel = functools.partial(net_kernel, n=n, g=g, hp1=hp1, wp1=wp1,
                               hp2=hp2, wp2=wp2, hp3=hp3, wp3=wp3)
    vmem = pl.BlockSpec(memory_space=pltpu.MemorySpace.VMEM)
    f32 = jnp.float32
    return pl.pallas_call(
        kernel,
        out_shape=jax.ShapeDtypeStruct((n, 10), f32),
        in_specs=[vmem] * 18,
        out_specs=vmem,
        scratch_shapes=[
            pltpu.VMEM((9 * 16, mp1), f32),               # conv2 stacked taps
            pltpu.VMEM((9 * 16, mp2), f32),               # conv3b stacked taps
            pltpu.VMEM((9 * 32, mp3), f32),               # conv4 stacked taps
            pltpu.VMEM((n * 32, (hp2 - 2) * wp1), f32),   # pool1 row-gather
            pltpu.VMEM((n * 32, (hp3 - 2) * wp2), f32),   # pool2 row-gather
            pltpu.VMEM((32, mp2 + 2 * g), f32),           # stage-2 guarded map
            pltpu.VMEM((32, mp3 + 2 * g), f32),           # stage-3 guarded map
        ],
    )(x_row, mask1, mask2, w1, e1, w2s, e2, q1, w3a, b3a, w3b, e3, q2,
      w4s, e4, gapm, wct, bct)


# --------------------------- pure-XLA reference ------------------------------

def net_forward_reference(x, p):
    dn = ('NCHW', 'OIHW', 'NCHW')

    def conv(x, w, b, pad):
        y = jax.lax.conv_general_dilated(x, w, (1, 1),
                                         [(pad, pad), (pad, pad)],
                                         dimension_numbers=dn)
        return y + b.reshape(1, -1, 1, 1)

    def bn(x, scale, shift):
        return x * scale.reshape(1, -1, 1, 1) + shift.reshape(1, -1, 1, 1)

    def pool(x):
        return jax.lax.reduce_window(x, -jnp.inf, jax.lax.max,
                                     (1, 1, 2, 2), (1, 1, 2, 2), 'VALID')

    y = bn(jax.nn.relu(conv(x, p['c1_w'], p['c1_b'], 1)), p['c1_scale'], p['c1_shift'])
    y = bn(jax.nn.relu(conv(y, p['c2_w'], p['c2_b'], 1)), p['c2_scale'], p['c2_shift'])
    y = pool(y)
    y = conv(y, p['c3a_w'], p['c3a_b'], 0)
    y = bn(jax.nn.relu(conv(y, p['c3b_w'], p['c3b_b'], 1)), p['c3_scale'], p['c3_shift'])
    y = pool(y)
    y = bn(jax.nn.relu(conv(y, p['c4_w'], p['c4_b'], 1)), p['c4_scale'], p['c4_shift'])
    y = jnp.mean(y, axis=(2, 3), keepdims=True)
    y = conv(y, p['gap_w'], p['gap_b'], 0)
    return jax.nn.log_softmax(y.reshape(y.shape[0], 10), axis=1)


# ------------------------------ Parameters ----------------------------------

def _bn_affine(key, c):
    k1, k2, k3, k4 = jax.random.split(key, 4)
    gamma = 1.0 + 0.1 * jax.random.normal(k1, (c,), jnp.float32)
    beta = 0.1 * jax.random.normal(k2, (c,), jnp.float32)
    mean = 0.1 * jax.random.normal(k3, (c,), jnp.float32)
    var = 1.0 + 0.1 * jnp.abs(jax.random.normal(k4, (c,), jnp.float32))
    scale = gamma / jnp.sqrt(var + BN_EPS)
    shift = beta - mean * scale
    return scale, shift


def _conv_params(key, cout, cin, k):
    k1, k2 = jax.random.split(key)
    fan_in = cin * k * k
    w = (0.5 / jnp.sqrt(fan_in)) * jax.random.normal(k1, (cout, cin, k, k), jnp.float32)
    b = 0.05 * jax.random.normal(k2, (cout,), jnp.float32)
    return w, b


def make_params(key):
    keys = jax.random.split(key, 12)
    p = {}
    p['c1_w'], p['c1_b'] = _conv_params(keys[0], 16, 1, 3)
    p['c1_scale'], p['c1_shift'] = _bn_affine(keys[1], 16)
    p['c2_w'], p['c2_b'] = _conv_params(keys[2], 32, 16, 3)
    p['c2_scale'], p['c2_shift'] = _bn_affine(keys[3], 32)
    p['c3a_w'], p['c3a_b'] = _conv_params(keys[4], 16, 32, 1)
    p['c3b_w'], p['c3b_b'] = _conv_params(keys[5], 32, 16, 3)
    p['c3_scale'], p['c3_shift'] = _bn_affine(keys[6], 32)
    p['c4_w'], p['c4_b'] = _conv_params(keys[7], 16, 32, 3)
    p['c4_scale'], p['c4_shift'] = _bn_affine(keys[8], 16)
    p['gap_w'], p['gap_b'] = _conv_params(keys[9], 10, 16, 1)
    return p


# TODO(synk): training-mode Dropout / batch-statistics BatchNorm are not
# implemented; eval-mode semantics (identity dropout, running-stats BN) are used.


if __name__ == "__main__":
    key = jax.random.PRNGKey(0)
    pkey, xkey = jax.random.split(key)
    params = make_params(pkey)
    # Single-channel 16x16 input (module requires Cin=1); NCHW like PyTorch.
    x = jax.random.normal(xkey, (2, 1, 16, 16), jnp.float32)

    out = jax.jit(net_forward)(x, params)
    out = jax.block_until_ready(out)

    assert out.shape == (2, 10)
    assert bool(jnp.all(jnp.isfinite(out)))
    # log_softmax rows must exponentiate-sum to ~1
    assert bool(jnp.all(jnp.abs(jnp.sum(jnp.exp(out), axis=1) - 1.0) < 1e-4))

    # cross-check against a plain-XLA reference of the same eval-mode network
    ref = jax.block_until_ready(jax.jit(net_forward_reference)(x, params))
    max_err = float(jnp.max(jnp.abs(out - ref)))
    assert max_err < 5e-3, f"mismatch vs XLA reference: max abs err = {max_err}"

    print("KERNEL_OK")
</pallas_src>

<mosaic_0001>
module attributes {stable_mosaic.version = 11 : i64} {
  func.func @net_kernel(%arg0: memref<1x724xf32, #tpu.memory_space<vmem>>, %arg1: memref<1x686xf32, #tpu.memory_space<vmem>>, %arg2: memref<1x238xf32, #tpu.memory_space<vmem>>, %arg3: memref<16x9xf32, #tpu.memory_space<vmem>>, %arg4: memref<16x3xf32, #tpu.memory_space<vmem>>, %arg5: memref<32x144xf32, #tpu.memory_space<vmem>>, %arg6: memref<32x3xf32, #tpu.memory_space<vmem>>, %arg7: memref<144x100xf32, #tpu.memory_space<vmem>>, %arg8: memref<16x32xf32, #tpu.memory_space<vmem>>, %arg9: memref<16x1xf32, #tpu.memory_space<vmem>>, %arg10: memref<32x144xf32, #tpu.memory_space<vmem>>, %arg11: memref<32x3xf32, #tpu.memory_space<vmem>>, %arg12: memref<40x36xf32, #tpu.memory_space<vmem>>, %arg13: memref<16x288xf32, #tpu.memory_space<vmem>>, %arg14: memref<16x3xf32, #tpu.memory_space<vmem>>, %arg15: memref<72x2xf32, #tpu.memory_space<vmem>>, %arg16: memref<10x16xf32, #tpu.memory_space<vmem>>, %arg17: memref<10x1xf32, #tpu.memory_space<vmem>>, %arg18: memref<2x10xf32, #tpu.memory_space<vmem>>, %arg19: memref<144x648xf32, #tpu.memory_space<vmem>>, %arg20: memref<144x200xf32, #tpu.memory_space<vmem>>, %arg21: memref<288x72xf32, #tpu.memory_space<vmem>>, %arg22: memref<64x144xf32, #tpu.memory_space<vmem>>, %arg23: memref<64x40xf32, #tpu.memory_space<vmem>>, %arg24: memref<32x238xf32, #tpu.memory_space<vmem>>, %arg25: memref<32x110xf32, #tpu.memory_space<vmem>>) attributes {dimension_semantics = [], scalar_prefetch = 0 : i64, scratch_operands = 7 : i64, tpu.core_type = #tpu.core_type<tc>} {
    %c0 = arith.constant 0 : index
    %c0_0 = arith.constant 0 : index
    %0 = vector.load %arg0[%c0, %c0_0] : memref<1x724xf32, #tpu.memory_space<vmem>>, vector<1x724xf32>
    %c0_1 = arith.constant 0 : index
    %c0_2 = arith.constant 0 : index
    %1 = vector.load %arg3[%c0_1, %c0_2] : memref<16x9xf32, #tpu.memory_space<vmem>>, vector<16x9xf32>
    %2 = vector.extract_strided_slice %1 {offsets = [0, 0], sizes = [16, 1], strides = [1, 1]} : vector<16x9xf32> to vector<16x1xf32>
    %3 = vector.extract_strided_slice %0 {offsets = [0, 0], sizes = [1, 686], strides = [1, 1]} : vector<1x724xf32> to vector<1x686xf32>
    %4 = vector.broadcast %2 : vector<16x1xf32> to vector<16x686xf32>
    %5 = vector.broadcast %3 : vector<1x686xf32> to vector<16x686xf32>
    %6 = arith.mulf %4, %5 : vector<16x686xf32>
    %7 = vector.extract_strided_slice %1 {offsets = [0, 1], sizes = [16, 1], strides = [1, 1]} : vector<16x9xf32> to vector<16x1xf32>
    %8 = vector.extract_strided_slice %0 {offsets = [0, 1], sizes = [1, 686], strides = [1, 1]} : vector<1x724xf32> to vector<1x686xf32>
    %9 = vector.broadcast %7 : vector<16x1xf32> to vector<16x686xf32>
    %10 = vector.broadcast %8 : vector<1x686xf32> to vector<16x686xf32>
    %11 = arith.mulf %9, %10 : vector<16x686xf32>
    %12 = arith.addf %6, %11 : vector<16x686xf32>
    %13 = vector.extract_strided_slice %1 {offsets = [0, 2], sizes = [16, 1], strides = [1, 1]} : vector<16x9xf32> to vector<16x1xf32>
    %14 = vector.extract_strided_slice %0 {offsets = [0, 2], sizes = [1, 686], strides = [1, 1]} : vector<1x724xf32> to vector<1x686xf32>
    %15 = vector.broadcast %13 : vector<16x1xf32> to vector<16x686xf32>
    %16 = vector.broadcast %14 : vector<1x686xf32> to vector<16x686xf32>
    %17 = arith.mulf %15, %16 : vector<16x686xf32>
    %18 = arith.addf %12, %17 : vector<16x686xf32>
    %19 = vector.extract_strided_slice %1 {offsets = [0, 3], sizes = [16, 1], strides = [1, 1]} : vector<16x9xf32> to vector<16x1xf32>
    %20 = vector.extract_strided_slice %0 {offsets = [0, 18], sizes = [1, 686], strides = [1, 1]} : vector<1x724xf32> to vector<1x686xf32>
    %21 = vector.broadcast %19 : vector<16x1xf32> to vector<16x686xf32>
    %22 = vector.broadcast %20 : vector<1x686xf32> to vector<16x686xf32>
    %23 = arith.mulf %21, %22 : vector<16x686xf32>
    %24 = arith.addf %18, %23 : vector<16x686xf32>
    %25 = vector.extract_strided_slice %1 {offsets = [0, 4], sizes = [16, 1], strides = [1, 1]} : vector<16x9xf32> to vector<16x1xf32>
    %26 = vector.extract_strided_slice %0 {offsets = [0, 19], sizes = [1, 686], strides = [1, 1]} : vector<1x724xf32> to vector<1x686xf32>
    %27 = vector.broadcast %25 : vector<16x1xf32> to vector<16x686xf32>
    %28 = vector.broadcast %26 : vector<1x686xf32> to vector<16x686xf32>
    %29 = arith.mulf %27, %28 : vector<16x686xf32>
    %30 = arith.addf %24, %29 : vector<16x686xf32>
    %31 = vector.extract_strided_slice %1 {offsets = [0, 5], sizes = [16, 1], strides = [1, 1]} : vector<16x9xf32> to vector<16x1xf32>
    %32 = vector.extract_strided_slice %0 {offsets = [0, 20], sizes = [1, 686], strides = [1, 1]} : vector<1x724xf32> to vector<1x686xf32>
    %33 = vector.broadcast %31 : vector<16x1xf32> to vector<16x686xf32>
    %34 = vector.broadcast %32 : vector<1x686xf32> to vector<16x686xf32>
    %35 = arith.mulf %33, %34 : vector<16x686xf32>
    %36 = arith.addf %30, %35 : vector<16x686xf32>
    %37 = vector.extract_strided_slice %1 {offsets = [0, 6], sizes = [16, 1], strides = [1, 1]} : vector<16x9xf32> to vector<16x1xf32>
    %38 = vector.extract_strided_slice %0 {offsets = [0, 36], sizes = [1, 686], strides = [1, 1]} : vector<1x724xf32> to vector<1x686xf32>
    %39 = vector.broadcast %37 : vector<16x1xf32> to vector<16x686xf32>
    %40 = vector.broadcast %38 : vector<1x686xf32> to vector<16x686xf32>
    %41 = arith.mulf %39, %40 : vector<16x686xf32>
    %42 = arith.addf %36, %41 : vector<16x686xf32>
    %43 = vector.extract_strided_slice %1 {offsets = [0, 7], sizes = [16, 1], strides = [1, 1]} : vector<16x9xf32> to vector<16x1xf32>
    %44 = vector.extract_strided_slice %0 {offsets = [0, 37], sizes = [1, 686], strides = [1, 1]} : vector<1x724xf32> to vector<1x686xf32>
    %45 = vector.broadcast %43 : vector<16x1xf32> to vector<16x686xf32>
    %46 = vector.broadcast %44 : vector<1x686xf32> to vector<16x686xf32>
    %47 = arith.mulf %45, %46 : vector<16x686xf32>
    %48 = arith.addf %42, %47 : vector<16x686xf32>
    %49 = vector.extract_strided_slice %1 {offsets = [0, 8], sizes = [16, 1], strides = [1, 1]} : vector<16x9xf32> to vector<16x1xf32>
    %50 = vector.extract_strided_slice %0 {offsets = [0, 38], sizes = [1, 686], strides = [1, 1]} : vector<1x724xf32> to vector<1x686xf32>
    %51 = vector.broadcast %49 : vector<16x1xf32> to vector<16x686xf32>
    %52 = vector.broadcast %50 : vector<1x686xf32> to vector<16x686xf32>
    %53 = arith.mulf %51, %52 : vector<16x686xf32>
    %54 = arith.addf %48, %53 : vector<16x686xf32>
    %c0_3 = arith.constant 0 : index
    %c0_4 = arith.constant 0 : index
    %55 = vector.load %arg4[%c0_3, %c0_4] : memref<16x3xf32, #tpu.memory_space<vmem>>, vector<16x3xf32>
    %56 = vector.extract_strided_slice %55 {offsets = [0, 0], sizes = [16, 1], strides = [1, 1]} : vector<16x3xf32> to vector<16x1xf32>
    %57 = vector.extract_strided_slice %55 {offsets = [0, 1], sizes = [16, 1], strides = [1, 1]} : vector<16x3xf32> to vector<16x1xf32>
    %58 = vector.extract_strided_slice %55 {offsets = [0, 2], sizes = [16, 1], strides = [1, 1]} : vector<16x3xf32> to vector<16x1xf32>
    %59 = vector.broadcast %56 : vector<16x1xf32> to vector<16x686xf32>
    %60 = arith.addf %54, %59 : vector<16x686xf32>
    %cst = arith.constant 0.000000e+00 : f32
    %61 = vector.broadcast %cst : f32 to vector<16x686xf32>
    %62 = arith.maximumf %60, %61 : vector<16x686xf32>
    %63 = vector.broadcast %57 : vector<16x1xf32> to vector<16x686xf32>
    %64 = arith.mulf %62, %63 : vector<16x686xf32>
    %65 = vector.broadcast %58 : vector<16x1xf32> to vector<16x686xf32>
    %66 = arith.addf %64, %65 : vector<16x686xf32>
    %c0_5 = arith.constant 0 : index
    %c0_6 = arith.constant 0 : index
    %67 = vector.load %arg1[%c0_5, %c0_6] : memref<1x686xf32, #tpu.memory_space<vmem>>, vector<1x686xf32>
    %68 = vector.broadcast %67 : vector<1x686xf32> to vector<16x686xf32>
    %69 = arith.mulf %66, %68 : vector<16x686xf32>
    %70 = vector.extract_strided_slice %69 {offsets = [0, 0], sizes = [16, 648], strides = [1, 1]} : vector<16x686xf32> to vector<16x648xf32>
    %c0_7 = arith.constant 0 : index
    %c0_8 = arith.constant 0 : index
    %71 = vector.load %arg19[%c0_7, %c0_8] : memref<144x648xf32, #tpu.memory_space<vmem>>, vector<16x648xf32>
    tpu.vector_store %arg19[%c0_7, %c0_8], %70 {strides = array<i32>} : memref<144x648xf32, #tpu.memory_space<vmem>>, vector<16x648xf32>,
    %72 = vector.extract_strided_slice %69 {offsets = [0, 1], sizes = [16, 648], strides = [1, 1]} : vector<16x686xf32> to vector<16x648xf32>
    %c16 = arith.constant 16 : index
    %c0_9 = arith.constant 0 : index
    %73 = vector.load %arg19[%c16, %c0_9] : memref<144x648xf32, #tpu.memory_space<vmem>>, vector<16x648xf32>
    tpu.vector_store %arg19[%c16, %c0_9], %72 {strides = array<i32>} : memref<144x648xf32, #tpu.memory_space<vmem>>, vector<16x648xf32>,
    %74 = vector.extract_strided_slice %69 {offsets = [0, 2], sizes = [16, 648], strides = [1, 1]} : vector<16x686xf32> to vector<16x648xf32>
    %c32 = arith.constant 32 : index
    %c0_10 = arith.constant 0 : index
    %75 = vector.load %arg19[%c32, %c0_10] : memref<144x648xf32, #tpu.memory_space<vmem>>, vector<16x648xf32>
    tpu.vector_store %arg19[%c32, %c0_10], %74 {strides = array<i32>} : memref<144x648xf32, #tpu.memory_space<vmem>>, vector<16x648xf32>,
    %76 = vector.extract_strided_slice %69 {offsets = [0, 18], sizes = [16, 648], strides = [1, 1]} : vector<16x686xf32> to vector<16x648xf32>
    %c48 = arith.constant 48 : index
    %c0_11 = arith.constant 0 : index
    %77 = vector.load %arg19[%c48, %c0_11] : memref<144x648xf32, #tpu.memory_space<vmem>>, vector<16x648xf32>
    tpu.vector_store %arg19[%c48, %c0_11], %76 {strides = array<i32>} : memref<144x648xf32, #tpu.memory_space<vmem>>, vector<16x648xf32>,
    %78 = vector.extract_strided_slice %69 {offsets = [0, 19], sizes = [16, 648], strides = [1, 1]} : vector<16x686xf32> to vector<16x648xf32>
    %c64 = arith.constant 64 : index
    %c0_12 = arith.constant 0 : index
    %79 = vector.load %arg19[%c64, %c0_12] : memref<144x648xf32, #tpu.memory_space<vmem>>, vector<16x648xf32>
    tpu.vector_store %arg19[%c64, %c0_12], %78 {strides = array<i32>} : memref<144x648xf32, #tpu.memory_space<vmem>>, vector<16x648xf32>,
    %80 = vector.extract_strided_slice %69 {offsets = [0, 20], sizes = [16, 648], strides = [1, 1]} : vector<16x686xf32> to vector<16x648xf32>
    %c80 = arith.constant 80 : index
    %c0_13 = arith.constant 0 : index
    %81 = vector.load %arg19[%c80, %c0_13] : memref<144x648xf32, #tpu.memory_space<vmem>>, vector<16x648xf32>
    tpu.vector_store %arg19[%c80, %c0_13], %80 {strides = array<i32>} : memref<144x648xf32, #tpu.memory_space<vmem>>, vector<16x648xf32>,
    %82 = vector.extract_strided_slice %69 {offsets = [0, 36], sizes = [16, 648], strides = [1, 1]} : vector<16x686xf32> to vector<16x648xf32>
    %c96 = arith.constant 96 : index
    %c0_14 = arith.constant 0 : index
    %83 = vector.load %arg19[%c96, %c0_14] : memref<144x648xf32, #tpu.memory_space<vmem>>, vector<16x648xf32>
    tpu.vector_store %arg19[%c96, %c0_14], %82 {strides = array<i32>} : memref<144x648xf32, #tpu.memory_space<vmem>>, vector<16x648xf32>,
    %84 = vector.extract_strided_slice %69 {offsets = [0, 37], sizes = [16, 648], strides = [1, 1]} : vector<16x686xf32> to vector<16x648xf32>
    %c112 = arith.constant 112 : index
    %c0_15 = arith.constant 0 : index
    %85 = vector.load %arg19[%c112, %c0_15] : memref<144x648xf32, #tpu.memory_space<vmem>>, vector<16x648xf32>
    tpu.vector_store %arg19[%c112, %c0_15], %84 {strides = array<i32>} : memref<144x648xf32, #tpu.memory_space<vmem>>, vector<16x648xf32>,
    %86 = vector.extract_strided_slice %69 {offsets = [0, 38], sizes = [16, 648], strides = [1, 1]} : vector<16x686xf32> to vector<16x648xf32>
    %c128 = arith.constant 128 : index
    %c0_16 = arith.constant 0 : index
    %87 = vector.load %arg19[%c128, %c0_16] : memref<144x648xf32, #tpu.memory_space<vmem>>, vector<16x648xf32>
    tpu.vector_store %arg19[%c128, %c0_16], %86 {strides = array<i32>} : memref<144x648xf32, #tpu.memory_space<vmem>>, vector<16x648xf32>,
    %c0_17 = arith.constant 0 : index
    %c0_18 = arith.constant 0 : index
    %88 = vector.load %arg5[%c0_17, %c0_18] : memref<32x144xf32, #tpu.memory_space<vmem>>, vector<32x144xf32>
    %c0_19 = arith.constant 0 : index
    %c0_20 = arith.constant 0 : index
    %89 = vector.load %arg19[%c0_19, %c0_20] : memref<144x648xf32, #tpu.memory_space<vmem>>, vector<144x648xf32>
    %cst_21 = arith.constant dense<0.000000e+00> : vector<32x648xf32>
    %90 = tpu.matmul %88, %89, %cst_21 {dimension_numbers = #tpu.dot_dimension_numbers<[1], [0], [0], [1], [0, 0, 1, 1], [], []>} : vector<32x144xf32>, vector<144x648xf32>, vector<32x648xf32> -> vector<32x648xf32>
    %c0_22 = arith.constant 0 : index
    %c0_23 = arith.constant 0 : index
    %91 = vector.load %arg6[%c0_22, %c0_23] : memref<32x3xf32, #tpu.memory_space<vmem>>, vector<32x3xf32>
    %92 = vector.extract_strided_slice %91 {offsets = [0, 0], sizes = [32, 1], strides = [1, 1]} : vector<32x3xf32> to vector<32x1xf32>
    %93 = vector.extract_strided_slice %91 {offsets = [0, 1], sizes = [32, 1], strides = [1, 1]} : vector<32x3xf32> to vector<32x1xf32>
    %94 = vector.extract_strided_slice %91 {offsets = [0, 2], sizes = [32, 1], strides = [1, 1]} : vector<32x3xf32> to vector<32x1xf32>
    %95 = vector.broadcast %92 : vector<32x1xf32> to vector<32x648xf32>
    %96 = arith.addf %90, %95 : vector<32x648xf32>
    %cst_24 = arith.constant 0.000000e+00 : f32
    %97 = vector.broadcast %cst_24 : f32 to vector<32x648xf32>
    %98 = arith.maximumf %96, %97 : vector<32x648xf32>
    %99 = vector.broadcast %93 : vector<32x1xf32> to vector<32x648xf32>
    %100 = arith.mulf %98, %99 : vector<32x648xf32>
    %101 = vector.broadcast %94 : vector<32x1xf32> to vector<32x648xf32>
    %102 = arith.addf %100, %101 : vector<32x648xf32>
    %103 = vector.extract_strided_slice %102 {offsets = [0, 0], sizes = [32, 629], strides = [1, 1]} : vector<32x648xf32> to vector<32x629xf32>
    %104 = vector.extract_strided_slice %102 {offsets = [0, 1], sizes = [32, 629], strides = [1, 1]} : vector<32x648xf32> to vector<32x629xf32>
    %105 = arith.maximumf %103, %104 : vector<32x629xf32>
    %106 = vector.extract_strided_slice %102 {offsets = [0, 18], sizes = [32, 629], strides = [1, 1]} : vector<32x648xf32> to vector<32x629xf32>
    %107 = vector.extract_strided_slice %102 {offsets = [0, 19], sizes = [32, 629], strides = [1, 1]} : vector<32x648xf32> to vector<32x629xf32>
    %108 = arith.maximumf %106, %107 : vector<32x629xf32>
    %109 = arith.maximumf %105, %108 : vector<32x629xf32>
    %110 = vector.extract_strided_slice %109 {offsets = [0, 18], sizes = [32, 18], strides = [1, 1]} : vector<32x629xf32> to vector<32x18xf32>
    %c0_25 = arith.constant 0 : index
    %c0_26 = arith.constant 0 : index
    %111 = vector.load %arg22[%c0_25, %c0_26] : memref<64x144xf32, #tpu.memory_space<vmem>>, vector<32x18xf32>
    tpu.vector_store %arg22[%c0_25, %c0_26], %110 {strides = array<i32>} : memref<64x144xf32, #tpu.memory_space<vmem>>, vector<32x18xf32>,
    %112 = vector.extract_strided_slice %109 {offsets = [0, 54], sizes = [32, 18], strides = [1, 1]} : vector<32x629xf32> to vector<32x18xf32>
    %c0_27 = arith.constant 0 : index
    %c18 = arith.constant 18 : index
    %113 = vector.load %arg22[%c0_27, %c18] : memref<64x144xf32, #tpu.memory_space<vmem>>, vector<32x18xf32>
    tpu.vector_store %arg22[%c0_27, %c18], %112 {strides = array<i32>} : memref<64x144xf32, #tpu.memory_space<vmem>>, vector<32x18xf32>,
    %114 = vector.extract_strided_slice %109 {offsets = [0, 90], sizes = [32, 18], strides = [1, 1]} : vector<32x629xf32> to vector<32x18xf32>
    %c0_28 = arith.constant 0 : index
    %c36 = arith.constant 36 : index
    %115 = vector.load %arg22[%c0_28, %c36] : memref<64x144xf32, #tpu.memory_space<vmem>>, vector<32x18xf32>
    tpu.vector_store %arg22[%c0_28, %c36], %114 {strides = array<i32>} : memref<64x144xf32, #tpu.memory_space<vmem>>, vector<32x18xf32>,
    %116 = vector.extract_strided_slice %109 {offsets = [0, 126], sizes = [32, 18], strides = [1, 1]} : vector<32x629xf32> to vector<32x18xf32>
    %c0_29 = arith.constant 0 : index
    %c54 = arith.constant 54 : index
    %117 = vector.load %arg22[%c0_29, %c54] : memref<64x144xf32, #tpu.memory_space<vmem>>, vector<32x18xf32>
    tpu.vector_store %arg22[%c0_29, %c54], %116 {strides = array<i32>} : memref<64x144xf32, #tpu.memory_space<vmem>>, vector<32x18xf32>,
    %118 = vector.extract_strided_slice %109 {offsets = [0, 162], sizes = [32, 18], strides = [1, 1]} : vector<32x629xf32> to vector<32x18xf32>
    %c0_30 = arith.constant 0 : index
    %c72 = arith.constant 72 : index
    %119 = vector.load %arg22[%c0_30, %c72] : memref<64x144xf32, #tpu.memory_space<vmem>>, vector<32x18xf32>
    tpu.vector_store %arg22[%c0_30, %c72], %118 {strides = array<i32>} : memref<64x144xf32, #tpu.memory_space<vmem>>, vector<32x18xf32>,
    %120 = vector.extract_strided_slice %109 {offsets = [0, 198], sizes = [32, 18], strides = [1, 1]} : vector<32x629xf32> to vector<32x18xf32>
    %c0_31 = arith.constant 0 : index
    %c90 = arith.constant 90 : index
    %121 = vector.load %arg22[%c0_31, %c90] : memref<64x144xf32, #tpu.memory_space<vmem>>, vector<32x18xf32>
    tpu.vector_store %arg22[%c0_31, %c90], %120 {strides = array<i32>} : memref<64x144xf32, #tpu.memory_space<vmem>>, vector<32x18xf32>,
    %122 = vector.extract_strided_slice %109 {offsets = [0, 234], sizes = [32, 18], strides = [1, 1]} : vector<32x629xf32> to vector<32x18xf32>
    %c0_32 = arith.constant 0 : index
    %c108 = arith.constant 108 : index
    %123 = vector.load %arg22[%c0_32, %c108] : memref<64x144xf32, #tpu.memory_space<vmem>>, vector<32x18xf32>
    tpu.vector_store %arg22[%c0_32, %c108], %122 {strides = array<i32>} : memref<64x144xf32, #tpu.memory_space<vmem>>, vector<32x18xf32>,
    %124 = vector.extract_strided_slice %109 {offsets = [0, 270], sizes = [32, 18], strides = [1, 1]} : vector<32x629xf32> to vector<32x18xf32>
    %c0_33 = arith.constant 0 : index
    %c126 = arith.constant 126 : index
    %125 = vector.load %arg22[%c0_33, %c126] : memref<64x144xf32, #tpu.memory_space<vmem>>, vector<32x18xf32>
    tpu.vector_store %arg22[%c0_33, %c126], %124 {strides = array<i32>} : memref<64x144xf32, #tpu.memory_space<vmem>>, vector<32x18xf32>,
    %126 = vector.extract_strided_slice %109 {offsets = [0, 342], sizes = [32, 18], strides = [1, 1]} : vector<32x629xf32> to vector<32x18xf32>
    %c32_34 = arith.constant 32 : index
    %c0_35 = arith.constant 0 : index
    %127 = vector.load %arg22[%c32_34, %c0_35] : memref<64x144xf32, #tpu.memory_space<vmem>>, vector<32x18xf32>
    tpu.vector_store %arg22[%c32_34, %c0_35], %126 {strides = array<i32>} : memref<64x144xf32, #tpu.memory_space<vmem>>, vector<32x18xf32>,
    %128 = vector.extract_strided_slice %109 {offsets = [0, 378], sizes = [32, 18], strides = [1, 1]} : vector<32x629xf32> to vector<32x18xf32>
    %c32_36 = arith.constant 32 : index
    %c18_37 = arith.constant 18 : index
    %129 = vector.load %arg22[%c32_36, %c18_37] : memref<64x144xf32, #tpu.memory_space<vmem>>, vector<32x18xf32>
    tpu.vector_store %arg22[%c32_36, %c18_37], %128 {strides = array<i32>} : memref<64x144xf32, #tpu.memory_space<vmem>>, vector<32x18xf32>,
    %130 = vector.extract_strided_slice %109 {offsets = [0, 414], sizes = [32, 18], strides = [1, 1]} : vector<32x629xf32> to vector<32x18xf32>
    %c32_38 = arith.constant 32 : index
    %c36_39 = arith.constant 36 : index
    %131 = vector.load %arg22[%c32_38, %c36_39] : memref<64x144xf32, #tpu.memory_space<vmem>>, vector<32x18xf32>
    tpu.vector_store %arg22[%c32_38, %c36_39], %130 {strides = array<i32>} : memref<64x144xf32, #tpu.memory_space<vmem>>, vector<32x18xf32>,
    %132 = vector.extract_strided_slice %109 {offsets = [0, 450], sizes = [32, 18], strides = [1, 1]} : vector<32x629xf32> to vector<32x18xf32>
    %c32_40 = arith.constant 32 : index
    %c54_41 = arith.constant 54 : index
    %133 = vector.load %arg22[%c32_40, %c54_41] : memref<64x144xf32, #tpu.memory_space<vmem>>, vector<32x18xf32>
    tpu.vector_store %arg22[%c32_40, %c54_41], %132 {strides = array<i32>} : memref<64x144xf32, #tpu.memory_space<vmem>>, vector<32x18xf32>,
    %134 = vector.extract_strided_slice %109 {offsets = [0, 486], sizes = [32, 18], strides = [1, 1]} : vector<32x629xf32> to vector<32x18xf32>
    %c32_42 = arith.constant 32 : index
    %c72_43 = arith.constant 72 : index
    %135 = vector.load %arg22[%c32_42, %c72_43] : memref<64x144xf32, #tpu.memory_space<vmem>>, vector<32x18xf32>
    tpu.vector_store %arg22[%c32_42, %c72_43], %134 {strides = array<i32>} : memref<64x144xf32, #tpu.memory_space<vmem>>, vector<32x18xf32>,
    %136 = vector.extract_strided_slice %109 {offsets = [0, 522], sizes = [32, 18], strides = [1, 1]} : vector<32x629xf32> to vector<32x18xf32>
    %c32_44 = arith.constant 32 : index
    %c90_45 = arith.constant 90 : index
    %137 = vector.load %arg22[%c32_44, %c90_45] : memref<64x144xf32, #tpu.memory_space<vmem>>, vector<32x18xf32>
    tpu.vector_store %arg22[%c32_44, %c90_45], %136 {strides = array<i32>} : memref<64x144xf32, #tpu.memory_space<vmem>>, vector<32x18xf32>,
    %138 = vector.extract_strided_slice %109 {offsets = [0, 558], sizes = [32, 18], strides = [1, 1]} : vector<32x629xf32> to vector<32x18xf32>
    %c32_46 = arith.constant 32 : index
    %c108_47 = arith.constant 108 : index
    %139 = vector.load %arg22[%c32_46, %c108_47] : memref<64x144xf32, #tpu.memory_space<vmem>>, vector<32x18xf32>
    tpu.vector_store %arg22[%c32_46, %c108_47], %138 {strides = array<i32>} : memref<64x144xf32, #tpu.memory_space<vmem>>, vector<32x18xf32>,
    %140 = vector.extract_strided_slice %109 {offsets = [0, 594], sizes = [32, 18], strides = [1, 1]} : vector<32x629xf32> to vector<32x18xf32>
    %c32_48 = arith.constant 32 : index
    %c126_49 = arith.constant 126 : index
    %141 = vector.load %arg22[%c32_48, %c126_49] : memref<64x144xf32, #tpu.memory_space<vmem>>, vector<32x18xf32>
    tpu.vector_store %arg22[%c32_48, %c126_49], %140 {strides = array<i32>} : memref<64x144xf32, #tpu.memory_space<vmem>>, vector<32x18xf32>,
    %c0_50 = arith.constant 0 : index
    %c0_51 = arith.constant 0 : index
    %142 = vector.load %arg22[%c0_50, %c0_51] : memref<64x144xf32, #tpu.memory_space<vmem>>, vector<64x144xf32>
    %c0_52 = arith.constant 0 : index
    %c0_53 = arith.constant 0 : index
    %143 = vector.load %arg7[%c0_52, %c0_53] : memref<144x100xf32, #tpu.memory_space<vmem>>, vector<144x100xf32>
    %cst_54 = arith.constant dense<0.000000e+00> : vector<64x100xf32>
    %144 = tpu.matmul %142, %143, %cst_54 {dimension_numbers = #tpu.dot_dimension_numbers<[1], [0], [0], [1], [0, 0, 1, 1], [], []>} : vector<64x144xf32>, vector<144x100xf32>, vector<64x100xf32> -> vector<64x100xf32>
    %cst_55 = arith.constant 0.000000e+00 : f32
    %145 = vector.broadcast %cst_55 : f32 to vector<32x238xf32>
    %c0_56 = arith.constant 0 : index
    %c0_57 = arith.constant 0 : index
    %146 = vector.load %arg24[%c0_56, %c0_57] : memref<32x238xf32, #tpu.memory_space<vmem>>, vector<32x238xf32>
    tpu.vector_store %arg24[%c0_56, %c0_57], %145 {strides = array<i32>} : memref<32x238xf32, #tpu.memory_space<vmem>>, vector<32x238xf32>,
    %147 = vector.extract_strided_slice %144 {offsets = [0, 0], sizes = [32, 100], strides = [1, 1]} : vector<64x100xf32> to vector<32x100xf32>
    %c0_58 = arith.constant 0 : index
    %c19 = arith.constant 19 : index
    %148 = vector.load %arg24[%c0_58, %c19] : memref<32x238xf32, #tpu.memory_space<vmem>>, vector<32x100xf32>
    tpu.vector_store %arg24[%c0_58, %c19], %147 {strides = array<i32>} : memref<32x238xf32, #tpu.memory_space<vmem>>, vector<32x100xf32>,
    %149 = vector.extract_strided_slice %144 {offsets = [32, 0], sizes = [32, 100], strides = [1, 1]} : vector<64x100xf32> to vector<32x100xf32>
    %c0_59 = arith.constant 0 : index
    %c119 = arith.constant 119 : index
    %150 = vector.load %arg24[%c0_59, %c119] : memref<32x238xf32, #tpu.memory_space<vmem>>, vector<32x100xf32>
    tpu.vector_store %arg24[%c0_59, %c119], %149 {strides = array<i32>} : memref<32x238xf32, #tpu.memory_space<vmem>>, vector<32x100xf32>,
    %c0_60 = arith.constant 0 : index
    %c0_61 = arith.constant 0 : index
    %151 = vector.load %arg8[%c0_60, %c0_61] : memref<16x32xf32, #tpu.memory_space<vmem>>, vector<16x32xf32>
    %c0_62 = arith.constant 0 : index
    %c0_63 = arith.constant 0 : index
    %152 = vector.load %arg24[%c0_62, %c0_63] : memref<32x238xf32, #tpu.memory_space<vmem>>, vector<32x238xf32>
    %cst_64 = arith.constant dense<0.000000e+00> : vector<16x238xf32>
    %153 = tpu.matmul %151, %152, %cst_64 {dimension_numbers = #tpu.dot_dimension_numbers<[1], [0], [0], [1], [0, 0, 1, 1], [], []>} : vector<16x32xf32>, vector<32x238xf32>, vector<16x238xf32> -> vector<16x238xf32>
    %c0_65 = arith.constant 0 : index
    %c0_66 = arith.constant 0 : index
    %154 = vector.load %arg9[%c0_65, %c0_66] : memref<16x1xf32, #tpu.memory_space<vmem>>, vector<16x1xf32>
    %c0_67 = arith.constant 0 : index
    %c0_68 = arith.constant 0 : index
    %155 = vector.load %arg2[%c0_67, %c0_68] : memref<1x238xf32, #tpu.memory_space<vmem>>, vector<1x238xf32>
    %156 = vector.broadcast %154 : vector<16x1xf32> to vector<16x238xf32>
    %157 = vector.broadcast %155 : vector<1x238xf32> to vector<16x238xf32>
    %158 = arith.mulf %156, %157 : vector<16x238xf32>
    %159 = arith.addf %153, %158 : vector<16x238xf32>
    %160 = vector.extract_strided_slice %159 {offsets = [0, 8], sizes = [16, 200], strides = [1, 1]} : vector<16x238xf32> to vector<16x200xf32>
    %c0_69 = arith.constant 0 : index
    %c0_70 = arith.constant 0 : index
    %161 = vector.load %arg20[%c0_69, %c0_70] : memref<144x200xf32, #tpu.memory_space<vmem>>, vector<16x200xf32>
    tpu.vector_store %arg20[%c0_69, %c0_70], %160 {strides = array<i32>} : memref<144x200xf32, #tpu.memory_space<vmem>>, vector<16x200xf32>,
    %162 = vector.extract_strided_slice %159 {offsets = [0, 9], sizes = [16, 200], strides = [1, 1]} : vector<16x238xf32> to vector<16x200xf32>
    %c16_71 = arith.constant 16 : index
    %c0_72 = arith.constant 0 : index
    %163 = vector.load %arg20[%c16_71, %c0_72] : memref<144x200xf32, #tpu.memory_space<vmem>>, vector<16x200xf32>
    tpu.vector_store %arg20[%c16_71, %c0_72], %162 {strides = array<i32>} : memref<144x200xf32, #tpu.memory_space<vmem>>, vector<16x200xf32>,
    %164 = vector.extract_strided_slice %159 {offsets = [0, 10], sizes = [16, 200], strides = [1, 1]} : vector<16x238xf32> to vector<16x200xf32>
    %c32_73 = arith.constant 32 : index
    %c0_74 = arith.constant 0 : index
    %165 = vector.load %arg20[%c32_73, %c0_74] : memref<144x200xf32, #tpu.memory_space<vmem>>, vector<16x200xf32>
    tpu.vector_store %arg20[%c32_73, %c0_74], %164 {strides = array<i32>} : memref<144x200xf32, #tpu.memory_space<vmem>>, vector<16x200xf32>,
    %166 = vector.extract_strided_slice %159 {offsets = [0, 18], sizes = [16, 200], strides = [1, 1]} : vector<16x238xf32> to vector<16x200xf32>
    %c48_75 = arith.constant 48 : index
    %c0_76 = arith.constant 0 : index
    %167 = vector.load %arg20[%c48_75, %c0_76] : memref<144x200xf32, #tpu.memory_space<vmem>>, vector<16x200xf32>
    tpu.vector_store %arg20[%c48_75, %c0_76], %166 {strides = array<i32>} : memref<144x200xf32, #tpu.memory_space<vmem>>, vector<16x200xf32>,
    %168 = vector.extract_strided_slice %159 {offsets = [0, 19], sizes = [16, 200], strides = [1, 1]} : vector<16x238xf32> to vector<16x200xf32>
    %c64_77 = arith.constant 64 : index
    %c0_78 = arith.constant 0 : index
    %169 = vector.load %arg20[%c64_77, %c0_78] : memref<144x200xf32, #tpu.memory_space<vmem>>, vector<16x200xf32>
    tpu.vector_store %arg20[%c64_77, %c0_78], %168 {strides = array<i32>} : memref<144x200xf32, #tpu.memory_space<vmem>>, vector<16x200xf32>,
    %170 = vector.extract_strided_slice %159 {offsets = [0, 20], sizes = [16, 200], strides = [1, 1]} : vector<16x238xf32> to vector<16x200xf32>
    %c80_79 = arith.constant 80 : index
    %c0_80 = arith.constant 0 : index
    %171 = vector.load %arg20[%c80_79, %c0_80] : memref<144x200xf32, #tpu.memory_space<vmem>>, vector<16x200xf32>
    tpu.vector_store %arg20[%c80_79, %c0_80], %170 {strides = array<i32>} : memref<144x200xf32, #tpu.memory_space<vmem>>, vector<16x200xf32>,
    %172 = vector.extract_strided_slice %159 {offsets = [0, 28], sizes = [16, 200], strides = [1, 1]} : vector<16x238xf32> to vector<16x200xf32>
    %c96_81 = arith.constant 96 : index
    %c0_82 = arith.constant 0 : index
    %173 = vector.load %arg20[%c96_81, %c0_82] : memref<144x200xf32, #tpu.memory_space<vmem>>, vector<16x200xf32>
    tpu.vector_store %arg20[%c96_81, %c0_82], %172 {strides = array<i32>} : memref<144x200xf32, #tpu.memory_space<vmem>>, vector<16x200xf32>,
    %174 = vector.extract_strided_slice %159 {offsets = [0, 29], sizes = [16, 200], strides = [1, 1]} : vector<16x238xf32> to vector<16x200xf32>
    %c112_83 = arith.constant 112 : index
    %c0_84 = arith.constant 0 : index
    %175 = vector.load %arg20[%c112_83, %c0_84] : memref<144x200xf32, #tpu.memory_space<vmem>>, vector<16x200xf32>
    tpu.vector_store %arg20[%c112_83, %c0_84], %174 {strides = array<i32>} : memref<144x200xf32, #tpu.memory_space<vmem>>, vector<16x200xf32>,
    %176 = vector.extract_strided_slice %159 {offsets = [0, 30], sizes = [16, 200], strides = [1, 1]} : vector<16x238xf32> to vector<16x200xf32>
    %c128_85 = arith.constant 128 : index
    %c0_86 = arith.constant 0 : index
    %177 = vector.load %arg20[%c128_85, %c0_86] : memref<144x200xf32, #tpu.memory_space<vmem>>, vector<16x200xf32>
    tpu.vector_store %arg20[%c128_85, %c0_86], %176 {strides = array<i32>} : memref<144x200xf32, #tpu.memory_space<vmem>>, vector<16x200xf32>,
    %c0_87 = arith.constant 0 : index
    %c0_88 = arith.constant 0 : index
    %178 = vector.load %arg10[%c0_87, %c0_88] : memref<32x144xf32, #tpu.memory_space<vmem>>, vector<32x144xf32>
    %c0_89 = arith.constant 0 : index
    %c0_90 = arith.constant 0 : index
    %179 = vector.load %arg20[%c0_89, %c0_90] : memref<144x200xf32, #tpu.memory_space<vmem>>, vector<144x200xf32>
    %cst_91 = arith.constant dense<0.000000e+00> : vector<32x200xf32>
    %180 = tpu.matmul %178, %179, %cst_91 {dimension_numbers = #tpu.dot_dimension_numbers<[1], [0], [0], [1], [0, 0, 1, 1], [], []>} : vector<32x144xf32>, vector<144x200xf32>, vector<32x200xf32> -> vector<32x200xf32>
    %c0_92 = arith.constant 0 : index
    %c0_93 = arith.constant 0 : index
    %181 = vector.load %arg11[%c0_92, %c0_93] : memref<32x3xf32, #tpu.memory_space<vmem>>, vector<32x3xf32>
    %182 = vector.extract_strided_slice %181 {offsets = [0, 0], sizes = [32, 1], strides = [1, 1]} : vector<32x3xf32> to vector<32x1xf32>
    %183 = vector.extract_strided_slice %181 {offsets = [0, 1], sizes = [32, 1], strides = [1, 1]} : vector<32x3xf32> to vector<32x1xf32>
    %184 = vector.extract_strided_slice %181 {offsets = [0, 2], sizes = [32, 1], strides = [1, 1]} : vector<32x3xf32> to vector<32x1xf32>
    %185 = vector.broadcast %182 : vector<32x1xf32> to vector<32x200xf32>
    %186 = arith.addf %180, %185 : vector<32x200xf32>
    %cst_94 = arith.constant 0.000000e+00 : f32
    %187 = vector.broadcast %cst_94 : f32 to vector<32x200xf32>
    %188 = arith.maximumf %186, %187 : vector<32x200xf32>
    %189 = vector.broadcast %183 : vector<32x1xf32> to vector<32x200xf32>
    %190 = arith.mulf %188, %189 : vector<32x200xf32>
    %191 = vector.broadcast %184 : vector<32x1xf32> to vector<32x200xf32>
    %192 = arith.addf %190, %191 : vector<32x200xf32>
    %193 = vector.extract_strided_slice %192 {offsets = [0, 0], sizes = [32, 189], strides = [1, 1]} : vector<32x200xf32> to vector<32x189xf32>
    %194 = vector.extract_strided_slice %192 {offsets = [0, 1], sizes = [32, 189], strides = [1, 1]} : vector<32x200xf32> to vector<32x189xf32>
    %195 = arith.maximumf %193, %194 : vector<32x189xf32>
    %196 = vector.extract_strided_slice %192 {offsets = [0, 10], sizes = [32, 189], strides = [1, 1]} : vector<32x200xf32> to vector<32x189xf32>
    %197 = vector.extract_strided_slice %192 {offsets = [0, 11], sizes = [32, 189], strides = [1, 1]} : vector<32x200xf32> to vector<32x189xf32>
    %198 = arith.maximumf %196, %197 : vector<32x189xf32>
    %199 = arith.maximumf %195, %198 : vector<32x189xf32>
    %200 = vector.extract_strided_slice %199 {offsets = [0, 10], sizes = [32, 10], strides = [1, 1]} : vector<32x189xf32> to vector<32x10xf32>
    %c0_95 = arith.constant 0 : index
    %c0_96 = arith.constant 0 : index
    %201 = vector.load %arg23[%c0_95, %c0_96] : memref<64x40xf32, #tpu.memory_space<vmem>>, vector<32x10xf32>
    tpu.vector_store %arg23[%c0_95, %c0_96], %200 {strides = array<i32>} : memref<64x40xf32, #tpu.memory_space<vmem>>, vector<32x10xf32>,
    %202 = vector.extract_strided_slice %199 {offsets = [0, 30], sizes = [32, 10], strides = [1, 1]} : vector<32x189xf32> to vector<32x10xf32>
    %c0_97 = arith.constant 0 : index
    %c10 = arith.constant 10 : index
    %203 = vector.load %arg23[%c0_97, %c10] : memref<64x40xf32, #tpu.memory_space<vmem>>, vector<32x10xf32>
    tpu.vector_store %arg23[%c0_97, %c10], %202 {strides = array<i32>} : memref<64x40xf32, #tpu.memory_space<vmem>>, vector<32x10xf32>,
    %204 = vector.extract_strided_slice %199 {offsets = [0, 50], sizes = [32, 10], strides = [1, 1]} : vector<32x189xf32> to vector<32x10xf32>
    %c0_98 = arith.constant 0 : index
    %c20 = arith.constant 20 : index
    %205 = vector.load %arg23[%c0_98, %c20] : memref<64x40xf32, #tpu.memory_space<vmem>>, vector<32x10xf32>
    tpu.vector_store %arg23[%c0_98, %c20], %204 {strides = array<i32>} : memref<64x40xf32, #tpu.memory_space<vmem>>, vector<32x10xf32>,
    %206 = vector.extract_strided_slice %199 {offsets = [0, 70], sizes = [32, 10], strides = [1, 1]} : vector<32x189xf32> to vector<32x10xf32>
    %c0_99 = arith.constant 0 : index
    %c30 = arith.constant 30 : index
    %207 = vector.load %arg23[%c0_99, %c30] : memref<64x40xf32, #tpu.memory_space<vmem>>, vector<32x10xf32>
    tpu.vector_store %arg23[%c0_99, %c30], %206 {strides = array<i32>} : memref<64x40xf32, #tpu.memory_space<vmem>>, vector<32x10xf32>,
    %208 = vector.extract_strided_slice %199 {offsets = [0, 110], sizes = [32, 10], strides = [1, 1]} : vector<32x189xf32> to vector<32x10xf32>
    %c32_100 = arith.constant 32 : index
    %c0_101 = arith.constant 0 : index
    %209 = vector.load %arg23[%c32_100, %c0_101] : memref<64x40xf32, #tpu.memory_space<vmem>>, vector<32x10xf32>
    tpu.vector_store %arg23[%c32_100, %c0_101], %208 {strides = array<i32>} : memref<64x40xf32, #tpu.memory_space<vmem>>, vector<32x10xf32>,
    %210 = vector.extract_strided_slice %199 {offsets = [0, 130], sizes = [32, 10], strides = [1, 1]} : vector<32x189xf32> to vector<32x10xf32>
    %c32_102 = arith.constant 32 : index
    %c10_103 = arith.constant 10 : index
    %211 = vector.load %arg23[%c32_102, %c10_103] : memref<64x40xf32, #tpu.memory_space<vmem>>, vector<32x10xf32>
    tpu.vector_store %arg23[%c32_102, %c10_103], %210 {strides = array<i32>} : memref<64x40xf32, #tpu.memory_space<vmem>>, vector<32x10xf32>,
    %212 = vector.extract_strided_slice %199 {offsets = [0, 150], sizes = [32, 10], strides = [1, 1]} : vector<32x189xf32> to vector<32x10xf32>
    %c32_104 = arith.constant 32 : index
    %c20_105 = arith.constant 20 : index
    %213 = vector.load %arg23[%c32_104, %c20_105] : memref<64x40xf32, #tpu.memory_space<vmem>>, vector<32x10xf32>
    tpu.vector_store %arg23[%c32_104, %c20_105], %212 {strides = array<i32>} : memref<64x40xf32, #tpu.memory_space<vmem>>, vector<32x10xf32>,
    %214 = vector.extract_strided_slice %199 {offsets = [0, 170], sizes = [32, 10], strides = [1, 1]} : vector<32x189xf32> to vector<32x10xf32>
    %c32_106 = arith.constant 32 : index
    %c30_107 = arith.constant 30 : index
    %215 = vector.load %arg23[%c32_106, %c30_107] : memref<64x40xf32, #tpu.memory_space<vmem>>, vector<32x10xf32>
    tpu.vector_store %arg23[%c32_106, %c30_107], %214 {strides = array<i32>} : memref<64x40xf32, #tpu.memory_space<vmem>>, vector<32x10xf32>,
    %c0_108 = arith.constant 0 : index
    %c0_109 = arith.constant 0 : index
    %216 = vector.load %arg23[%c0_108, %c0_109] : memref<64x40xf32, #tpu.memory_space<vmem>>, vector<64x40xf32>
    %c0_110 = arith.constant 0 : index
    %c0_111 = arith.constant 0 : index
    %217 = vector.load %arg12[%c0_110, %c0_111] : memref<40x36xf32, #tpu.memory_space<vmem>>, vector<40x36xf32>
    %cst_112 = arith.constant dense<0.000000e+00> : vector<64x36xf32>
    %218 = tpu.matmul %216, %217, %cst_112 {dimension_numbers = #tpu.dot_dimension_numbers<[1], [0], [0], [1], [0, 0, 1, 1], [], []>} : vector<64x40xf32>, vector<40x36xf32>, vector<64x36xf32> -> vector<64x36xf32>
    %cst_113 = arith.constant 0.000000e+00 : f32
    %219 = vector.broadcast %cst_113 : f32 to vector<32x110xf32>
    %c0_114 = arith.constant 0 : index
    %c0_115 = arith.constant 0 : index
    %220 = vector.load %arg25[%c0_114, %c0_115] : memref<32x110xf32, #tpu.memory_space<vmem>>, vector<32x110xf32>
    tpu.vector_store %arg25[%c0_114, %c0_115], %219 {strides = array<i32>} : memref<32x110xf32, #tpu.memory_space<vmem>>, vector<32x110xf32>,
    %221 = vector.extract_strided_slice %218 {offsets = [0, 0], sizes = [32, 36], strides = [1, 1]} : vector<64x36xf32> to vector<32x36xf32>
    %c0_116 = arith.constant 0 : index
    %c19_117 = arith.constant 19 : index
    %222 = vector.load %arg25[%c0_116, %c19_117] : memref<32x110xf32, #tpu.memory_space<vmem>>, vector<32x36xf32>
    tpu.vector_store %arg25[%c0_116, %c19_117], %221 {strides = array<i32>} : memref<32x110xf32, #tpu.memory_space<vmem>>, vector<32x36xf32>,
    %223 = vector.extract_strided_slice %218 {offsets = [32, 0], sizes = [32, 36], strides = [1, 1]} : vector<64x36xf32> to vector<32x36xf32>
    %c0_118 = arith.constant 0 : index
    %c55 = arith.constant 55 : index
    %224 = vector.load %arg25[%c0_118, %c55] : memref<32x110xf32, #tpu.memory_space<vmem>>, vector<32x36xf32>
    tpu.vector_store %arg25[%c0_118, %c55], %223 {strides = array<i32>} : memref<32x110xf32, #tpu.memory_space<vmem>>, vector<32x36xf32>,
    %c0_119 = arith.constant 0 : index
    %c12 = arith.constant 12 : index
    %225 = vector.load %arg25[%c0_119, %c12] : memref<32x110xf32, #tpu.memory_space<vmem>>, vector<32x72xf32>
    %c0_120 = arith.constant 0 : index
    %c0_121 = arith.constant 0 : index
    %226 = vector.load %arg21[%c0_120, %c0_121] : memref<288x72xf32, #tpu.memory_space<vmem>>, vector<32x72xf32>
    tpu.vector_store %arg21[%c0_120, %c0_121], %225 {strides = array<i32>} : memref<288x72xf32, #tpu.memory_space<vmem>>, vector<32x72xf32>,
    %c0_122 = arith.constant 0 : index
    %c13 = arith.constant 13 : index
    %227 = vector.load %arg25[%c0_122, %c13] : memref<32x110xf32, #tpu.memory_space<vmem>>, vector<32x72xf32>
    %c32_123 = arith.constant 32 : index
    %c0_124 = arith.constant 0 : index
    %228 = vector.load %arg21[%c32_123, %c0_124] : memref<288x72xf32, #tpu.memory_space<vmem>>, vector<32x72xf32>
    tpu.vector_store %arg21[%c32_123, %c0_124], %227 {strides = array<i32>} : memref<288x72xf32, #tpu.memory_space<vmem>>, vector<32x72xf32>,
    %c0_125 = arith.constant 0 : index
    %c14 = arith.constant 14 : index
    %229 = vector.load %arg25[%c0_125, %c14] : memref<32x110xf32, #tpu.memory_space<vmem>>, vector<32x72xf32>
    %c64_126 = arith.constant 64 : index
    %c0_127 = arith.constant 0 : index
    %230 = vector.load %arg21[%c64_126, %c0_127] : memref<288x72xf32, #tpu.memory_space<vmem>>, vector<32x72xf32>
    tpu.vector_store %arg21[%c64_126, %c0_127], %229 {strides = array<i32>} : memref<288x72xf32, #tpu.memory_space<vmem>>, vector<32x72xf32>,
    %c0_128 = arith.constant 0 : index
    %c18_129 = arith.constant 18 : index
    %231 = vector.load %arg25[%c0_128, %c18_129] : memref<32x110xf32, #tpu.memory_space<vmem>>, vector<32x72xf32>
    %c96_130 = arith.constant 96 : index
    %c0_131 = arith.constant 0 : index
    %232 = vector.load %arg21[%c96_130, %c0_131] : memref<288x72xf32, #tpu.memory_space<vmem>>, vector<32x72xf32>
    tpu.vector_store %arg21[%c96_130, %c0_131], %231 {strides = array<i32>} : memref<288x72xf32, #tpu.memory_space<vmem>>, vector<32x72xf32>,
    %c0_132 = arith.constant 0 : index
    %c19_133 = arith.constant 19 : index
    %233 = vector.load %arg25[%c0_132, %c19_133] : memref<32x110xf32, #tpu.memory_space<vmem>>, vector<32x72xf32>
    %c128_134 = arith.constant 128 : index
    %c0_135 = arith.constant 0 : index
    %234 = vector.load %arg21[%c128_134, %c0_135] : memref<288x72xf32, #tpu.memory_space<vmem>>, vector<32x72xf32>
    tpu.vector_store %arg21[%c128_134, %c0_135], %233 {strides = array<i32>} : memref<288x72xf32, #tpu.memory_space<vmem>>, vector<32x72xf32>,
    %c0_136 = arith.constant 0 : index
    %c20_137 = arith.constant 20 : index
    %235 = vector.load %arg25[%c0_136, %c20_137] : memref<32x110xf32, #tpu.memory_space<vmem>>, vector<32x72xf32>
    %c160 = arith.constant 160 : index
    %c0_138 = arith.constant 0 : index
    %236 = vector.load %arg21[%c160, %c0_138] : memref<288x72xf32, #tpu.memory_space<vmem>>, vector<32x72xf32>
    tpu.vector_store %arg21[%c160, %c0_138], %235 {strides = array<i32>} : memref<288x72xf32, #tpu.memory_space<vmem>>, vector<32x72xf32>,
    %c0_139 = arith.constant 0 : index
    %c24 = arith.constant 24 : index
    %237 = vector.load %arg25[%c0_139, %c24] : memref<32x110xf32, #tpu.memory_space<vmem>>, vector<32x72xf32>
    %c192 = arith.constant 192 : index
    %c0_140 = arith.constant 0 : index
    %238 = vector.load %arg21[%c192, %c0_140] : memref<288x72xf32, #tpu.memory_space<vmem>>, vector<32x72xf32>
    tpu.vector_store %arg21[%c192, %c0_140], %237 {strides = array<i32>} : memref<288x72xf32, #tpu.memory_space<vmem>>, vector<32x72xf32>,
    %c0_141 = arith.constant 0 : index
    %c25 = arith.constant 25 : index
    %239 = vector.load %arg25[%c0_141, %c25] : memref<32x110xf32, #tpu.memory_space<vmem>>, vector<32x72xf32>
    %c224 = arith.constant 224 : index
    %c0_142 = arith.constant 0 : index
    %240 = vector.load %arg21[%c224, %c0_142] : memref<288x72xf32, #tpu.memory_space<vmem>>, vector<32x72xf32>
    tpu.vector_store %arg21[%c224, %c0_142], %239 {strides = array<i32>} : memref<288x72xf32, #tpu.memory_space<vmem>>, vector<32x72xf32>,
    %c0_143 = arith.constant 0 : index
    %c26 = arith.constant 26 : index
    %241 = vector.load %arg25[%c0_143, %c26] : memref<32x110xf32, #tpu.memory_space<vmem>>, vector<32x72xf32>
    %c256 = arith.constant 256 : index
    %c0_144 = arith.constant 0 : index
    %242 = vector.load %arg21[%c256, %c0_144] : memref<288x72xf32, #tpu.memory_space<vmem>>, vector<32x72xf32>
    tpu.vector_store %arg21[%c256, %c0_144], %241 {strides = array<i32>} : memref<288x72xf32, #tpu.memory_space<vmem>>, vector<32x72xf32>,
    %c0_145 = arith.constant 0 : index
    %c0_146 = arith.constant 0 : index
    %243 = vector.load %arg13[%c0_145, %c0_146] : memref<16x288xf32, #tpu.memory_space<vmem>>, vector<16x288xf32>
    %c0_147 = arith.constant 0 : index
    %c0_148 = arith.constant 0 : index
    %244 = vector.load %arg21[%c0_147, %c0_148] : memref<288x72xf32, #tpu.memory_space<vmem>>, vector<288x72xf32>
    %cst_149 = arith.constant dense<0.000000e+00> : vector<16x72xf32>
    %245 = tpu.matmul %243, %244, %cst_149 {dimension_numbers = #tpu.dot_dimension_numbers<[1], [0], [0], [1], [0, 0, 1, 1], [], []>} : vector<16x288xf32>, vector<288x72xf32>, vector<16x72xf32> -> vector<16x72xf32>
    %c0_150 = arith.constant 0 : index
    %c0_151 = arith.constant 0 : index
    %246 = vector.load %arg14[%c0_150, %c0_151] : memref<16x3xf32, #tpu.memory_space<vmem>>, vector<16x3xf32>
    %247 = vector.extract_strided_slice %246 {offsets = [0, 0], sizes = [16, 1], strides = [1, 1]} : vector<16x3xf32> to vector<16x1xf32>
    %248 = vector.extract_strided_slice %246 {offsets = [0, 1], sizes = [16, 1], strides = [1, 1]} : vector<16x3xf32> to vector<16x1xf32>
    %249 = vector.extract_strided_slice %246 {offsets = [0, 2], sizes = [16, 1], strides = [1, 1]} : vector<16x3xf32> to vector<16x1xf32>
    %250 = vector.broadcast %247 : vector<16x1xf32> to vector<16x72xf32>
    %251 = arith.addf %245, %250 : vector<16x72xf32>
    %cst_152 = arith.constant 0.000000e+00 : f32
    %252 = vector.broadcast %cst_152 : f32 to vector<16x72xf32>
    %253 = arith.maximumf %251, %252 : vector<16x72xf32>
    %254 = vector.broadcast %248 : vector<16x1xf32> to vector<16x72xf32>
    %255 = arith.mulf %253, %254 : vector<16x72xf32>
    %256 = vector.broadcast %249 : vector<16x1xf32> to vector<16x72xf32>
    %257 = arith.addf %255, %256 : vector<16x72xf32>
    %c0_153 = arith.constant 0 : index
    %c0_154 = arith.constant 0 : index
    %258 = vector.load %arg15[%c0_153, %c0_154] : memref<72x2xf32, #tpu.memory_space<vmem>>, vector<72x2xf32>
    %cst_155 = arith.constant dense<0.000000e+00> : vector<16x2xf32>
    %259 = tpu.matmul %257, %258, %cst_155 {dimension_numbers = #tpu.dot_dimension_numbers<[1], [0], [0], [1], [0, 0, 1, 1], [], []>} : vector<16x72xf32>, vector<72x2xf32>, vector<16x2xf32> -> vector<16x2xf32>
    %c0_156 = arith.constant 0 : index
    %c0_157 = arith.constant 0 : index
    %260 = vector.load %arg16[%c0_156, %c0_157] : memref<10x16xf32, #tpu.memory_space<vmem>>, vector<10x16xf32>
    %cst_158 = arith.constant dense<0.000000e+00> : vector<10x2xf32>
    %261 = tpu.matmul %260, %259, %cst_158 {dimension_numbers = #tpu.dot_dimension_numbers<[1], [0], [0], [1], [0, 0, 1, 1], [], []>} : vector<10x16xf32>, vector<16x2xf32>, vector<10x2xf32> -> vector<10x2xf32>
    %c0_159 = arith.constant 0 : index
    %c0_160 = arith.constant 0 : index
    %262 = vector.load %arg17[%c0_159, %c0_160] : memref<10x1xf32, #tpu.memory_space<vmem>>, vector<10x1xf32>
    %263 = vector.broadcast %262 : vector<10x1xf32> to vector<10x2xf32>
    %264 = arith.addf %261, %263 : vector<10x2xf32>
    %cst_161 = arith.constant dense<0xFF800000> : vector<2xf32>
    %265 = vector.multi_reduction <maximumf>, %264, %cst_161 [0] : vector<10x2xf32> to vector<2xf32>
    %266 = vector.shape_cast %265 : vector<2xf32> to vector<1x2xf32>
    %267 = vector.broadcast %266 : vector<1x2xf32> to vector<10x2xf32>
    %268 = arith.subf %264, %267 : vector<10x2xf32>
    %269 = math.exp %268 : vector<10x2xf32>
    %cst_162 = arith.constant dense<0.000000e+00> : vector<2xf32>
    %270 = vector.multi_reduction <add>, %269, %cst_162 [0] : vector<10x2xf32> to vector<2xf32>
    %271 = vector.shape_cast %270 : vector<2xf32> to vector<1x2xf32>
    %272 = math.log %271 : vector<1x2xf32>
    %273 = vector.broadcast %272 : vector<1x2xf32> to vector<10x2xf32>
    %274 = arith.subf %268, %273 : vector<10x2xf32>
    %275 = tpu.transpose %274, [1, 0] : vector<10x2xf32> -> vector<2x10xf32>
    %c0_163 = arith.constant 0 : index
    %c0_164 = arith.constant 0 : index
    %276 = vector.load %arg18[%c0_163, %c0_164] : memref<2x10xf32, #tpu.memory_space<vmem>>, vector<2x10xf32>
    tpu.vector_store %arg18[%c0_163, %c0_164], %275 {strides = array<i32>} : memref<2x10xf32, #tpu.memory_space<vmem>>, vector<2x10xf32>,
    return
  }
}

</mosaic_0001>

<bundles_post_ra>
// kernel: squeeze.5
= control target key start
LH: loop header
LB: loop body
LE: loop exit
PB: predicated region body
PF: predicated region fallthrough
CT: control target
= control target key end

     0   :  { %vm17_vm0 = vcmask 130048   ;;  %s62_s0 = inlined_call_operand.vmem [shape: f32[16,3,3], index: 0, kind: input, shape index: {}]   ;;  %s63_s1 = inlined_call_operand.vmem [shape: f32[16,9], index: 1, kind: output, shape index: {}]  }
   0x1   :  { %v30_v0 = vld [vmem:[%s62_s0 + $0x8] sm:$0xf]  ;;  %v31_v1 = vld [vmem:[%s62_s0 + $0x4] sm:$0xf]  ;;  %v14_v2 = vld [vmem:[%s62_s0] sm:$0xf] }
   0x2   :  { %9 = vst [vmem:[#allocation0] sm:$0xf] %v30_v0  ;;  %13 = vst [vmem:[#allocation0 + $0x10] sm:$0xf] %v31_v1 }
   0x3   :  { %15 = vst [vmem:[#allocation0 + $0x8] sm:$0xf] %v14_v2 }
   0x9   :  { %v20_v4 = vld [vmem:[#allocation0 + $0x10] sm:$0x7]   ;;  %v25_v5 = vld [vmem:[#allocation0] sm:$0x7]  }
   0xa   :  { %v16_v3 = vld [vmem:[#allocation0 + $0x8] sm:$0x7]   ;;  %32 = vst.msk [vmem:[%s63_s1 + $0x3] sm:$0x7] %vm17_vm0, %v20_v4   ;;  %33 = vst.msk [vmem:[%s63_s1 + $0x6] sm:$0x7] %vm17_vm0, %v25_v5  }
   0xb   :  { %18 = vst.msk [vmem:[%s63_s1] sm:$0x7] %vm17_vm0, %v16_v3  }

// kernel: net_forward.1
= control target key start
LH: loop header
LB: loop body
LE: loop exit
PB: predicated region body
PF: predicated region fallthrough
CT: control target
= control target key end

     0   :  { %s7256_s0 = inlined_call_operand.vmem [shape: f32[1,724], index: 0, kind: input, shape index: {}]   ;;  %s7257_s1 = inlined_call_operand.vmem [shape: f32[1,686], index: 1, kind: input, shape index: {}]   ;;  %s7258_s2 = inlined_call_operand.vmem [shape: f32[1,238], index: 2, kind: input, shape index: {}]   ;;  %s7259_s3 = inlined_call_operand.vmem [shape: f32[16,9], index: 3, kind: input, shape index: {}]   ;;  %s7260_s4 = inlined_call_operand.vmem [shape: f32[16,3], index: 4, kind: input, shape index: {}]   ;;  %s7261_s5 = inlined_call_operand.vmem [shape: f32[32,144], index: 5, kind: input, shape index: {}]   ;;  %s7262_s6 = inlined_call_operand.vmem [shape: f32[32,3], index: 6, kind: input, shape index: {}]   ;;  %s7263_s7 = inlined_call_operand.vmem [shape: f32[144,100], index: 7, kind: input, shape index: {}]   ;;  %s7264_s8 = inlined_call_operand.vmem [shape: f32[16,32], index: 8, kind: input, shape index: {}]   ;;  %s7265_s9 = inlined_call_operand.vmem [shape: f32[16,1], index: 9, kind: input, shape index: {}]   ;;  %s7266_s10 = inlined_call_operand.vmem [shape: f32[32,144], index: 10, kind: input, shape index: {}]   ;;  %s7267_s11 = inlined_call_operand.vmem [shape: f32[32,3], index: 11, kind: input, shape index: {}]   ;;  %s7268_s12 = inlined_call_operand.vmem [shape: f32[40,36], index: 12, kind: input, shape index: {}]   ;;  %s7269_s13 = inlined_call_operand.vmem [shape: f32[16,288], index: 13, kind: input, shape index: {}]   ;;  %s7270_s14 = inlined_call_operand.vmem [shape: f32[16,3], index: 14, kind: input, shape index: {}]   ;;  %s7271_s15 = inlined_call_operand.vmem [shape: f32[72,2], index: 15, kind: input, shape index: {}]   ;;  %s7272_s16 = inlined_call_operand.vmem [shape: f32[10,16], index: 16, kind: input, shape index: {}]   ;;  %s7273_s17 = inlined_call_operand.vmem [shape: f32[10,1], index: 17, kind: input, shape index: {}]   ;;  %s7274_s18 = inlined_call_operand.hbm [shape: f32[2,10], index: 18, kind: output, shape index: {}]  }
   0x1   :  { %7309 = sst [smem:[#allocation26_spill]] %s7256_s0 }
   0x2   :  { %7310 = sst [smem:[#allocation27_spill]] %s7257_s1 }
   0x3   :  { %7311 = sst [smem:[#allocation28_spill]] %s7258_s2 }
   0x4   :  { %v62_v0 = vld [vmem:[%s7259_s3 + $0x8] sm:$0xff]  ;;  %v7279_v1 = vmov 1   ;;  %v7277_v2 = vmov 2  }
   0x5   :  { %4661 = vset.pattern.permute.xlu0 %v7279_v1  ;;  %4662 = vset.pattern.permute.xlu1 %v7277_v2 }
   0x6   :  { %121 = vperm.xlu0 %4661, %v62_v0   ;;  %212 = vperm.xlu1 %4662, %v62_v0  }
   0x7   :  { %23 = vsyncpa [#allocation10], 0  ;;  %v61_v3 = vld [vmem:[%s7259_s3] sm:$0xff]  ;;  %v4730_v4 = vmov 3   ;;  %v4731_v5 = vmov 4   ;;  %v4732_v6 = vmov 5   ;;  %v74_v11 = vlaneseq }
   0x8   :  { %v4733_v7 = vmov 6   ;;  %v4734_v8 = vmov 7   ;;  %v7275_v9 = vmov 0   ;;  %v4736_v10 = vmov 8   ;;  %s7314_s19 = sld [smem:[#allocation26_spill]]  ;;  %s4737_s1 = smov 127  }
   0x9   :  { %v4881_v12 = vshrl.u32 %v74_v11, 7  ;;  %s4738_s20 = smov 126   ;;  %s4739_s21 = smov 110   ;;  %vm172_vm0 = vcmask 1039360   ;;  %vm263_vm1 = vcmask 1031168   ;;  %vm354_vm2 = vcmask 900096  }
   0xa   :  { %117 = vperm.xlu0 %4661, %v61_v3   ;;  %208 = vperm.xlu1 %4662, %v61_v3   ;;  %s4740_s22 = smov 109   ;;  %s4741_s2 = smov 108   ;;  %vm445_vm3 = vcmask 891904   ;;  %vm536_vm4 = vcmask 883712   ;;  %vm627_vm5 = vcmask 752640   ;;  %vm718_vm6 = vcmask 744448  }
   0xb   :  { %7312 = vst [vmem:[#allocation12_spill] sm:$0xff] %v4881_v12  ;;  %v7284_v13 = vsub.s32 2, %v4881_v12  ;;  %v4885_v14 = vsub.s32 1, %v4881_v12  ;;  %v7282_v18 = vsub.s32 3, %v4881_v12  ;;  %v4903_v19 = vsub.s32 0, %v4881_v12  ;;  %s4742_s23 = smov 92  }
   0xc   :  { %s4743_s24 = smov 91   ;;  %s4744_s27 = smov 90   ;;  %vm809_vm7 = vcmask 736256   ;;  %vm969_vm8 = vcmask 64512   ;;  %vm1593_vm9 = vcmask 130048   ;;  %vm2273_vm10 = vcmask 146432  }
   0xd   :  { %7313 = vst [vmem:[#allocation13_spill] sm:$0xff] %v4885_v14  ;;  %7315 = vst [vmem:[#allocation14_spill] sm:$0xff] %v4903_v19  ;;  %s7332_s3 = sld [smem:[#allocation27_spill]]  ;;  %s4746_s0 = smov 74   ;;  %vm2290_vm11 = vcmask 294032   ;;  %vm2307_vm12 = vcmask 441632  }
   0xe   :  { %4663 = vset.pattern.permute.xlu0 %v4730_v4  ;;  %4664 = vset.pattern.permute.xlu1 %v4730_v4  ;;  %v4890_v15 = vld [vmem:[%s7314_s19] sm:$0x3f]  ;;  %s4747_s19 = smov 38   ;;  %s4749_s28 = smov 2   ;;  %vm2332_vm13 = vcmask 457728   ;;  %vm2341_vm14 = vcmask 589232  }
   0xf   :  { %303 = vperm.xlu0 %4663, %v62_v0   ;;  %299 = vperm.xlu1 %4664, %v61_v3   ;;  %v4895_v16 = vrot.slane %v4890_v15, %v7284_v13  ;;  %v4899_v17 = vrot.slane %v4890_v15, %v4885_v14  ;;  %v4914_v23 = vrot.slane %v4890_v15, %v7282_v18  ;;  %s4753_s25 = smov 24   ;;  %s4757_s26 = smov 80   ;;  %vm2358_vm15 = vcmask 736832  }
  0x10   :  { %v4918_v24 = vrot.slane %v4890_v15, %v4903_v19  ;;  %s4758_s29 = smov 44   ;;  %s4761_s30 = smov 119  }
  0x11   :  { %7316 = vst [vmem:[#allocation15_spill] sm:$0xff] %v4914_v23 }
  0x13   :  { %4665 = vset.pattern.permute.xlu1 %v4731_v5  ;;  %4666 = vset.pattern.permute.xlu0 %v4731_v5 }
  0x14   :  { %394 = vperm.xlu1 %4665, %v62_v0   ;;  %390 = vperm.xlu0 %4666, %v61_v3  }
  0x18   :  { %4667 = vset.pattern.permute.xlu1 %v4732_v6  ;;  %4668 = vset.pattern.permute.xlu0 %v4733_v7 }
  0x19   :  { %485 = vperm.xlu1 %4667, %v62_v0   ;;  %576 = vperm.xlu0 %4668, %v62_v0  }
  0x1d   :  { %481 = vperm.xlu1 %4667, %v61_v3   ;;  %4671 = vset.pattern.permute.xlu0 %v4734_v8 }
  0x1e   :  { %663 = vperm.xlu0 %4671, %v61_v3  }
  0x21   :  { %4669 = vset.pattern.permute.xlu1 %v4733_v7 }
  0x22   :  { %572 = vperm.xlu1 %4669, %v61_v3   ;;  %4673 = vset.pattern.permute.xlu0 %v7275_v9 }
  0x23   :  { %70 = vperm.xlu0 %4673, %v62_v0  }
  0x26   :  { %4670 = vset.pattern.permute.xlu1 %v4734_v8 }
  0x27   :  { %667 = vperm.xlu1 %4670, %v62_v0  }
  0x2b   :  { %4672 = vset.pattern.permute.xlu1 %v4736_v10 }
  0x2c   :  { %758 = vperm.xlu1 %4672, %v62_v0  }
  0x30   :  { %754 = vperm.xlu1 %4672, %v61_v3  }
  0x34   :  { %4674 = vset.pattern.permute.xlu1 %v7275_v9 }
  0x35   :  { %65 = vperm.xlu1 %4674, %v61_v3  }
  0x81   :  { %v4905_v20 = vpop.permute.xlu0 %121  ;;  %v4930_v28 = vpop.permute.xlu1 %212 }
  0x82   :  { %v132_v21 = vmul.f32 %v4905_v20, %v4895_v16  ;;  %v131_v22 = vmul.f32 %v4905_v20, %v4899_v17  ;;  %v133_v25 = vmul.f32 %v4905_v20, %v4914_v23  ;;  %v130_v26 = vmul.f32 %v4905_v20, %v4918_v24 }
  0x83   :  { %v222_v31 = vmul.f32 %v4930_v28, %v4899_v17  ;;  %v223_v33 = vmul.f32 %v4930_v28, %v4895_v16  ;;  %v224_v34 = vmul.f32 %v4930_v28, %v4914_v23  ;;  %v221_v35 = vmul.f32 %v4930_v28, %v4918_v24 }
  0x84   :  { %164 = vrot.lane.b32.xlu0 %v132_v21, %s4737_s1  ;;  %162 = vrot.lane.b32.xlu1 %v131_v22, %s4737_s1 }
  0x85   :  { %v4926_v27 = vpop.permute.xlu0 %117  ;;  %v4954_v37 = vpop.permute.xlu1 %208 }
  0x86   :  { %v125_v29 = vmul.f32 %v4926_v27, %v4899_v17  ;;  %v126_v30 = vmul.f32 %v4926_v27, %v4895_v16  ;;  %v127_v32 = vmul.f32 %v4926_v27, %v4914_v23  ;;  %v124_v36 = vmul.f32 %v4926_v27, %v4918_v24 }
  0x87   :  { %v217_v39 = vmul.f32 %v4954_v37, %v4895_v16  ;;  %v216_v40 = vmul.f32 %v4954_v37, %v4899_v17  ;;  %v218_v42 = vmul.f32 %v4954_v37, %v4914_v23  ;;  %v215_v47 = vmul.f32 %v4954_v37, %v4918_v24 }
  0x88   :  { %166 = vrot.lane.b32.xlu1 %v133_v25, %s4737_s1  ;;  %160 = vrot.lane.b32.xlu0 %v130_v26, %s4737_s1 }
  0x8a   :  { %v4958_v38 = vpop.permute.xlu0 %303  ;;  %v4976_v45 = vpop.permute.xlu1 %299 }
  0x8b   :  { %v313_v41 = vmul.f32 %v4958_v38, %v4899_v17  ;;  %v315_v43 = vmul.f32 %v4958_v38, %v4914_v23  ;;  %v314_v44 = vmul.f32 %v4958_v38, %v4895_v16  ;;  %v312_v46 = vmul.f32 %v4958_v38, %v4918_v24 }
  0x8c   :  { %150 = vrot.lane.b32.xlu1 %v125_v29, %s4737_s1  ;;  %152 = vrot.lane.b32.xlu0 %v126_v30, %s4737_s1  ;;  %v308_v48 = vmul.f32 %v4976_v45, %v4895_v16  ;;  %v307_v49 = vmul.f32 %v4976_v45, %v4899_v17  ;;  %v309_v52 = vmul.f32 %v4976_v45, %v4914_v23 }
  0x8d   :  { %v306_v57 = vmul.f32 %v4976_v45, %v4918_v24 }
  0x8f   :  { %v4990_v50 = vpop.permute.xlu1 %394  ;;  %v5006_v55 = vpop.permute.xlu0 %390 }
  0x90   :  { %154 = vrot.lane.b32.xlu1 %v127_v32, %s4737_s1  ;;  %253 = vrot.lane.b32.xlu0 %v222_v31, %s4738_s20  ;;  %v404_v51 = vmul.f32 %v4990_v50, %v4899_v17  ;;  %v406_v53 = vmul.f32 %v4990_v50, %v4914_v23  ;;  %v405_v54 = vmul.f32 %v4990_v50, %v4895_v16 }
  0x91   :  { %v403_v56 = vmul.f32 %v4990_v50, %v4918_v24  ;;  %v399_v58 = vmul.f32 %v5006_v55, %v4895_v16  ;;  %v398_v59 = vmul.f32 %v5006_v55, %v4899_v17  ;;  %v400_v62 = vmul.f32 %v5006_v55, %v4914_v23 }
  0x92   :  { %v397_v4 = vmul.f32 %v5006_v55, %v4918_v24 }
  0x94   :  { %255 = vrot.lane.b32.xlu1 %v223_v33, %s4738_s20  ;;  %257 = vrot.lane.b32.xlu0 %v224_v34, %s4738_s20  ;;  %v5018_v60 = vpop.permute.xlu1 %485  ;;  %v5042_v6 = vpop.permute.xlu0 %576 }
  0x95   :  { %v495_v61 = vmul.f32 %v5018_v60, %v4899_v17  ;;  %v497_v63 = vmul.f32 %v5018_v60, %v4914_v23  ;;  %v496_v0 = vmul.f32 %v5018_v60, %v4895_v16  ;;  %v494_v3 = vmul.f32 %v5018_v60, %v4918_v24 }
  0x96   :  { %v586_v10 = vmul.f32 %v5042_v6, %v4899_v17  ;;  %v588_v21 = vmul.f32 %v5042_v6, %v4914_v23  ;;  %v587_v22 = vmul.f32 %v5042_v6, %v4895_v16  ;;  %v585_v26 = vmul.f32 %v5042_v6, %v4918_v24 }
  0x98   :  { %251 = vrot.lane.b32.xlu0 %v221_v35, %s4738_s20  ;;  %148 = vrot.lane.b32.xlu1 %v124_v36, %s4737_s1  ;;  %v5038_v5 = vpop.permute.xlu1 %481 }
  0x99   :  { %v490_v7 = vmul.f32 %v5038_v5, %v4895_v16  ;;  %v489_v8 = vmul.f32 %v5038_v5, %v4899_v17  ;;  %v491_v11 = vmul.f32 %v5038_v5, %v4914_v23  ;;  %v488_v29 = vmul.f32 %v5038_v5, %v4918_v24 }
  0x9c   :  { %243 = vrot.lane.b32.xlu0 %v217_v39, %s4738_s20  ;;  %241 = vrot.lane.b32.xlu1 %v216_v40, %s4738_s20  ;;  %v845_v40 = vld [vmem:[%s7260_s4 + $0x8] sm:$0xff] }
  0x9d   :  { %v5060_v25 = vpop.permute.xlu1 %572 }
  0x9e   :  { %v581_v30 = vmul.f32 %v5060_v25, %v4895_v16  ;;  %v580_v31 = vmul.f32 %v5060_v25, %v4899_v17  ;;  %v582_v34 = vmul.f32 %v5060_v25, %v4914_v23 }
  0xa0   :  { %344 = vrot.lane.b32.xlu0 %v313_v41, %s4739_s21  ;;  %245 = vrot.lane.b32.xlu1 %v218_v42, %s4738_s20  ;;  %v5095_v41 = vpop.permute.xlu0 %663  ;;  %v579_v42 = vmul.f32 %v5060_v25, %v4918_v24 }
  0xa2   :  { %v5074_v32 = vpop.permute.xlu1 %667 }
  0xa3   :  { %v677_v33 = vmul.f32 %v5074_v32, %v4899_v17  ;;  %v679_v35 = vmul.f32 %v5074_v32, %v4914_v23  ;;  %v678_v36 = vmul.f32 %v5074_v32, %v4895_v16 }
  0xa4   :  { %348 = vrot.lane.b32.xlu0 %v315_v43, %s4739_s21  ;;  %346 = vrot.lane.b32.xlu1 %v314_v44, %s4739_s21  ;;  %v671_v43 = vmul.f32 %v5095_v41, %v4899_v17  ;;  %v676_v44 = vmul.f32 %v5074_v32, %v4918_v24 }
  0xa7   :  { %v5090_v39 = vpop.permute.xlu1 %758 }
  0xa8   :  { %342 = vrot.lane.b32.xlu0 %v312_v46, %s4739_s21  ;;  %239 = vrot.lane.b32.xlu1 %v215_v47, %s4738_s20  ;;  %v673_v47 = vmul.f32 %v5095_v41, %v4914_v23 }
  0xab   :  { %v5104_v46 = vpop.permute.xlu1 %754 }
  0xac   :  { %334 = vrot.lane.b32.xlu0 %v308_v48, %s4739_s21  ;;  %332 = vrot.lane.b32.xlu1 %v307_v49, %s4739_s21  ;;  %v672_v48 = vmul.f32 %v5095_v41, %v4895_v16 }
  0xb0   :  { %435 = vrot.lane.b32.xlu0 %v404_v51, %s4740_s22  ;;  %336 = vrot.lane.b32.xlu1 %v309_v52, %s4739_s21  ;;  %v5115_v49 = vpop.permute.xlu1 %65  ;;  %v5117_v51 = vpop.permute.xlu0 %70  ;;  %v769_v52 = vmul.f32 %v5090_v39, %v4895_v16 }
  0xb1   :  { %7317 = vst [vmem:[#allocation16_spill] sm:$0xff] %v5117_v51  ;;  %v105_v19 = vmul.f32 %v4899_v17, %v5115_v49 }
  0xb4   :  { %439 = vrot.lane.b32.xlu0 %v406_v53, %s4740_s22  ;;  %437 = vrot.lane.b32.xlu1 %v405_v54, %s4740_s22  ;;  %v768_v53 = vmul.f32 %v5090_v39, %v4899_v17  ;;  %v844_v54 = vld [vmem:[%s7260_s4] sm:$0xff]  ;;  %s4759_s4 = smov 62  }
  0xb8   :  { %433 = vrot.lane.b32.xlu0 %v403_v56, %s4740_s22  ;;  %330 = vrot.lane.b32.xlu1 %v306_v57, %s4739_s21 }
  0xbc   :  { %425 = vrot.lane.b32.xlu0 %v399_v58, %s4740_s22  ;;  %423 = vrot.lane.b32.xlu1 %v398_v59, %s4740_s22  ;;  %v770_v58 = vmul.f32 %v5090_v39, %v4914_v23 }
  0xc0   :  { %526 = vrot.lane.b32.xlu0 %v495_v61, %s4741_s2  ;;  %427 = vrot.lane.b32.xlu1 %v400_v62, %s4740_s22  ;;  %v767_v62 = vmul.f32 %v5090_v39, %v4918_v24 }
  0xc4   :  { %530 = vrot.lane.b32.xlu0 %v497_v63, %s4741_s2  ;;  %528 = vrot.lane.b32.xlu1 %v496_v0, %s4741_s2  ;;  %v670_v63 = vmul.f32 %v5095_v41, %v4918_v24 }
  0xc8   :  { %524 = vrot.lane.b32.xlu0 %v494_v3, %s4741_s2  ;;  %421 = vrot.lane.b32.xlu1 %v397_v4, %s4740_s22  ;;  %v763_v4 = vmul.f32 %v5104_v46, %v4895_v16 }
  0xcc   :  { %516 = vrot.lane.b32.xlu0 %v490_v7, %s4741_s2  ;;  %514 = vrot.lane.b32.xlu1 %v489_v8, %s4741_s2  ;;  %v762_v7 = vmul.f32 %v5104_v46, %v4899_v17 }
  0xd0   :  { %617 = vrot.lane.b32.xlu0 %v586_v10, %s4742_s23  ;;  %518 = vrot.lane.b32.xlu1 %v491_v11, %s4741_s2  ;;  %v764_v11 = vmul.f32 %v5104_v46, %v4914_v23 }
  0xd4   :  { %621 = vrot.lane.b32.xlu0 %v588_v21, %s4742_s23  ;;  %619 = vrot.lane.b32.xlu1 %v587_v22, %s4742_s23  ;;  %v7283_v21 = vsub.s32 5, %v4881_v12 }
  0xd8   :  { %615 = vrot.lane.b32.xlu0 %v585_v26, %s4742_s23  ;;  %512 = vrot.lane.b32.xlu1 %v488_v29, %s4741_s2  ;;  %v761_v29 = vmul.f32 %v5104_v46, %v4918_v24 }
  0xdc   :  { %607 = vrot.lane.b32.xlu0 %v581_v30, %s4742_s23  ;;  %605 = vrot.lane.b32.xlu1 %v580_v31, %s4742_s23  ;;  %v5173_v30 = vrot.slane %v4890_v15, %v7283_v21 }
  0xde   :  { %7320 = vst [vmem:[#allocation19_spill] sm:$0xff] %v5173_v30 }
  0xe0   :  { %708 = vrot.lane.b32.xlu0 %v677_v33, %s4743_s24  ;;  %609 = vrot.lane.b32.xlu1 %v582_v34, %s4742_s23  ;;  %v135_v34 = vmul.f32 %v4905_v20, %v5173_v30 }
  0xe4   :  { %712 = vrot.lane.b32.xlu0 %v679_v35, %s4743_s24  ;;  %710 = vrot.lane.b32.xlu1 %v678_v36, %s4743_s24  ;;  %v7281_v35 = vsub.s32 4, %v4881_v12  ;;  %v110_v12 = vmul.f32 %v4918_v24, %v5117_v51 }
  0xe8   :  { %603 = vrot.lane.b32.xlu0 %v579_v42, %s4742_s23  ;;  %853 = vperm.xlu1 %4674, %v845_v40  }
  0xec   :  { %696 = vrot.lane.b32.xlu0 %v671_v43, %s4743_s24  ;;  %706 = vrot.lane.b32.xlu1 %v676_v44, %s4743_s24  ;;  %v129_v43 = vmul.f32 %v4926_v27, %v5173_v30 }
  0xed   :  { %4676 = vset.pattern.permute.xlu1 %v7279_v1 }
  0xf0   :  { %700 = vrot.lane.b32.xlu0 %v673_v47, %s4743_s24  ;;  %698 = vrot.lane.b32.xlu1 %v672_v48, %s4743_s24  ;;  %v226_v48 = vmul.f32 %v4930_v28, %v5173_v30 }
  0xf4   :  { %801 = vrot.lane.b32.xlu0 %v769_v52, %s4744_s27  ;;  %799 = vrot.lane.b32.xlu1 %v768_v53, %s4744_s27 }
  0xf6   :  { %v5128_v56 = vpop.permute.xlu0 %164  ;;  %v5130_v57 = vpop.permute.xlu1 %162 }
  0xf8   :  { %848 = vperm.xlu0 %4673, %v844_v54   ;;  %803 = vrot.lane.b32.xlu1 %v770_v58, %s4744_s27 }
  0xfa   :  { %v5135_v59 = vpop.permute.xlu1 %166  ;;  %v5137_v61 = vpop.permute.xlu0 %160 }
  0xfb   :  { %7318 = vst [vmem:[#allocation17_spill] sm:$0xff] %v5135_v59  ;;  %v180_v14 = vsel %vm172_vm0, %v5128_v56, %v5135_v59 }
  0xfc   :  { %797 = vrot.lane.b32.xlu0 %v767_v62, %s4744_s27  ;;  %694 = vrot.lane.b32.xlu1 %v670_v63, %s4743_s24  ;;  %v317_v63 = vmul.f32 %v4958_v38, %v5173_v30 }
  0xfd   :  { %4675 = vset.pattern.permute.xlu0 %v7279_v1 }
  0xfe   :  { %v5146_v0 = vpop.permute.xlu1 %150  ;;  %v5148_v3 = vpop.permute.xlu0 %152 }
 0x100   :  { %789 = vrot.lane.b32.xlu0 %v763_v4, %s4744_s27  ;;  %787 = vrot.lane.b32.xlu1 %v762_v7, %s4744_s27 }
 0x102   :  { %v5156_v8 = vpop.permute.xlu1 %154  ;;  %v5158_v10 = vpop.permute.xlu0 %253 }
 0x103   :  { %7319 = vst [vmem:[#allocation18_spill] sm:$0xff] %v5156_v8 }
 0x104   :  { %885 = vperm.xlu0 %4675, %v845_v40   ;;  %791 = vrot.lane.b32.xlu1 %v764_v11, %s4744_s27  ;;  %v311_v11 = vmul.f32 %v4976_v45, %v5173_v30 }
 0x106   :  { %v5164_v22 = vpop.permute.xlu1 %255  ;;  %v5166_v26 = vpop.permute.xlu0 %257 }
 0x108   :  { %4677 = vset.pattern.permute.xlu0 %v7277_v2  ;;  %785 = vrot.lane.b32.xlu1 %v761_v29, %s4744_s27 }
 0x109   :  { %905 = vperm.xlu0 %4677, %v845_v40   ;;  %v5194_v40 = vrot.slane %v4890_v15, %v7281_v35 }
 0x10a   :  { %v5177_v31 = vpop.permute.xlu0 %251  ;;  %v5179_v33 = vpop.permute.xlu1 %148 }
 0x10b   :  { %7321 = vst [vmem:[#allocation20_spill] sm:$0xff] %v5194_v40  ;;  %v134_v52 = vmul.f32 %v4905_v20, %v5194_v40  ;;  %v128_v58 = vmul.f32 %v4926_v27, %v5194_v40  ;;  %v225_v4 = vmul.f32 %v4930_v28, %v5194_v40  ;;  %v219_v29 = vmul.f32 %v4954_v37, %v5194_v40 }
 0x10c   :  { %881 = vperm.xlu1 %4676, %v844_v54   ;;  %v765_v21 = vmul.f32 %v5104_v46, %v5194_v40 }
 0x10d   :  { %170 = vrot.lane.b32.xlu0 %v135_v34, %s4737_s1 }
 0x10e   :  { %v5185_v36 = vpop.permute.xlu0 %243  ;;  %v5187_v42 = vpop.permute.xlu1 %241 }
 0x110   :  { %4678 = vset.pattern.permute.xlu1 %v7277_v2 }
 0x111   :  { %158 = vrot.lane.b32.xlu0 %v129_v43, %s4737_s1  ;;  %901 = vperm.xlu1 %4678, %v844_v54   ;;  %v220_v54 = vmul.f32 %v4954_v37, %v5173_v30  ;;  %v408_v43 = vmul.f32 %v4990_v50, %v5173_v30 }
 0x112   :  { %v5198_v44 = vpop.permute.xlu0 %344  ;;  %v5200_v47 = vpop.permute.xlu1 %245 }
 0x113   :  { %7322 = vst [vmem:[#allocation21_spill] sm:$0xff] %v5200_v47 }
 0x115   :  { %261 = vrot.lane.b32.xlu0 %v226_v48, %s4738_s20  ;;  %168 = vrot.lane.b32.xlu1 %v134_v52, %s4737_s1  ;;  %v316_v48 = vmul.f32 %v4958_v38, %v5194_v40 }
 0x116   :  { %v5208_v15 = vpop.permute.xlu0 %348  ;;  %v5210_v53 = vpop.permute.xlu1 %346  ;;  %4679 = vset.pattern.permute.xlu1 %v7275_v9 }
 0x119   :  { %249 = vrot.lane.b32.xlu0 %v220_v54, %s4738_s20  ;;  %156 = vrot.lane.b32.xlu1 %v128_v58, %s4737_s1  ;;  %v402_v54 = vmul.f32 %v5006_v55, %v5173_v30  ;;  %v310_v58 = vmul.f32 %v4976_v45, %v5194_v40 }
 0x11a   :  { %v5219_v20 = vpop.permute.xlu0 %342  ;;  %v5221_v62 = vpop.permute.xlu1 %239 }
 0x11d   :  { %352 = vrot.lane.b32.xlu0 %v317_v63, %s4739_s21  ;;  %259 = vrot.lane.b32.xlu1 %v225_v4, %s4738_s20  ;;  %v499_v4 = vmul.f32 %v5018_v60, %v5173_v30 }
 0x11e   :  { %v5229_v7 = vpop.permute.xlu0 %334  ;;  %v5231_v27 = vpop.permute.xlu1 %332 }
 0x121   :  { %340 = vrot.lane.b32.xlu0 %v311_v11, %s4739_s21  ;;  %247 = vrot.lane.b32.xlu1 %v219_v29, %s4738_s20  ;;  %v407_v11 = vmul.f32 %v4990_v50, %v5194_v40 }
 0x122   :  { %v5239_v34 = vpop.permute.xlu0 %435  ;;  %v5241_v28 = vpop.permute.xlu1 %336 }
 0x125   :  { %443 = vrot.lane.b32.xlu0 %v408_v43, %s4740_s22  ;;  %350 = vrot.lane.b32.xlu1 %v316_v48, %s4739_s21  ;;  %v493_v43 = vmul.f32 %v5038_v5, %v5173_v30  ;;  %v401_v48 = vmul.f32 %v5006_v55, %v5194_v40 }
 0x126   :  { %v5249_v52 = vpop.permute.xlu0 %439  ;;  %v5251_v37 = vpop.permute.xlu1 %437 }
 0x129   :  { %431 = vrot.lane.b32.xlu0 %v402_v54, %s4740_s22  ;;  %338 = vrot.lane.b32.xlu1 %v310_v58, %s4739_s21  ;;  %v590_v58 = vmul.f32 %v5042_v6, %v5173_v30 }
 0x12a   :  { %v5259_v63 = vpop.permute.xlu0 %433  ;;  %v5261_v38 = vpop.permute.xlu1 %330 }
 0x12d   :  { %534 = vrot.lane.b32.xlu0 %v499_v4, %s4741_s2  ;;  %441 = vrot.lane.b32.xlu1 %v407_v11, %s4740_s22  ;;  %v498_v4 = vmul.f32 %v5018_v60, %v5194_v40 }
 0x12e   :  { %v5269_v29 = vpop.permute.xlu0 %425  ;;  %v5271_v45 = vpop.permute.xlu1 %423 }
 0x131   :  { %522 = vrot.lane.b32.xlu0 %v493_v43, %s4741_s2  ;;  %429 = vrot.lane.b32.xlu1 %v401_v48, %s4740_s22  ;;  %v584_v43 = vmul.f32 %v5060_v25, %v5173_v30  ;;  %v492_v48 = vmul.f32 %v5038_v5, %v5194_v40 }
 0x132   :  { %v5279_v54 = vpop.permute.xlu0 %526  ;;  %v5281_v50 = vpop.permute.xlu1 %427 }
 0x135   :  { %625 = vrot.lane.b32.xlu0 %v590_v58, %s4742_s23  ;;  %532 = vrot.lane.b32.xlu1 %v498_v4, %s4741_s2  ;;  %v681_v58 = vmul.f32 %v5074_v32, %v5173_v30  ;;  %v589_v4 = vmul.f32 %v5042_v6, %v5194_v40 }
 0x136   :  { %v5289_v11 = vpop.permute.xlu0 %530  ;;  %v5291_v55 = vpop.permute.xlu1 %528 }
 0x139   :  { %613 = vrot.lane.b32.xlu0 %v584_v43, %s4742_s23  ;;  %520 = vrot.lane.b32.xlu1 %v492_v48, %s4741_s2  ;;  %v675_v43 = vmul.f32 %v5095_v41, %v5173_v30  ;;  %v583_v48 = vmul.f32 %v5060_v25, %v5194_v40 }
 0x13a   :  { %v5299_v9 = vpop.permute.xlu0 %524  ;;  %v5301_v60 = vpop.permute.xlu1 %421 }
 0x13d   :  { %716 = vrot.lane.b32.xlu0 %v681_v58, %s4743_s24  ;;  %623 = vrot.lane.b32.xlu1 %v589_v4, %s4742_s23  ;;  %v772_v58 = vmul.f32 %v5090_v39, %v5173_v30  ;;  %v680_v4 = vmul.f32 %v5074_v32, %v5194_v40  ;;  %v771_v32 = vmul.f32 %v5090_v39, %v5194_v40 }
 0x13e   :  { %v5309_v2 = vpop.permute.xlu0 %516  ;;  %v5311_v5 = vpop.permute.xlu1 %514 }
 0x141   :  { %704 = vrot.lane.b32.xlu0 %v675_v43, %s4743_s24  ;;  %611 = vrot.lane.b32.xlu1 %v583_v48, %s4742_s23  ;;  %v766_v43 = vmul.f32 %v5104_v46, %v5173_v30  ;;  %v674_v48 = vmul.f32 %v5095_v41, %v5194_v40  ;;  %v111_v46 = vmul.f32 %v4899_v17, %v5117_v51 }
 0x142   :  { %v5319_v1 = vpop.permute.xlu0 %617  ;;  %v5321_v6 = vpop.permute.xlu1 %518  ;;  %v112_v40 = vmul.f32 %v4895_v16, %v5117_v51  ;;  %v174_v51 = vsel %vm172_vm0, %v5146_v0, %v5148_v3  ;;  %v175_v17 = vsel %vm172_vm0, %v5148_v3, %v5156_v8  ;;  %v173_v3 = vsel %vm172_vm0, %v5179_v33, %v5146_v0 }
 0x144   :  { %v203_v59 = vadd.f32 %v180_v14, %v112_v40  ;;  %v265_v14 = vsel %vm263_vm1, %v5187_v42, %v5185_v36 }
 0x145   :  { %807 = vrot.lane.b32.xlu0 %v772_v58, %s4744_s27  ;;  %714 = vrot.lane.b32.xlu1 %v680_v4, %s4743_s24 }
 0x146   :  { %v5329_v35 = vpop.permute.xlu0 %621  ;;  %v5331_v25 = vpop.permute.xlu1 %619 }
 0x149   :  { %795 = vrot.lane.b32.xlu0 %v766_v43, %s4744_s27  ;;  %702 = vrot.lane.b32.xlu1 %v674_v48, %s4743_s24 }
 0x14a   :  { %v5339_v18 = vpop.permute.xlu0 %615  ;;  %v5343_v58 = vpop.permute.xlu1 %512 }
 0x14b   :  { %7323 = vst [vmem:[#allocation22_spill] sm:$0xff] %v5343_v58  ;;  %v178_v58 = vsel %vm172_vm0, %v5137_v61, %v5130_v57  ;;  %v271_v61 = vsel %vm263_vm1, %v5164_v22, %v5166_v26 }
 0x14c   :  { %v294_v0 = vadd.f32 %v271_v61, %v203_v59  ;;  %v453_v59 = vsel %vm445_vm3, %v5251_v37, %v5249_v52  ;;  %v544_v61 = vsel %vm536_vm4, %v5291_v55, %v5289_v11 }
 0x14d   :  { %805 = vrot.lane.b32.xlu1 %v771_v32, %s4744_s27 }
 0x14e   :  { %v5346_v4 = vpop.permute.xlu0 %607  ;;  %v5353_v43 = vpop.permute.xlu1 %605 }
 0x151   :  { %793 = vrot.lane.b32.xlu1 %v765_v21, %s4744_s27  ;;  %v179_v21 = vsel %vm172_vm0, %v5130_v57, %v5128_v56  ;;  %v270_v57 = vsel %vm263_vm1, %v5158_v10, %v5164_v22  ;;  %v266_v22 = vsel %vm263_vm1, %v5185_v36, %v5200_v47  ;;  %v452_v36 = vsel %vm445_vm3, %v5239_v34, %v5251_v37 }
 0x152   :  { %v5351_v41 = vpop.permute.xlu0 %708  ;;  %v5357_v13 = vpop.permute.xlu1 %609  ;;  %v202_v56 = vadd.f32 %v179_v21, %v111_v46  ;;  %v201_v46 = vadd.f32 %v178_v58, %v110_v12  ;;  %v196_v21 = vadd.f32 %v174_v51, %v105_v19  ;;  %v361_v12 = vsel %vm354_vm2, %v5198_v44, %v5210_v53 }
 0x153   :  { %v360_v19 = vsel %vm354_vm2, %v5219_v20, %v5198_v44 }
 0x154   :  { %v293_v51 = vadd.f32 %v270_v57, %v202_v56  ;;  %v287_v58 = vadd.f32 %v265_v14, %v196_v21  ;;  %v543_v57 = vsel %vm536_vm4, %v5279_v54, %v5291_v55  ;;  %v635_v55 = vsel %vm627_vm5, %v5331_v25, %v5329_v35 }
 0x156   :  { %v5355_v48 = vpop.permute.xlu0 %712  ;;  %v5361_v23 = vpop.permute.xlu1 %710  ;;  %v384_v47 = vadd.f32 %v361_v12, %v293_v51  ;;  %v447_v51 = vsel %vm445_vm3, %v5271_v45, %v5269_v29 }
 0x158   :  { %v475_v37 = vadd.f32 %v452_v36, %v384_v47 }
 0x15a   :  { %v5359_v39 = vpop.permute.xlu0 %603  ;;  %v566_v47 = vadd.f32 %v543_v57, %v475_v37  ;;  %v630_v57 = vsel %vm627_vm5, %v5346_v4, %v5357_v13 }
 0x15b   :  { %7324 = vst [vmem:[#allocation23_spill] sm:$0xff] %v5359_v39  ;;  %v106_v39 = vmul.f32 %v4895_v16, %v5115_v49 }
 0x15d   :  { %v197_v8 = vadd.f32 %v175_v17, %v106_v39  ;;  %v451_v39 = vsel %vm445_vm3, %v5259_v63, %v5239_v34  ;;  %v356_v34 = vsel %vm354_vm2, %v5231_v27, %v5229_v7 }
 0x15e   :  { %v5363_v32 = vpop.permute.xlu0 %696 }
 0x15f   :  { %7325 = vst [vmem:[#allocation24_spill] sm:$0xff] %v5363_v32  ;;  %v288_v17 = vadd.f32 %v266_v22, %v197_v8  ;;  %v542_v8 = vsel %vm536_vm4, %v5299_v9, %v5279_v54  ;;  %v633_v9 = vsel %vm627_vm5, %v5339_v18, %v5319_v1  ;;  %v725_v22 = vsel %vm718_vm6, %v5351_v41, %v5361_v23 }
 0x162   :  { %v5394_v16 = vpop.permute.xlu0 %700 }
 0x163   :  { %v5365_v30 = vpop.permute.xlu1 %853 }
 0x164   :  { %7326 = vst [vmem:[#allocation25_spill] sm:$0xff] %v5365_v30  ;;  %v104_v30 = vmul.f32 %v4918_v24, %v5115_v49  ;;  %v269_v24 = vsel %vm263_vm1, %v5177_v31, %v5158_v10  ;;  %v362_v31 = vsel %vm354_vm2, %v5210_v53, %v5208_v15 }
 0x165   :  { %v292_v10 = vadd.f32 %v269_v24, %v201_v46  ;;  %v385_v53 = vadd.f32 %v362_v31, %v294_v0  ;;  %v634_v24 = vsel %vm627_vm5, %v5319_v1, %v5331_v25  ;;  %v726_v25 = vsel %vm718_vm6, %v5361_v23, %v5355_v48 }
 0x166   :  { %v195_v33 = vadd.f32 %v173_v3, %v104_v30  ;;  %v802_v20 = vpop.permute.xlu0 %801  ;;  %v264_v30 = vsel %vm263_vm1, %v5221_v62, %v5187_v42  ;;  %v357_v42 = vsel %vm354_vm2, %v5229_v7, %v5241_v28  ;;  %v378_v7 = vadd.f32 %v356_v34, %v287_v58 }
 0x167   :  { %v707_v32 = vpop.permute.xlu1 %706  ;;  %v383_v44 = vadd.f32 %v360_v19, %v292_v10  ;;  %v476_v62 = vadd.f32 %v453_v59, %v385_v53  ;;  %v379_v18 = vadd.f32 %v357_v42, %v288_v17  ;;  %v657_v12 = vadd.f32 %v634_v24, %v566_v47 }
 0x168   :  { %v286_v54 = vadd.f32 %v264_v30, %v195_v33  ;;  %v724_v1 = vsel %vm718_vm6, %v707_v32, %v5351_v41  ;;  %v448_v0 = vsel %vm445_vm3, %v5269_v29, %v5281_v50  ;;  %v355_v41 = vsel %vm354_vm2, %v5261_v38, %v5231_v27 }
 0x169   :  { %v474_v63 = vadd.f32 %v451_v39, %v383_v44  ;;  %v567_v14 = vadd.f32 %v544_v61, %v476_v62  ;;  %v748_v32 = vadd.f32 %v725_v22, %v657_v12  ;;  %v538_v39 = vsel %vm536_vm4, %v5311_v5, %v5309_v2  ;;  %v7328_v62 = vld [vmem:[#allocation22_spill] sm:$0xff] }
 0x16a   :  { %v539_v29 = vsel %vm536_vm4, %v5309_v2, %v5321_v6  ;;  %v469_v59 = vadd.f32 %v447_v51, %v378_v7  ;;  %v470_v27 = vadd.f32 %v448_v0, %v379_v18  ;;  %v629_v30 = vsel %vm627_vm5, %v5353_v43, %v5346_v4 }
 0x16b   :  { %v5411_v40 = vpop.permute.xlu1 %698  ;;  %v565_v46 = vadd.f32 %v542_v8, %v474_v63  ;;  %v658_v10 = vadd.f32 %v635_v55, %v567_v14  ;;  %v377_v8 = vadd.f32 %v355_v41, %v286_v54  ;;  %v7327_v37 = vld [vmem:[#allocation25_spill] sm:$0xff]  ;;  %v7330_v55 = vld [vmem:[#allocation23_spill] sm:$0xff] }
 0x16c   :  { %v560_v34 = vadd.f32 %v538_v39, %v469_v59  ;;  %v721_v4 = vsel %vm718_vm6, %v5411_v40, %v5394_v16  ;;  %v628_v7 = vsel %vm627_vm5, %v7330_v55, %v5353_v43 }
 0x16d   :  { %v656_v19 = vadd.f32 %v633_v9, %v565_v46  ;;  %v749_v17 = vadd.f32 %v726_v25, %v658_v10  ;;  %v5524_v25 = vld [vmem:[%s7332_s3] sm:$0x3f]  ;;  %s4752_s3 = smov 42  }
 0x16e   :  { %v651_v54 = vadd.f32 %v629_v30, %v560_v34 }
 0x16f   :  { %v800_v56 = vpop.permute.xlu1 %799  ;;  %v747_v33 = vadd.f32 %v724_v1, %v656_v19 }
 0x170   :  { %v816_v31 = vsel %vm809_vm7, %v800_v56, %v802_v20 }
 0x171   :  { %v839_v38 = vadd.f32 %v816_v31, %v748_v32 }
 0x173   :  { %v5461_v21 = vpop.permute.xlu0 %848  ;;  %v5463_v3 = vpop.permute.xlu1 %803  ;;  %v863_v46 = vadd.f32 %v7327_v37, %v839_v38 }
 0x174   :  { %v817_v23 = vsel %vm809_vm7, %v802_v20, %v5463_v3  ;;  %v446_v20 = vsel %vm445_vm3, %v5301_v60, %v5271_v45  ;;  %v537_v45 = vsel %vm536_vm4, %v7328_v62, %v5311_v5  ;;  %v7329_v60 = vld [vmem:[#allocation24_spill] sm:$0xff] }
 0x175   :  { %v840_v2 = vadd.f32 %v817_v23, %v749_v17  ;;  %v720_v24 = vsel %vm718_vm6, %v7329_v60, %v5411_v40  ;;  %v468_v9 = vadd.f32 %v446_v20, %v377_v8  ;;  %v875_v10 = vmax.f32 %v863_v46, 0.0 }
 0x176   :  { %v742_v1 = vadd.f32 %v720_v24, %v651_v54 }
 0x177   :  { %v798_v58 = vpop.permute.xlu0 %797  ;;  %v695_v36 = vpop.permute.xlu1 %694  ;;  %v864_v14 = vadd.f32 %v7327_v37, %v840_v2  ;;  %v559_v22 = vadd.f32 %v537_v45, %v468_v9 }
 0x178   :  { %v815_v44 = vsel %vm809_vm7, %v798_v58, %v800_v56  ;;  %v561_v56 = vadd.f32 %v539_v29, %v470_v27  ;;  %v719_v43 = vsel %vm718_vm6, %v695_v36, %v7329_v60  ;;  %v7334_v58 = vld [vmem:[#allocation13_spill] sm:$0xff] }
 0x179   :  { %v838_v53 = vadd.f32 %v815_v44, %v747_v33  ;;  %v650_v0 = vadd.f32 %v628_v7, %v559_v22  ;;  %v876_v32 = vmax.f32 %v864_v14, 0.0  ;;  %v7333_v33 = vld [vmem:[#allocation14_spill] sm:$0xff]  ;;  %v929_v39 = vrot.slane %v5524_v25, %v7334_v58 }
 0x17a   :  { %v652_v47 = vadd.f32 %v630_v57, %v561_v56  ;;  %v925_v23 = vrot.slane %v5524_v25, %v7333_v33  ;;  %v7344_v58 = vld [vmem:[#allocation18_spill] sm:$0xff] }
 0x17b   :  { %v862_v63 = vadd.f32 %v7327_v37, %v838_v53  ;;  %v790_v61 = vpop.permute.xlu0 %789  ;;  %v788_v42 = vpop.permute.xlu1 %787  ;;  %v741_v29 = vadd.f32 %v719_v43, %v650_v0  ;;  %v7335_v53 = vld [vmem:[#allocation12_spill] sm:$0xff] }
 0x17c   :  { %v811_v5 = vsel %vm809_vm7, %v788_v42, %v790_v61  ;;  %v743_v18 = vadd.f32 %v721_v4, %v652_v47  ;;  %v7336_v20 = vsub.s32 2, %v7335_v53 }
 0x17d   :  { %v874_v12 = vmax.f32 %v862_v63, 0.0  ;;  %v833_v31 = vadd.f32 %v811_v5, %v742_v1 }
 0x17e   :  { %v933_v30 = vrot.slane %v5524_v25, %v7336_v20 }
 0x17f   :  { %v5517_v19 = vpop.permute.xlu0 %885  ;;  %v5519_v40 = vpop.permute.xlu1 %791  ;;  %v857_v2 = vadd.f32 %v5461_v21, %v833_v31 }
 0x180   :  { %7331 = vst [vmem:[#allocation25_spill] sm:$0xff] %v5519_v40  ;;  %v812_v51 = vsel %vm809_vm7, %v790_v61, %v5519_v40  ;;  %v894_v17 = vmul.f32 %v5517_v19, %v874_v12  ;;  %v895_v44 = vmul.f32 %v5517_v19, %v875_v10  ;;  %v896_v27 = vmul.f32 %v5517_v19, %v876_v32 }
 0x181   :  { %v834_v41 = vadd.f32 %v812_v51, %v743_v18  ;;  %v869_v9 = vmax.f32 %v857_v2, 0.0 }
 0x183   :  { %v858_v36 = vadd.f32 %v5461_v21, %v834_v41  ;;  %v786_v59 = vpop.permute.xlu1 %785 }
 0x184   :  { %v810_v38 = vsel %vm809_vm7, %v786_v59, %v788_v42  ;;  %v5542_v57 = vpop.permute.xlu0 %905 }
 0x185   :  { %v832_v8 = vadd.f32 %v810_v38, %v741_v29  ;;  %v914_v34 = vadd.f32 %v5542_v57, %v894_v17  ;;  %v915_v56 = vadd.f32 %v5542_v57, %v895_v44  ;;  %v916_v63 = vadd.f32 %v5542_v57, %v896_v27 }
 0x186   :  { %v870_v61 = vmax.f32 %v858_v36, 0.0 }
 0x187   :  { %v856_v62 = vadd.f32 %v5461_v21, %v832_v8  ;;  %v5549_v45 = vmul.f32 %v925_v23, %v914_v34  ;;  %v5551_v42 = vmul.f32 %v929_v39, %v915_v56  ;;  %v5553_v60 = vpop.permute.xlu1 %881  ;;  %v5555_v24 = vmul.f32 %v933_v30, %v916_v63  ;;  %v7339_v8 = vld [vmem:[#allocation16_spill] sm:$0xff]  ;;  %v7340_v34 = vld [vmem:[#allocation19_spill] sm:$0xff] }
 0x188   :  { %7337 = vst [vmem:[#allocation22_spill] sm:$0xff] %v5553_v60  ;;  %v5557_v4 = vpop.permute.xlu0 %170  ;;  %v889_v46 = vmul.f32 %v5553_v60, %v869_v9  ;;  %v890_v55 = vmul.f32 %v5553_v60, %v870_v61  ;;  %v115_v56 = vmul.f32 %v7340_v34, %v7339_v8  ;;  %v109_v61 = vmul.f32 %v7340_v34, %v5115_v49 }
 0x189   :  { %v868_v54 = vmax.f32 %v856_v62, 0.0  ;;  %1351 = vrot.lane.b32.xlu1 %v5551_v42, %s4743_s24  ;;  %973 = vst [vmem:[#allocation2 + $0x40] sm:$0xff] %v5555_v24  ;;  %1353 = vrot.lane.b32.xlu0 %v5555_v24, %s4743_s24 }
 0x18a   :  { %v206_v63 = vadd.f32 %v5557_v4, %v115_v56 }
 0x18b   :  { %v888_v47 = vmul.f32 %v5553_v60, %v868_v54 }
 0x18c   :  { %v5567_v7 = vpop.permute.xlu0 %158  ;;  %v5569_v14 = vpop.permute.xlu1 %901 }
 0x18d   :  { %7338 = vst [vmem:[#allocation24_spill] sm:$0xff] %v5569_v14  ;;  %v908_v5 = vadd.f32 %v5569_v14, %v888_v47  ;;  %v909_v22 = vadd.f32 %v5569_v14, %v889_v46  ;;  %v910_v1 = vadd.f32 %v5569_v14, %v890_v55  ;;  %1349 = vrot.lane.b32.xlu1 %v5549_v45, %s4743_s24  ;;  %v7341_v47 = vld [vmem:[#allocation15_spill] sm:$0xff]  ;;  %v7342_v55 = vld [vmem:[#allocation17_spill] sm:$0xff]  ;;  %v7345_v14 = vsub.s32 5, %v7335_v53 }
 0x18e   :  { %v113_v46 = vmul.f32 %v7341_v47, %v7339_v8  ;;  %v107_v56 = vmul.f32 %v7341_v47, %v5115_v49 }
 0x18f   :  { %v5576_v18 = vmul.f32 %v925_v23, %v908_v5  ;;  %v5578_v12 = vmul.f32 %v929_v39, %v909_v22  ;;  %v5580_v43 = vmul.f32 %v933_v30, %v910_v1  ;;  %v200_v22 = vadd.f32 %v5567_v7, %v109_v61  ;;  %v7343_v1 = vld [vmem:[#allocation20_spill] sm:$0xff] }
 0x190   :  { %v262_v51 = vpop.permute.xlu0 %261  ;;  %v169_v0 = vpop.permute.xlu1 %168  ;;  %v114_v34 = vmul.f32 %v7343_v1, %v7339_v8  ;;  %v5673_v61 = vrot.slane %v5524_v25, %v7345_v14 }
 0x191   :  { %966 = vst [vmem:[#allocation2 + $0x10] sm:$0xff] %v5580_v43  ;;  %1339 = vrot.lane.b32.xlu0 %v5578_v12, %s4743_s24  ;;  %1341 = vrot.lane.b32.xlu1 %v5580_v43, %s4743_s24  ;;  %v297_v54 = vadd.f32 %v262_v51, %v206_v63  ;;  %v181_v5 = vsel %vm172_vm0, %v7342_v55, %v169_v0 }
 0x192   :  { %v108_v63 = vmul.f32 %v7343_v1, %v5115_v49  ;;  %v182_v55 = vsel %vm172_vm0, %v169_v0, %v5557_v4  ;;  %v204_v8 = vadd.f32 %v181_v5, %v113_v46 }
 0x194   :  { %v5587_v10 = vpop.permute.xlu0 %249  ;;  %v157_v31 = vpop.permute.xlu1 %156 }
 0x195   :  { %1293 = vrot.lane.b32.xlu1 %v5551_v42, %s4742_s23  ;;  %1337 = vrot.lane.b32.xlu0 %v5576_v18, %s4743_s24  ;;  %v176_v33 = vsel %vm172_vm0, %v7344_v58, %v157_v31  ;;  %v291_v60 = vadd.f32 %v5587_v10, %v200_v22  ;;  %v177_v47 = vsel %vm172_vm0, %v157_v31, %v5567_v7 }
 0x196   :  { %v205_v7 = vadd.f32 %v182_v55, %v114_v34  ;;  %v198_v31 = vadd.f32 %v176_v33, %v107_v56  ;;  %v199_v22 = vadd.f32 %v177_v47, %v108_v63 }
 0x198   :  { %v5593_v41 = vpop.permute.xlu0 %352  ;;  %v260_v32 = vpop.permute.xlu1 %259 }
 0x199   :  { %1291 = vrot.lane.b32.xlu1 %v5549_v45, %s4742_s23  ;;  %1295 = vrot.lane.b32.xlu0 %v5555_v24, %s4742_s23  ;;  %v388_v40 = vadd.f32 %v5593_v41, %v297_v54  ;;  %v272_v49 = vsel %vm263_vm1, %v5166_v26, %v260_v32  ;;  %v273_v58 = vsel %vm263_vm1, %v260_v32, %v262_v51  ;;  %v7346_v54 = vld [vmem:[#allocation21_spill] sm:$0xff] }
 0x19a   :  { %v296_v34 = vadd.f32 %v273_v58, %v205_v7 }
 0x19c   :  { %v5599_v23 = vpop.permute.xlu0 %340  ;;  %v248_v39 = vpop.permute.xlu1 %247 }
 0x19d   :  { %1283 = vrot.lane.b32.xlu1 %v5580_v43, %s4742_s23  ;;  %1281 = vrot.lane.b32.xlu0 %v5578_v12, %s4742_s23  ;;  %v267_v1 = vsel %vm263_vm1, %v7346_v54, %v248_v39  ;;  %v382_v26 = vadd.f32 %v5599_v23, %v291_v60  ;;  %v268_v46 = vsel %vm263_vm1, %v248_v39, %v5587_v10 }
 0x19e   :  { %v295_v54 = vadd.f32 %v272_v49, %v204_v8  ;;  %v289_v33 = vadd.f32 %v267_v1, %v198_v31 }
 0x1a0   :  { %v5605_v29 = vpop.permute.xlu0 %443  ;;  %v351_v17 = vpop.permute.xlu1 %350 }
 0x1a1   :  { %1235 = vrot.lane.b32.xlu1 %v5551_v42, %s4741_s2  ;;  %1279 = vrot.lane.b32.xlu0 %v5576_v18, %s4742_s23  ;;  %v479_v14 = vadd.f32 %v5605_v29, %v388_v40  ;;  %v363_v51 = vsel %vm354_vm2, %v5208_v15, %v351_v17  ;;  %v364_v32 = vsel %vm354_vm2, %v351_v17, %v5593_v41 }
 0x1a2   :  { %v386_v41 = vadd.f32 %v363_v51, %v295_v54  ;;  %v387_v39 = vadd.f32 %v364_v32, %v296_v34 }
 0x1a4   :  { %v5611_v44 = vpop.permute.xlu0 %431  ;;  %v339_v36 = vpop.permute.xlu1 %338 }
 0x1a5   :  { %1233 = vrot.lane.b32.xlu1 %v5549_v45, %s4741_s2  ;;  %1237 = vrot.lane.b32.xlu0 %v5555_v24, %s4741_s2  ;;  %v358_v40 = vsel %vm354_vm2, %v5241_v28, %v339_v36  ;;  %v473_v55 = vadd.f32 %v5611_v44, %v382_v26  ;;  %v359_v10 = vsel %vm354_vm2, %v339_v36, %v5599_v23 }
 0x1a6   :  { %v290_v28 = vadd.f32 %v268_v46, %v199_v22  ;;  %v380_v17 = vadd.f32 %v358_v40, %v289_v33 }
 0x1a8   :  { %v5617_v59 = vpop.permute.xlu0 %534  ;;  %v5619_v27 = vpop.permute.xlu1 %441  ;;  %v381_v47 = vadd.f32 %v359_v10, %v290_v28 }
 0x1a9   :  { %1225 = vrot.lane.b32.xlu1 %v5580_v43, %s4741_s2  ;;  %1223 = vrot.lane.b32.xlu0 %v5578_v12, %s4741_s2  ;;  %v570_v5 = vadd.f32 %v5617_v59, %v479_v14  ;;  %v454_v63 = vsel %vm445_vm3, %v5249_v52, %v5619_v27  ;;  %v455_v23 = vsel %vm445_vm3, %v5619_v27, %v5605_v29 }
 0x1ac   :  { %v5625_v38 = vpop.permute.xlu0 %522  ;;  %v5627_v20 = vpop.permute.xlu1 %429 }
 0x1ad   :  { %1177 = vrot.lane.b32.xlu1 %v5551_v42, %s4740_s22  ;;  %1221 = vrot.lane.b32.xlu0 %v5576_v18, %s4741_s2  ;;  %v564_v36 = vadd.f32 %v5625_v38, %v473_v55  ;;  %v449_v49 = vsel %vm445_vm3, %v5281_v50, %v5627_v20  ;;  %v450_v58 = vsel %vm445_vm3, %v5627_v20, %v5611_v44 }
 0x1ae   :  { %v477_v50 = vadd.f32 %v454_v63, %v386_v41  ;;  %v478_v44 = vadd.f32 %v455_v23, %v387_v39  ;;  %v471_v46 = vadd.f32 %v449_v49, %v380_v17  ;;  %v472_v51 = vadd.f32 %v450_v58, %v381_v47 }
 0x1b0   :  { %v5633_v30 = vpop.permute.xlu0 %625  ;;  %v5635_v2 = vpop.permute.xlu1 %532 }
 0x1b1   :  { %1175 = vrot.lane.b32.xlu1 %v5549_v45, %s4740_s22  ;;  %1179 = vrot.lane.b32.xlu0 %v5555_v24, %s4740_s22  ;;  %v661_v15 = vadd.f32 %v5633_v30, %v570_v5  ;;  %v545_v52 = vsel %vm536_vm4, %v5289_v11, %v5635_v2  ;;  %v546_v29 = vsel %vm536_vm4, %v5635_v2, %v5617_v59 }
 0x1b2   :  { %v568_v32 = vadd.f32 %v545_v52, %v477_v50  ;;  %v569_v40 = vadd.f32 %v546_v29, %v478_v44 }
 0x1b4   :  { %v5646_v62 = vpop.permute.xlu0 %613  ;;  %v5648_v9 = vpop.permute.xlu1 %520 }
 0x1b5   :  { %1167 = vrot.lane.b32.xlu1 %v5580_v43, %s4740_s22  ;;  %1165 = vrot.lane.b32.xlu0 %v5578_v12, %s4740_s22  ;;  %v655_v27 = vadd.f32 %v5646_v62, %v564_v36  ;;  %v540_v11 = vsel %vm536_vm4, %v5321_v6, %v5648_v9  ;;  %v541_v20 = vsel %vm536_vm4, %v5648_v9, %v5625_v38 }
 0x1b8   :  { %v5680_v4 = vpop.permute.xlu0 %716  ;;  %v624_v0 = vpop.permute.xlu1 %623 }
 0x1b9   :  { %1119 = vrot.lane.b32.xlu1 %v5551_v42, %s4739_s21  ;;  %1163 = vrot.lane.b32.xlu0 %v5576_v18, %s4740_s22  ;;  %v752_v8 = vadd.f32 %v5680_v4, %v661_v15  ;;  %v636_v59 = vsel %vm627_vm5, %v5329_v35, %v624_v0  ;;  %v637_v2 = vsel %vm627_vm5, %v624_v0, %v5633_v30 }
 0x1ba   :  { %v562_v30 = vadd.f32 %v540_v11, %v471_v46  ;;  %v563_v0 = vadd.f32 %v541_v20, %v472_v51  ;;  %v659_v54 = vadd.f32 %v636_v59, %v568_v32  ;;  %v660_v34 = vadd.f32 %v637_v2, %v569_v40 }
 0x1bb   :  { %v7350_v2 = vsub.s32 3, %v7335_v53 }
 0x1bc   :  { %v705_v56 = vpop.permute.xlu0 %704  ;;  %v612_v60 = vpop.permute.xlu1 %611 }
 0x1bd   :  { %1117 = vrot.lane.b32.xlu1 %v5549_v45, %s4739_s21  ;;  %1121 = vrot.lane.b32.xlu0 %v5555_v24, %s4739_s21  ;;  %v746_v31 = vadd.f32 %v705_v56, %v655_v27  ;;  %v631_v33 = vsel %vm627_vm5, %v5357_v13, %v612_v60  ;;  %v7349_v27 = vld [vmem:[#allocation25_spill] sm:$0xff] }
 0x1c0   :  { %v808_v1 = vpop.permute.xlu0 %807  ;;  %v715_v14 = vpop.permute.xlu1 %714 }
 0x1c1   :  { %v843_v7 = vadd.f32 %v808_v1, %v752_v8  ;;  %1109 = vrot.lane.b32.xlu1 %v5580_v43, %s4739_s21  ;;  %1107 = vrot.lane.b32.xlu0 %v5578_v12, %s4739_s21  ;;  %v727_v38 = vsel %vm718_vm6, %v5355_v48, %v715_v14  ;;  %v728_v9 = vsel %vm718_vm6, %v715_v14, %v5680_v4  ;;  %v7347_v8 = vld [vmem:[#allocation22_spill] sm:$0xff]  ;;  %v7348_v14 = vld [vmem:[#allocation24_spill] sm:$0xff] }
 0x1c2   :  { %v632_v48 = vsel %vm627_vm5, %v612_v60, %v5646_v62  ;;  %v750_v10 = vadd.f32 %v727_v38, %v659_v54  ;;  %v751_v15 = vadd.f32 %v728_v9, %v660_v34  ;;  %v653_v60 = vadd.f32 %v631_v33, %v562_v30 }
 0x1c3   :  { %v867_v26 = vadd.f32 %v7327_v37, %v843_v7  ;;  %v654_v23 = vadd.f32 %v632_v48, %v563_v0  ;;  %v5849_v0 = vld [vmem:[%s7261_s5 + $0x8] sm:$0xff] }
 0x1c4   :  { %v796_v5 = vpop.permute.xlu0 %795  ;;  %v703_v6 = vpop.permute.xlu1 %702  ;;  %4440 = vmatprep.mubr.msk.f32.mxu0 %vm1593_vm9, %v5849_v0  ;;  %4444 = vmatprep.mubr.msk.f32.mxu1 %vm1593_vm9, %v5849_v0 }
 0x1c5   :  { %v879_v22 = vmax.f32 %v867_v26, 0.0  ;;  %v837_v35 = vadd.f32 %v796_v5, %v746_v31  ;;  %1061 = vrot.lane.b32.xlu1 %v5551_v42, %s4738_s20  ;;  %1105 = vrot.lane.b32.xlu0 %v5576_v18, %s4739_s21  ;;  %v722_v28 = vsel %vm718_vm6, %v5394_v16, %v703_v6  ;;  %v723_v41 = vsel %vm718_vm6, %v703_v6, %v705_v56 }
 0x1c6   :  { %v744_v49 = vadd.f32 %v722_v28, %v653_v60  ;;  %v745_v58 = vadd.f32 %v723_v41, %v654_v23  ;;  %v937_v31 = vrot.slane %v5524_v25, %v7350_v2  ;;  %v7351_v26 = vsub.s32 4, %v7335_v53 }
 0x1c7   :  { %v899_v55 = vmul.f32 %v5517_v19, %v879_v22  ;;  %v861_v4 = vadd.f32 %v5461_v21, %v837_v35 }
 0x1c8   :  { %v806_v39 = vpop.permute.xlu1 %805  ;;  %v941_v46 = vrot.slane %v5524_v25, %v7351_v26 }
 0x1c9   :  { %v919_v17 = vadd.f32 %v5542_v57, %v899_v55  ;;  %v873_v63 = vmax.f32 %v861_v4, 0.0  ;;  %v818_v13 = vsel %vm809_vm7, %v5463_v3, %v806_v39  ;;  %v819_v62 = vsel %vm809_vm7, %v806_v39, %v808_v1  ;;  %1059 = vrot.lane.b32.xlu1 %v5549_v45, %s4738_s20  ;;  %1063 = vrot.lane.b32.xlu0 %v5555_v24, %s4738_s20 }
 0x1ca   :  { %v841_v16 = vadd.f32 %v818_v13, %v750_v10  ;;  %v842_v36 = vadd.f32 %v819_v62, %v751_v15 }
 0x1cb   :  { %v5770_v56 = vmul.f32 %v5673_v61, %v919_v17  ;;  %v893_v47 = vmul.f32 %v7347_v8, %v873_v63 }
 0x1cc   :  { %v865_v3 = vadd.f32 %v7327_v37, %v841_v16  ;;  %v866_v52 = vadd.f32 %v7327_v37, %v842_v36  ;;  %v794_v1 = vpop.permute.xlu1 %793 }
 0x1cd   :  { %v913_v29 = vadd.f32 %v7348_v14, %v893_v47  ;;  %v813_v7 = vsel %vm809_vm7, %v7349_v27, %v794_v1  ;;  %v814_v50 = vsel %vm809_vm7, %v794_v1, %v796_v5  ;;  %1051 = vrot.lane.b32.xlu1 %v5580_v43, %s4738_s20  ;;  %1049 = vrot.lane.b32.xlu0 %v5578_v12, %s4738_s20 }
 0x1ce   :  { %976 = vst.msk [vmem:[#allocation2 + $0x58] sm:$0xff] %vm969_vm8, %v5770_v56  ;;  %v877_v44 = vmax.f32 %v865_v3, 0.0  ;;  %v878_v11 = vmax.f32 %v866_v52, 0.0  ;;  %v835_v37 = vadd.f32 %v813_v7, %v744_v49  ;;  %v836_v20 = vadd.f32 %v814_v50, %v745_v58 }
 0x1cf   :  { %v5786_v59 = vmul.f32 %v5673_v61, %v913_v29 }
 0x1d0   :  { %v897_v51 = vmul.f32 %v5517_v19, %v877_v44  ;;  %v898_v32 = vmul.f32 %v5517_v19, %v878_v11  ;;  %v859_v40 = vadd.f32 %v5461_v21, %v835_v37  ;;  %v860_v5 = vadd.f32 %v5461_v21, %v836_v20 }
 0x1d1   :  { %1003 = vrot.lane.b32.xlu1 %v5551_v42, %s4737_s1  ;;  %1047 = vrot.lane.b32.xlu0 %v5576_v18, %s4738_s20  ;;  %970 = vst.msk [vmem:[#allocation2 + $0x28] sm:$0xff] %vm969_vm8, %v5786_v59 }
 0x1d2   :  { %v917_v53 = vadd.f32 %v5542_v57, %v897_v51  ;;  %v918_v25 = vadd.f32 %v5542_v57, %v898_v32  ;;  %v871_v61 = vmax.f32 %v859_v40, 0.0  ;;  %v872_v6 = vmax.f32 %v860_v5, 0.0 }
 0x1d4   :  { %v5806_v19 = vmul.f32 %v937_v31, %v917_v53  ;;  %v5808_v22 = vmul.f32 %v941_v46, %v918_v25  ;;  %v891_v21 = vmul.f32 %v7347_v8, %v871_v61  ;;  %v892_v38 = vmul.f32 %v7347_v8, %v872_v6 }
 0x1d5   :  { %1001 = vrot.lane.b32.xlu1 %v5549_v45, %s4737_s1  ;;  %1005 = vrot.lane.b32.xlu0 %v5555_v24, %s4737_s1 }
 0x1d6   :  { %974 = vst [vmem:[#allocation2 + $0x48] sm:$0xff] %v5806_v19  ;;  %975 = vst [vmem:[#allocation2 + $0x50] sm:$0xff] %v5808_v22  ;;  %v911_v57 = vadd.f32 %v7348_v14, %v891_v21  ;;  %v912_v9 = vadd.f32 %v7348_v14, %v892_v38 }
 0x1d8   :  { %v5820_v35 = vmul.f32 %v937_v31, %v911_v57  ;;  %v5822_v30 = vmul.f32 %v941_v46, %v912_v9 }
 0x1d9   :  { %993 = vrot.lane.b32.xlu1 %v5580_v43, %s4737_s1  ;;  %991 = vrot.lane.b32.xlu0 %v5578_v12, %s4737_s1 }
 0x1da   :  { %967 = vst [vmem:[#allocation2 + $0x18] sm:$0xff] %v5820_v35  ;;  %968 = vst [vmem:[#allocation2 + $0x20] sm:$0xff] %v5822_v30 }
 0x1dd   :  { %1355 = vrot.lane.b32.xlu1 %v5806_v19, %s4743_s24  ;;  %989 = vrot.lane.b32.xlu0 %v5576_v18, %s4737_s1 }
 0x1e1   :  { %1343 = vrot.lane.b32.xlu1 %v5820_v35, %s4743_s24  ;;  %1357 = vrot.lane.b32.xlu0 %v5808_v22, %s4743_s24 }
 0x1e5   :  { %1409 = vrot.lane.b32.xlu1 %v5551_v42, %s4744_s27  ;;  %1345 = vrot.lane.b32.xlu0 %v5822_v30, %s4743_s24 }
 0x1e9   :  { %1407 = vrot.lane.b32.xlu1 %v5549_v45, %s4744_s27  ;;  %1411 = vrot.lane.b32.xlu0 %v5555_v24, %s4744_s27 }
 0x1ed   :  { %1299 = vrot.lane.b32.xlu1 %v5808_v22, %s4742_s23  ;;  %1297 = vrot.lane.b32.xlu0 %v5806_v19, %s4742_s23 }
 0x1f1   :  { %1399 = vrot.lane.b32.xlu1 %v5580_v43, %s4744_s27  ;;  %1397 = vrot.lane.b32.xlu0 %v5578_v12, %s4744_s27 }
 0x1f5   :  { %1285 = vrot.lane.b32.xlu1 %v5820_v35, %s4742_s23  ;;  %1395 = vrot.lane.b32.xlu0 %v5576_v18, %s4744_s27 }
 0x1f9   :  { %1359 = vrot.lane.b32.xlu1 %v5770_v56, %s4743_s24  ;;  %1287 = vrot.lane.b32.xlu0 %v5822_v30, %s4742_s23 }
 0x1fb   :  { %v1352_v24 = vpop.permute.xlu1 %1351  ;;  %v5871_v54 = vpop.permute.xlu0 %1353 }
 0x1fc   :  { %v1367_v43 = vsel %vm718_vm6, %v1352_v24, %v5871_v54 }
 0x1fd   :  { %1241 = vrot.lane.b32.xlu1 %v5808_v22, %s4741_s2  ;;  %1239 = vrot.lane.b32.xlu0 %v5806_v19, %s4741_s2 }
 0x1fe   :  { %1606 = vmatprep.subr.mxu0 %v1367_v43 }
 0x1ff   :  { %v1350_v34 = vpop.permute.xlu1 %1349 }
 0x200   :  { %v1366_v33 = vsel %vm718_vm6, %v1350_v34, %v1352_v24 }
 0x201   :  { %1227 = vrot.lane.b32.xlu1 %v5820_v35, %s4741_s2  ;;  %1347 = vrot.lane.b32.xlu0 %v5786_v59, %s4743_s24  ;;  %s4748_s24 = smov 20  }
 0x202   :  { %1607 = vmatpush1.msra.mxu0 %v1366_v33 }
 0x203   :  { %v1340_v48 = vpop.permute.xlu0 %1339  ;;  %v5884_v55 = vpop.permute.xlu1 %1341 }
 0x204   :  { %v1362_v4 = vsel %vm718_vm6, %v1340_v48, %v5884_v55 }
 0x205   :  { %1301 = vrot.lane.b32.xlu1 %v5770_v56, %s4742_s23  ;;  %1229 = vrot.lane.b32.xlu0 %v5822_v30, %s4741_s2 }
 0x206   :  { %1608 = vmatprep.subr.mxu0 %v1362_v4 }
 0x207   :  { %v1294_v10 = vpop.permute.xlu1 %1293  ;;  %v1338_v15 = vpop.permute.xlu0 %1337 }
 0x208   :  { %v1361_v28 = vsel %vm718_vm6, %v1338_v15, %v1340_v48 }
 0x209   :  { %1183 = vrot.lane.b32.xlu1 %v5808_v22, %s4740_s22  ;;  %1181 = vrot.lane.b32.xlu0 %v5806_v19, %s4740_s22 }
 0x20a   :  { %1609 = vmatpush1.msra.mxu0 %v1361_v28 }
 0x20b   :  { %v1292_v41 = vpop.permute.xlu1 %1291  ;;  %v5897_v39 = vpop.permute.xlu0 %1295 }
 0x20c   :  { %v1308_v17 = vsel %vm627_vm5, %v1292_v41, %v1294_v10  ;;  %v1309_v63 = vsel %vm627_vm5, %v1294_v10, %v5897_v39 }
 0x20d   :  { %1169 = vrot.lane.b32.xlu1 %v5820_v35, %s4740_s22  ;;  %1289 = vrot.lane.b32.xlu0 %v5786_v59, %s4742_s23 }
 0x20e   :  { %1610 = vmatprep.subr.mxu0 %v1309_v63 }
 0x20f   :  { %v5906_v13 = vpop.permute.xlu1 %1283  ;;  %v1282_v62 = vpop.permute.xlu0 %1281  ;;  %1611 = vmatpush1.msra.mxu0 %v1308_v17 }
 0x210   :  { %v1304_v60 = vsel %vm627_vm5, %v1282_v62, %v5906_v13 }
 0x211   :  { %1243 = vrot.lane.b32.xlu1 %v5770_v56, %s4741_s2  ;;  %1171 = vrot.lane.b32.xlu0 %v5822_v30, %s4740_s22 }
 0x212   :  { %1612 = vmatprep.subr.mxu0 %v1304_v60 }
 0x213   :  { %v1236_v23 = vpop.permute.xlu1 %1235  ;;  %v1280_v16 = vpop.permute.xlu0 %1279 }
 0x214   :  { %v1303_v36 = vsel %vm627_vm5, %v1280_v16, %v1282_v62  ;;  %v1571_v62 = vld [vmem:[%s7262_s6 + $0x10] sm:$0xff] }
 0x215   :  { %1125 = vrot.lane.b32.xlu1 %v5808_v22, %s4739_s21  ;;  %1123 = vrot.lane.b32.xlu0 %v5806_v19, %s4739_s21 }
 0x216   :  { %1613 = vmatpush1.msra.mxu0 %v1303_v36 }
 0x217   :  { %v1234_v8 = vpop.permute.xlu1 %1233  ;;  %v5919_v47 = vpop.permute.xlu0 %1237 }
 0x218   :  { %v1250_v49 = vsel %vm536_vm4, %v1234_v8, %v1236_v23  ;;  %v1251_v58 = vsel %vm536_vm4, %v1236_v23, %v5919_v47  ;;  %v1572_v8 = vld [vmem:[%s7262_s6 + $0x18] sm:$0xff] }
 0x219   :  { %1111 = vrot.lane.b32.xlu1 %v5820_v35, %s4739_s21  ;;  %1231 = vrot.lane.b32.xlu0 %v5786_v59, %s4741_s2 }
 0x21a   :  { %1614 = vmatprep.subr.mxu0 %v1251_v58 }
 0x21b   :  { %v5928_v3 = vpop.permute.xlu1 %1225  ;;  %v1224_v52 = vpop.permute.xlu0 %1223  ;;  %1615 = vmatpush1.msra.mxu0 %v1250_v49 }
 0x21c   :  { %v1246_v1 = vsel %vm536_vm4, %v1224_v52, %v5928_v3 }
 0x21d   :  { %1185 = vrot.lane.b32.xlu1 %v5770_v56, %s4740_s22  ;;  %1113 = vrot.lane.b32.xlu0 %v5822_v30, %s4739_s21 }
 0x21e   :  { %1616 = vmatprep.subr.mxu0 %v1246_v1 }
 0x21f   :  { %v1178_v14 = vpop.permute.xlu1 %1177  ;;  %v1222_v29 = vpop.permute.xlu0 %1221 }
 0x220   :  { %v1245_v27 = vsel %vm536_vm4, %v1222_v29, %v1224_v52  ;;  %v7353_v52 = vmov 2  }
 0x221   :  { %1067 = vrot.lane.b32.xlu1 %v5808_v22, %s4738_s20  ;;  %1065 = vrot.lane.b32.xlu0 %v5806_v19, %s4738_s20 }
 0x222   :  { %1617 = vmatpush1.msra.mxu0 %v1245_v27 }
 0x223   :  { %v1176_v7 = vpop.permute.xlu1 %1175  ;;  %v5941_v50 = vpop.permute.xlu0 %1179 }
 0x224   :  { %v1192_v44 = vsel %vm445_vm3, %v1176_v7, %v1178_v14  ;;  %v1193_v11 = vsel %vm445_vm3, %v1178_v14, %v5941_v50 }
 0x225   :  { %1053 = vrot.lane.b32.xlu1 %v5820_v35, %s4738_s20  ;;  %1173 = vrot.lane.b32.xlu0 %v5786_v59, %s4740_s22 }
 0x226   :  { %1618 = vmatprep.subr.mxu0 %v1193_v11 }
 0x227   :  { %v5950_v37 = vpop.permute.xlu1 %1167  ;;  %v1166_v20 = vpop.permute.xlu0 %1165  ;;  %1619 = vmatpush1.msra.mxu0 %v1192_v44 }
 0x228   :  { %v1188_v2 = vsel %vm445_vm3, %v1166_v20, %v5950_v37 }
 0x229   :  { %1127 = vrot.lane.b32.xlu1 %v5770_v56, %s4739_s21  ;;  %1055 = vrot.lane.b32.xlu0 %v5822_v30, %s4738_s20 }
 0x22a   :  { %1620 = vmatprep.subr.mxu0 %v1188_v2 }
 0x22b   :  { %v1120_v31 = vpop.permute.xlu1 %1119  ;;  %v1164_v26 = vpop.permute.xlu0 %1163 }
 0x22c   :  { %v1187_v46 = vsel %vm445_vm3, %v1164_v26, %v1166_v20 }
 0x22d   :  { %1009 = vrot.lane.b32.xlu1 %v5808_v22, %s4737_s1  ;;  %1007 = vrot.lane.b32.xlu0 %v5806_v19, %s4737_s1 }
 0x22e   :  { %1621 = vmatpush1.msra.mxu0 %v1187_v46 }
 0x22f   :  { %v1118_v51 = vpop.permute.xlu1 %1117  ;;  %v5963_v32 = vpop.permute.xlu0 %1121 }
 0x230   :  { %v1134_v40 = vsel %vm354_vm2, %v1118_v51, %v1120_v31  ;;  %v1135_v5 = vsel %vm354_vm2, %v1120_v31, %v5963_v32 }
 0x231   :  { %995 = vrot.lane.b32.xlu1 %v5820_v35, %s4737_s1  ;;  %1115 = vrot.lane.b32.xlu0 %v5786_v59, %s4739_s21 }
 0x232   :  { %1622 = vmatprep.subr.mxu0 %v1135_v5 }
 0x233   :  { %v5972_v53 = vpop.permute.xlu1 %1109  ;;  %v1108_v25 = vpop.permute.xlu0 %1107  ;;  %1623 = vmatpush1.msra.mxu0 %v1134_v40 }
 0x234   :  { %v1130_v61 = vsel %vm354_vm2, %v1108_v25, %v5972_v53 }
 0x235   :  { %1069 = vrot.lane.b32.xlu1 %v5770_v56, %s4738_s20  ;;  %997 = vrot.lane.b32.xlu0 %v5822_v30, %s4737_s1 }
 0x236   :  { %1624 = vmatprep.subr.mxu0 %v1130_v61 }
 0x237   :  { %v1062_v6 = vpop.permute.xlu1 %1061  ;;  %v1106_v21 = vpop.permute.xlu0 %1105 }
 0x238   :  { %v1129_v38 = vsel %vm354_vm2, %v1106_v21, %v1108_v25  ;;  %v6073_v25 = vld [vmem:[%s7261_s5 + $0x18] sm:$0xff]  ;;  %v6081_v21 = vld [vmem:[%s7261_s5 + $0x10] sm:$0xff] }
 0x239   :  { %1011 = vrot.lane.b32.xlu1 %v5770_v56, %s4737_s1  ;;  %1057 = vrot.lane.b32.xlu0 %v5786_v59, %s4738_s20 }
 0x23a   :  { %1625 = vmatpush1.msra.mxu0 %v1129_v38 }
 0x23b   :  { %v1060_v57 = vpop.permute.xlu1 %1059  ;;  %v5985_v9 = vpop.permute.xlu0 %1063 }
 0x23c   :  { %v1076_v24 = vsel %vm263_vm1, %v1060_v57, %v1062_v6  ;;  %v1077_v43 = vsel %vm263_vm1, %v1062_v6, %v5985_v9  ;;  %v6090_v57 = vld [vmem:[%s7261_s5 + $0x28] sm:$0xff] }
 0x23d   :  { %1415 = vrot.lane.b32.xlu1 %v5808_v22, %s4744_s27  ;;  %1413 = vrot.lane.b32.xlu0 %v5806_v19, %s4744_s27 }
 0x23e   :  { %1626 = vmatprep.subr.mxu0 %v1077_v43 }
 0x23f   :  { %v5994_v34 = vpop.permute.xlu1 %1051  ;;  %v1050_v33 = vpop.permute.xlu0 %1049  ;;  %1627 = vmatpush1.msra.mxu0 %v1076_v24 }
 0x240   :  { %v1072_v48 = vsel %vm263_vm1, %v1050_v33, %v5994_v34 }
 0x241   :  { %1401 = vrot.lane.b32.xlu1 %v5820_v35, %s4744_s27  ;;  %999 = vrot.lane.b32.xlu0 %v5786_v59, %s4737_s1  ;;  %v1569_v35 = vld [vmem:[%s7262_s6] sm:$0xff] }
 0x242   :  { %1628 = vmatprep.subr.mxu0 %v1072_v48 }
 0x243   :  { %v1004_v4 = vpop.permute.xlu1 %1003  ;;  %v1048_v22 = vpop.permute.xlu0 %1047 }
 0x244   :  { %v1071_v10 = vsel %vm263_vm1, %v1048_v22, %v1050_v33  ;;  %v6098_v33 = vld [vmem:[%s7261_s5 + $0x20] sm:$0xff]  ;;  %v6106_v22 = vld [vmem:[%s7261_s5 + $0x38] sm:$0xff] }
 0x245   :  { %1417 = vrot.lane.b32.xlu1 %v5770_v56, %s4744_s27  ;;  %1403 = vrot.lane.b32.xlu0 %v5822_v30, %s4744_s27  ;;  %v1570_v56 = vld [vmem:[%s7262_s6 + $0x8] sm:$0xff]  ;;  %s4768_s6 = smov 18  }
 0x246   :  { %1629 = vmatpush1.msra.mxu0 %v1071_v10 }
 0x247   :  { %v1002_v19 = vpop.permute.xlu1 %1001  ;;  %v6007_v15 = vpop.permute.xlu0 %1005 }
 0x248   :  { %v1018_v28 = vsel %vm172_vm0, %v1002_v19, %v1004_v4  ;;  %v1019_v41 = vsel %vm172_vm0, %v1004_v4, %v6007_v15 }
 0x249   :  { %1405 = vrot.lane.b32.xlu0 %v5786_v59, %s4744_s27  ;;  %1630 = vmatprep.subr.mxu0 %v1019_v41  ;;  %v7352_v59 = vmov 1   ;;  %s4760_s27 = smov 19  }
 0x24a   :  { %1631 = vmatpush1.msra.mxu0 %v1018_v28  ;;  %1575 = vperm.xlu1 %4679, %v1569_v35  }
 0x24b   :  { %v6020_v30 = vpop.permute.xlu1 %993  ;;  %v992_v17 = vpop.permute.xlu0 %991 }
 0x24c   :  { %v1014_v63 = vsel %vm172_vm0, %v992_v17, %v6020_v30 }
 0x24d   :  { %1942 = vperm.xlu0 %4677, %v1570_v56   ;;  %1632 = vmatprep.subr.mxu0 %v1014_v63 }
 0x24e   :  { %4680 = vset.pattern.permute.xlu1 %v7352_v59 }
 0x24f   :  { %v1356_v60 = vpop.permute.xlu1 %1355  ;;  %v990_v23 = vpop.permute.xlu0 %989  ;;  %1898 = vperm.xlu1 %4680, %v1569_v35  }
 0x250   :  { %v1368_v16 = vsel %vm718_vm6, %v5871_v54, %v1356_v60  ;;  %v1013_v36 = vsel %vm172_vm0, %v990_v23, %v992_v17 }
 0x251   :  { %1946 = vperm.xlu0 %4677, %v1571_v62   ;;  %1633 = vmatpush1.msra.mxu0 %v1013_v36 }
 0x252   :  { %1634 = vmatprep.subr.mxu0 %v5551_v42 }
 0x253   :  { %v1344_v49 = vpop.permute.xlu1 %1343  ;;  %v1358_v58 = vpop.permute.xlu0 %1357  ;;  %1635 = vmatpush1.msra.mxu0 %v5549_v45  ;;  %4681 = vset.pattern.permute.xlu1 %v7353_v52 }
 0x254   :  { %v1363_v1 = vsel %vm718_vm6, %v5884_v55, %v1344_v49  ;;  %v1369_v54 = vsel %vm718_vm6, %v1356_v60, %v1358_v58  ;;  %1636 = vmatprep.subr.mxu0 %v5578_v12  ;;  %1938 = vperm.xlu1 %4681, %v1569_v35   ;;  %v7354_v55 = vmov 0  }
 0x255   :  { %1950 = vperm.xlu0 %4677, %v1572_v8   ;;  %1637 = vmatpush1.msra.mxu0 %v5576_v18 }
 0x256   :  { %1695 = vmatprep.subr.mxu1 %v1369_v54 }
 0x257   :  { %v1410_v14 = vpop.permute.xlu1 %1409  ;;  %v6042_v42 = vpop.permute.xlu0 %1345  ;;  %1696 = vmatpush1.msra.mxu1 %v1368_v16 }
 0x258   :  { %v1364_v45 = vsel %vm718_vm6, %v1344_v49, %v6042_v42  ;;  %4682 = vset.pattern.permute.xlu1 %v7352_v59 }
 0x259   :  { %1697 = vmatprep.subr.mxu1 %v1364_v45  ;;  %1902 = vperm.xlu1 %4682, %v1570_v56  }
 0x25a   :  { %1698 = vmatpush1.msra.mxu1 %v1363_v1  ;;  %4685 = vset.pattern.permute.xlu0 %v7354_v55 }
 0x25b   :  { %v1408_v12 = vpop.permute.xlu1 %1407  ;;  %v6048_v29 = vpop.permute.xlu0 %1411  ;;  %1580 = vperm.xlu0 %4685, %v1570_v56  }
 0x25c   :  { %v1424_v18 = vsel %vm809_vm7, %v1408_v12, %v1410_v14  ;;  %v1425_v27 = vsel %vm809_vm7, %v1410_v14, %v6048_v29 }
 0x25d   :  { %1666 = vmatprep.subr.mxu0 %v1425_v27  ;;  %4683 = vset.pattern.permute.xlu1 %v7354_v55 }
 0x25e   :  { %1667 = vmatpush2.msra.mxu0 %v1424_v18  ;;  %1590 = vperm.xlu1 %4683, %v1572_v8  }
 0x25f   :  { %v1300_v7 = vpop.permute.xlu1 %1299  ;;  %v1298_v44 = vpop.permute.xlu0 %1297  ;;  %1585 = vperm.xlu0 %4685, %v1571_v62  }
 0x260   :  { %v1310_v11 = vsel %vm627_vm5, %v5897_v39, %v1298_v44  ;;  %v1311_v20 = vsel %vm627_vm5, %v1298_v44, %v1300_v7  ;;  %v6065_v39 = vld [vmem:[%s7261_s5] sm:$0xff] }
 0x261   :  { %1699 = vmatprep.subr.mxu1 %v1311_v20 }
 0x262   :  { %1700 = vmatpush1.msra.mxu1 %v1310_v11  ;;  %4684 = vset.pattern.permute.xlu1 %v7352_v59 }
 0x263   :  { %v6058_v2 = vpop.permute.xlu1 %1399  ;;  %v1398_v31 = vpop.permute.xlu0 %1397  ;;  %1906 = vperm.xlu1 %4684, %v1571_v62  }
 0x264   :  { %v1420_v26 = vsel %vm809_vm7, %v1398_v31, %v6058_v2 }
 0x265   :  { %1668 = vmatprep.subr.mxu0 %v1420_v26 }
 0x267   :  { %v1286_v46 = vpop.permute.xlu1 %1285  ;;  %v1396_v51 = vpop.permute.xlu0 %1395  ;;  %1910 = vperm.xlu1 %4684, %v1572_v8  }
 0x268   :  { %v1305_v40 = vsel %vm627_vm5, %v5906_v13, %v1286_v46  ;;  %v1419_v5 = vsel %vm809_vm7, %v1396_v51, %v1398_v31 }
 0x269   :  { %1669 = vmatpush2.msra.mxu0 %v1419_v5 }
 0x26a   :  { %1671 = vmatmul.mubr.f32.vlgmr.msra.gmra.mxu0 %v6065_v39 }
 0x26b   :  { %v1360_v61 = vpop.permute.xlu1 %1359  ;;  %v1288_v6 = vpop.permute.xlu0 %1287  ;;  %4441 = vmatprep.mubr.msk.f32.mxu0 %vm1593_vm9, %v6073_v25  ;;  %4686 = vset.pattern.permute.xlu1 %v7354_v55 }
 0x26c   :  { %v1370_v13 = vsel %vm718_vm6, %v1358_v58, %v1360_v61  ;;  %1394 = vst.msk [vmem:[#allocation2 + $0x2f8] sm:$0xff] %vm969_vm8, %v1360_v61  ;;  %v1306_v38 = vsel %vm627_vm5, %v1286_v46, %v1288_v6 }
 0x26d   :  { %1701 = vmatprep.subr.mxu1 %v1306_v38 }
 0x26e   :  { %1677 = vmatmul.mubr.f32.gmra.mxu0 %v6081_v21  ;;  %1702 = vmatpush1.msra.mxu1 %v1305_v40 }
 0x26f   :  { %v1242_v24 = vpop.permute.xlu1 %1241  ;;  %v1240_v43 = vpop.permute.xlu0 %1239  ;;  %4442 = vmatprep.mubr.msk.f32.mxu0 %vm1593_vm9, %v6090_v57 }
 0x270   :  { %v1252_v48 = vsel %vm536_vm4, %v5919_v47, %v1240_v43  ;;  %v1253_v4 = vsel %vm536_vm4, %v1240_v43, %v1242_v24  ;;  %v6114_v47 = vld [vmem:[%s7261_s5 + $0x30] sm:$0xff]  ;;  %s4745_s5 = smov 56  }
 0x271   :  { %1703 = vmatprep.subr.mxu1 %v1253_v4 }
 0x272   :  { %1683 = vmatmul.mubr.f32.gmra.mxu0 %v6098_v33  ;;  %1704 = vmatpush1.msra.mxu1 %v1252_v48 }
 0x273   :  { %v1228_v10 = vpop.permute.xlu1 %1227  ;;  %v1348_v19 = vpop.permute.xlu0 %1347  ;;  %v1556_v35 = vld [vmem:[#allocation2 + $0x2f8] sm:$0xff]  ;;  %4443 = vmatprep.mubr.msk.f32.mxu0 %vm1593_vm9, %v6106_v22 }
 0x274   :  { %v1247_v28 = vsel %vm536_vm4, %v5928_v3, %v1228_v10  ;;  %v1365_v41 = vsel %vm718_vm6, %v6042_v42, %v1348_v19  ;;  %1388 = vst.msk [vmem:[#allocation2 + $0x2c8] sm:$0xff] %vm969_vm8, %v1348_v19  ;;  %1784 = vmatprep.subr.mxu0 %v1556_v35 }
 0x275   :  { %1785 = vmatpush1.msra.mxu0 %v1370_v13 }
 0x276   :  { %1689 = vmatmul.mubr.f32.gmra.mxu0 %v6114_v47 }
 0x277   :  { %v1302_v56 = vpop.permute.xlu1 %1301  ;;  %v1230_v17 = vpop.permute.xlu0 %1229  ;;  %4448 = vmatprep.mubr.msk.f32.mxu0 %vm1593_vm9, %v5849_v0 }
 0x278   :  { %v1312_v63 = vsel %vm627_vm5, %v1300_v7, %v1302_v56  ;;  %1336 = vst.msk [vmem:[#allocation2 + $0x298] sm:$0xff] %vm969_vm8, %v1302_v56  ;;  %v1248_v3 = vsel %vm536_vm4, %v1228_v10, %v1230_v17 }
 0x279   :  { %1705 = vmatprep.subr.mxu1 %v1248_v3 }
 0x27a   :  { %1706 = vmatpush1.msra.mxu1 %v1247_v28 }
 0x27b   :  { %v1184_v62 = vpop.permute.xlu1 %1183  ;;  %v1182_v60 = vpop.permute.xlu0 %1181  ;;  %v1550_v23 = vld [vmem:[#allocation2 + $0x2c8] sm:$0xff] }
 0x27c   :  { %v1194_v16 = vsel %vm445_vm3, %v5941_v50, %v1182_v60  ;;  %v1195_v36 = vsel %vm445_vm3, %v1182_v60, %v1184_v62  ;;  %1786 = vmatprep.subr.mxu0 %v1550_v23 }
 0x27d   :  { %1787 = vmatpush1.msra.mxu0 %v1365_v41  ;;  %1707 = vmatprep.subr.mxu1 %v1195_v36 }
 0x27e   :  { %1708 = vmatpush1.msra.mxu1 %v1194_v16 }
 0x27f   :  { %v1170_v0 = vpop.permute.xlu1 %1169  ;;  %v1290_v8 = vpop.permute.xlu0 %1289  ;;  %v1544_v49 = vld [vmem:[#allocation2 + $0x298] sm:$0xff] }
 0x280   :  { %v1189_v58 = vsel %vm445_vm3, %v5950_v37, %v1170_v0  ;;  %v1307_v1 = vsel %vm627_vm5, %v1288_v6, %v1290_v8  ;;  %1330 = vst.msk [vmem:[#allocation2 + $0x268] sm:$0xff] %vm969_vm8, %v1290_v8  ;;  %1788 = vmatprep.subr.mxu0 %v1544_v49  ;;  %vm2392_vm5 = vcmask 1032032  }
 0x281   :  { %1789 = vmatpush1.msra.mxu0 %v1312_v63 }
 0x283   :  { %v1244_v54 = vpop.permute.xlu1 %1243  ;;  %v1172_v50 = vpop.permute.xlu0 %1171 }
 0x284   :  { %v1254_v14 = vsel %vm536_vm4, %v1242_v24, %v1244_v54  ;;  %1278 = vst.msk [vmem:[#allocation2 + $0x238] sm:$0xff] %vm969_vm8, %v1244_v54  ;;  %v1190_v42 = vsel %vm445_vm3, %v1170_v0, %v1172_v50  ;;  %v1470_v0 = vld [vmem:[#allocation2 + $0x48] sm:$0xff] }
 0x285   :  { %1709 = vmatprep.subr.mxu1 %v1190_v42 }
 0x286   :  { %1710 = vmatpush1.msra.mxu1 %v1189_v58  ;;  %v1469_v58 = vld [vmem:[#allocation2 + $0x40] sm:$0xff] }
 0x287   :  { %v1126_v45 = vpop.permute.xlu1 %1125  ;;  %v1124_v12 = vpop.permute.xlu0 %1123  ;;  %v1538_v18 = vld [vmem:[#allocation2 + $0x268] sm:$0xff] }
 0x288   :  { %v1136_v37 = vsel %vm354_vm2, %v5963_v32, %v1124_v12  ;;  %v1137_v27 = vsel %vm354_vm2, %v1124_v12, %v1126_v45  ;;  %1790 = vmatprep.subr.mxu0 %v1538_v18 }
 0x289   :  { %1791 = vmatpush1.msra.mxu0 %v1307_v1  ;;  %1711 = vmatprep.subr.mxu1 %v1137_v27 }
 0x28a   :  { %1712 = vmatpush1.msra.mxu1 %v1136_v37 }
 0x28b   :  { %v1112_v7 = vpop.permute.xlu1 %1111  ;;  %v1232_v44 = vpop.permute.xlu0 %1231  ;;  %v1532_v11 = vld [vmem:[#allocation2 + $0x238] sm:$0xff] }
 0x28c   :  { %v1131_v20 = vsel %vm354_vm2, %v5972_v53, %v1112_v7  ;;  %v1249_v31 = vsel %vm536_vm4, %v1230_v17, %v1232_v44  ;;  %1272 = vst.msk [vmem:[#allocation2 + $0x208] sm:$0xff] %vm969_vm8, %v1232_v44  ;;  %1792 = vmatprep.subr.mxu0 %v1532_v11 }
 0x28d   :  { %1793 = vmatpush1.msra.mxu0 %v1254_v14  ;;  %v1463_v14 = vld [vmem:[#allocation2 + $0x10] sm:$0xff] }
 0x28f   :  { %v1186_v26 = vpop.permute.xlu1 %1185  ;;  %v1114_v32 = vpop.permute.xlu0 %1113 }
 0x290   :  { %v1196_v46 = vsel %vm445_vm3, %v1184_v62, %v1186_v26  ;;  %1220 = vst.msk [vmem:[#allocation2 + $0x1d8] sm:$0xff] %vm969_vm8, %v1186_v26  ;;  %v1132_v51 = vsel %vm354_vm2, %v1112_v7, %v1114_v32 }
 0x291   :  { %1713 = vmatprep.subr.mxu1 %v1132_v51 }
 0x292   :  { %1714 = vmatpush1.msra.mxu1 %v1131_v20 }
 0x293   :  { %v1068_v40 = vpop.permute.xlu1 %1067  ;;  %v1066_v5 = vpop.permute.xlu0 %1065  ;;  %v1526_v61 = vld [vmem:[#allocation2 + $0x208] sm:$0xff] }
 0x294   :  { %v1078_v53 = vsel %vm263_vm1, %v5985_v9, %v1066_v5  ;;  %v1079_v6 = vsel %vm263_vm1, %v1066_v5, %v1068_v40  ;;  %1794 = vmatprep.subr.mxu0 %v1526_v61  ;;  %v1472_v5 = vld [vmem:[#allocation2 + $0x58] sm:$0xff]  ;;  %v1471_v61 = vld [vmem:[#allocation2 + $0x50] sm:$0xff] }
 0x295   :  { %1795 = vmatpush1.msra.mxu0 %v1249_v31  ;;  %1715 = vmatprep.subr.mxu1 %v1079_v6  ;;  %v1465_v6 = vld [vmem:[#allocation2 + $0x20] sm:$0xff] }
 0x296   :  { %1716 = vmatpush1.msra.mxu1 %v1078_v53  ;;  %v1466_v53 = vld [vmem:[#allocation2 + $0x28] sm:$0xff] }
 0x297   :  { %v1054_v13 = vpop.permute.xlu1 %1053  ;;  %v1174_v38 = vpop.permute.xlu0 %1173  ;;  %v1520_v24 = vld [vmem:[#allocation2 + $0x1d8] sm:$0xff] }
 0x298   :  { %v1073_v43 = vsel %vm263_vm1, %v5994_v34, %v1054_v13  ;;  %v1191_v48 = vsel %vm445_vm3, %v1172_v50, %v1174_v38  ;;  %1214 = vst.msk [vmem:[#allocation2 + $0x1a8] sm:$0xff] %vm969_vm8, %v1174_v38  ;;  %1796 = vmatprep.subr.mxu0 %v1520_v24  ;;  %v1464_v50 = vld [vmem:[#allocation2 + $0x18] sm:$0xff] }
 0x299   :  { %1797 = vmatpush1.msra.mxu0 %v1196_v46 }
 0x29b   :  { %v1128_v4 = vpop.permute.xlu1 %1127  ;;  %v1056_v9 = vpop.permute.xlu0 %1055 }
 0x29c   :  { %v1138_v10 = vsel %vm354_vm2, %v1126_v45, %v1128_v4  ;;  %1162 = vst.msk [vmem:[#allocation2 + $0x178] sm:$0xff] %vm969_vm8, %v1128_v4  ;;  %v1074_v19 = vsel %vm263_vm1, %v1054_v13, %v1056_v9 }
 0x29d   :  { %1717 = vmatprep.subr.mxu1 %v1074_v19 }
 0x29e   :  { %1718 = vmatpush1.msra.mxu1 %v1073_v43 }
 0x29f   :  { %v1010_v35 = vpop.permute.xlu1 %1009  ;;  %v1008_v28 = vpop.permute.xlu0 %1007  ;;  %v1514_v41 = vld [vmem:[#allocation2 + $0x1a8] sm:$0xff] }
 0x2a0   :  { %v1020_v34 = vsel %vm172_vm0, %v6007_v15, %v1008_v28  ;;  %v1021_v56 = vsel %vm172_vm0, %v1008_v28, %v1010_v35  ;;  %1798 = vmatprep.subr.mxu0 %v1514_v41 }
 0x2a1   :  { %1799 = vmatpush1.msra.mxu0 %v1191_v48  ;;  %1719 = vmatprep.subr.mxu1 %v1021_v56 }
 0x2a2   :  { %1720 = vmatpush1.msra.mxu1 %v1020_v34 }
 0x2a3   :  { %v996_v17 = vpop.permute.xlu1 %995  ;;  %v1116_v63 = vpop.permute.xlu0 %1115  ;;  %v1508_v3 = vld [vmem:[#allocation2 + $0x178] sm:$0xff] }
 0x2a4   :  { %v1015_v62 = vsel %vm172_vm0, %v6020_v30, %v996_v17  ;;  %v1133_v60 = vsel %vm354_vm2, %v1114_v32, %v1116_v63  ;;  %1156 = vst.msk [vmem:[#allocation2 + $0x148] sm:$0xff] %vm969_vm8, %v1116_v63  ;;  %1800 = vmatprep.subr.mxu0 %v1508_v3 }
 0x2a5   :  { %1801 = vmatpush1.msra.mxu0 %v1138_v10 }
 0x2a7   :  { %v1070_v23 = vpop.permute.xlu1 %1069  ;;  %v998_v15 = vpop.permute.xlu0 %997 }
 0x2a8   :  { %v1080_v16 = vsel %vm263_vm1, %v1068_v40, %v1070_v23  ;;  %1104 = vst.msk [vmem:[#allocation2 + $0x118] sm:$0xff] %vm969_vm8, %v1070_v23  ;;  %v1016_v36 = vsel %vm172_vm0, %v996_v17, %v998_v15 }
 0x2a9   :  { %1721 = vmatprep.subr.mxu1 %v1016_v36 }
 0x2aa   :  { %1722 = vmatpush1.msra.mxu1 %v1015_v62 }
 0x2ab   :  { %v1012_v8 = vpop.permute.xlu1 %1011  ;;  %v1058_v49 = vpop.permute.xlu0 %1057  ;;  %v1502_v30 = vld [vmem:[#allocation2 + $0x148] sm:$0xff]  ;;  %1723 = vmatprep.subr.mxu1 %v1470_v0 }
 0x2ac   :  { %v1022_v1 = vsel %vm172_vm0, %v1010_v35, %v1012_v8  ;;  %1046 = vst.msk [vmem:[#allocation2 + $0xb8] sm:$0xff] %vm969_vm8, %v1012_v8  ;;  %v1075_v54 = vsel %vm263_vm1, %v1056_v9, %v1058_v49  ;;  %1098 = vst.msk [vmem:[#allocation2 + $0xe8] sm:$0xff] %vm969_vm8, %v1058_v49  ;;  %1802 = vmatprep.subr.mxu0 %v1502_v30  ;;  %1724 = vmatpush1.msra.mxu1 %v1469_v58  ;;  %vm2375_vm1 = vcmask 884432  }
 0x2ad   :  { %1803 = vmatpush1.msra.mxu0 %v1133_v60  ;;  %1725 = vmatprep.subr.mxu1 %v1464_v50 }
 0x2ae   :  { %1726 = vmatpush1.msra.mxu1 %v1463_v14 }
 0x2af   :  { %v1416_v42 = vpop.permute.xlu1 %1415  ;;  %v1414_v45 = vpop.permute.xlu0 %1413  ;;  %v1496_v12 = vld [vmem:[#allocation2 + $0x118] sm:$0xff] }
 0x2b0   :  { %v1426_v18 = vsel %vm809_vm7, %v6048_v29, %v1414_v45  ;;  %v1427_v37 = vsel %vm809_vm7, %v1414_v45, %v1416_v42  ;;  %1804 = vmatprep.subr.mxu0 %v1496_v12 }
 0x2b1   :  { %1805 = vmatpush1.msra.mxu0 %v1080_v16  ;;  %1755 = vmatprep.subr.mxu1 %v1427_v37 }
 0x2b2   :  { %1756 = vmatpush2.msra.mxu1 %v1426_v18 }
 0x2b3   :  { %v1402_v27 = vpop.permute.xlu1 %1401  ;;  %v1000_v7 = vpop.permute.xlu0 %999  ;;  %v1490_v44 = vld [vmem:[#allocation2 + $0xe8] sm:$0xff]  ;;  %v1484_v31 = vld [vmem:[#allocation2 + $0xb8] sm:$0xff] }
 0x2b4   :  { %v1421_v11 = vsel %vm809_vm7, %v6058_v2, %v1402_v27  ;;  %v1017_v20 = vsel %vm172_vm0, %v998_v15, %v1000_v7  ;;  %1040 = vst.msk [vmem:[#allocation2 + $0x88] sm:$0xff] %vm969_vm8, %v1000_v7  ;;  %1806 = vmatprep.subr.mxu0 %v1490_v44 }
 0x2b5   :  { %1807 = vmatpush1.msra.mxu0 %v1075_v54 }
 0x2b6   :  { %1808 = vmatprep.subr.mxu0 %v1484_v31 }
 0x2b7   :  { %v1418_v29 = vpop.permute.xlu1 %1417  ;;  %v1404_v26 = vpop.permute.xlu0 %1403  ;;  %1809 = vmatpush1.msra.mxu0 %v1022_v1 }
 0x2b8   :  { %v1428_v32 = vsel %vm809_vm7, %v1416_v42, %v1418_v29  ;;  %1452 = vst.msk [vmem:[#allocation2 + $0x358] sm:$0xff] %vm969_vm8, %v1418_v29  ;;  %v1422_v46 = vsel %vm809_vm7, %v1402_v27, %v1404_v26 }
 0x2b9   :  { %1757 = vmatprep.subr.mxu1 %v1422_v46 }
 0x2ba   :  { %1758 = vmatpush2.msra.mxu1 %v1421_v11 }
 0x2bb   :  { %v1406_v2 = vpop.permute.xlu0 %1405  ;;  %v1478_v51 = vld [vmem:[#allocation2 + $0x88] sm:$0xff]  ;;  %1760 = vmatmul.mubr.f32.vlgmr.msra.gmra.mxu1 %v6065_v39 }
 0x2bc   :  { %v1423_v40 = vsel %vm809_vm7, %v1404_v26, %v1406_v2  ;;  %1446 = vst.msk [vmem:[#allocation2 + $0x328] sm:$0xff] %vm969_vm8, %v1406_v2  ;;  %1810 = vmatprep.subr.mxu0 %v1478_v51  ;;  %4445 = vmatprep.mubr.msk.f32.mxu1 %vm1593_vm9, %v6073_v25  ;;  %vm2413_vm7 = vcmask 1048560   ;;  %vm2458_vm8 = vcmask 195584  }
 0x2bd   :  { %1811 = vmatpush1.msra.mxu0 %v1017_v20 }
 0x2be   :  { %1812 = vmatprep.subr.mxu0 %v1472_v5 }
 0x2bf   :  { %1813 = vmatpush1.msra.mxu0 %v1471_v61  ;;  %1766 = vmatmul.mubr.f32.gmra.mxu1 %v6081_v21  ;;  %v1568_v13 = vld [vmem:[#allocation2 + $0x358] sm:$0xff] }
 0x2c0   :  { %1814 = vmatprep.subr.mxu0 %v1466_v53  ;;  %4446 = vmatprep.mubr.msk.f32.mxu1 %vm1593_vm9, %v6090_v57 }
 0x2c1   :  { %1815 = vmatpush1.msra.mxu0 %v1465_v6 }
 0x2c2   :  { %1844 = vmatprep.subr.mxu0 %v1568_v13 }
 0x2c3   :  { %1845 = vmatpush2.msra.mxu0 %v1428_v32  ;;  %v1562_v38 = vld [vmem:[#allocation2 + $0x328] sm:$0xff]  ;;  %1772 = vmatmul.mubr.f32.gmra.mxu1 %v6098_v33 }
 0x2c4   :  { %1846 = vmatprep.subr.mxu0 %v1562_v38  ;;  %4447 = vmatprep.mubr.msk.f32.mxu1 %vm1593_vm9, %v6106_v22 }
 0x2c5   :  { %1847 = vmatpush2.msra.mxu0 %v1423_v40  ;;  %v6203_v24 = vpop.permute.xlu1 %1575 }
 0x2c6   :  { %1849 = vmatmul.mubr.f32.vlgmr.msra.gmra.mxu0 %v6065_v39 }
 0x2c7   :  { %4449 = vmatprep.mubr.msk.f32.mxu0 %vm1593_vm9, %v6073_v25  ;;  %1778 = vmatmul.mubr.f32.gmra.mxu1 %v6114_v47 }
 0x2c8   :  { %v6223_v19 = vpop.permute.xlu0 %1942 }
 0x2ca   :  { %1855 = vmatmul.mubr.f32.gmra.mxu0 %v6081_v21  ;;  %v6205_v39 = vpop.permute.xlu1 %1898 }
 0x2cb   :  { %4450 = vmatprep.mubr.msk.f32.mxu0 %vm1593_vm9, %v6090_v57 }
 0x2cc   :  { %v6225_v35 = vpop.permute.xlu0 %1946 }
 0x2ce   :  { %1861 = vmatmul.mubr.f32.gmra.mxu0 %v6098_v33 }
 0x2cf   :  { %4451 = vmatprep.mubr.msk.f32.mxu0 %vm1593_vm9, %v6106_v22  ;;  %v6210_v33 = vpop.permute.xlu1 %1938 }
 0x2d0   :  { %v6227_v41 = vpop.permute.xlu0 %1950 }
 0x2d2   :  { %1867 = vmatmul.mubr.f32.gmra.mxu0 %v6114_v47 }
 0x2d4   :  { %v6231_v63 = vpop.permute.xlu1 %1902 }
 0x2d6   :  { %v6229_v56 = vpop.permute.xlu0 %1580 }
 0x2d9   :  { %v6239_v58 = vpop.permute.xlu1 %1590 }
 0x2da   :  { %v6236_v36 = vpop.permute.xlu0 %1585 }
 0x2de   :  { %v6257_v46 = vpop.permute.xlu1 %1906 }
 0x32a   :  { %v1672_v43 = vpop.f32.mrf.mxu0 }
 0x32b   :  { %v1673_v25 = vadd.f32 %v1672_v43, %v6203_v24 }
 0x32c   :  { %v1674_v48 = vpop.f32.mrf.mxu0 }
 0x32d   :  { %v1873_v4 = vmax.f32 %v1673_v25, 0.0  ;;  %v1675_v21 = vadd.f32 %v1674_v48, %v6203_v24 }
 0x32e   :  { %v1678_v28 = vpop.f32.mrf.mxu0 }
 0x32f   :  { %v1913_v57 = vmul.f32 %v6205_v39, %v1873_v4  ;;  %v1874_v9 = vmax.f32 %v1675_v21, 0.0  ;;  %v1679_v3 = vadd.f32 %v1678_v28, %v6229_v56 }
 0x330   :  { %v1680_v34 = vpop.f32.mrf.mxu0 }
 0x331   :  { %v6213_v22 = vadd.f32 %v6210_v33, %v1913_v57  ;;  %v1914_v47 = vmul.f32 %v6205_v39, %v1874_v9  ;;  %v1681_v62 = vadd.f32 %v1680_v34, %v6229_v56  ;;  %v1879_v16 = vmax.f32 %v1679_v3, 0.0 }
 0x332   :  { %v1684_v17 = vpop.f32.mrf.mxu0 }
 0x333   :  { %v6217_v10 = vadd.f32 %v6210_v33, %v1914_v47  ;;  %1997 = vrot.lane.b32.xlu1 %v6213_v22, %s4737_s1  ;;  %v1880_v30 = vmax.f32 %v1681_v62, 0.0  ;;  %v1685_v54 = vadd.f32 %v1684_v17, %v6236_v36  ;;  %v1919_v12 = vmul.f32 %v6231_v63, %v1879_v16 }
 0x334   :  { %v1686_v23 = vpop.f32.mrf.mxu0 }
 0x335   :  { %1999 = vrot.lane.b32.xlu0 %v6217_v10, %s4737_s1  ;;  %v1920_v20 = vmul.f32 %v6231_v63, %v1880_v30  ;;  %v1885_v31 = vmax.f32 %v1685_v54, 0.0  ;;  %v6260_v51 = vadd.f32 %v6223_v19, %v1919_v12  ;;  %v1687_v40 = vadd.f32 %v1686_v23, %v6236_v36 }
 0x336   :  { %v1690_v50 = vpop.f32.mrf.mxu0 }
 0x337   :  { %v6267_v6 = vadd.f32 %v6223_v19, %v1920_v20  ;;  %v1925_v25 = vmul.f32 %v6257_v46, %v1885_v31  ;;  %v1886_v48 = vmax.f32 %v1687_v40, 0.0  ;;  %v1691_v4 = vadd.f32 %v1690_v50, %v6239_v58 }
 0x338   :  { %v1692_v29 = vpop.f32.mrf.mxu0 }
 0x339   :  { %v1693_v28 = vadd.f32 %v1692_v29, %v6239_v58  ;;  %v6285_v3 = vadd.f32 %v6225_v35, %v1925_v25  ;;  %v1926_v16 = vmul.f32 %v6257_v46, %v1886_v48 }
 0x37b   :  { %v1761_v60 = vpop.f32.mrf.mxu1 }
 0x37c   :  { %v1762_v15 = vadd.f32 %v1761_v60, %v6203_v24  ;;  %v1891_v60 = vmax.f32 %v1691_v4, 0.0 }
 0x37d   :  { %v1763_v0 = vpop.f32.mrf.mxu1 }
 0x37e   :  { %v1875_v8 = vmax.f32 %v1762_v15, 0.0  ;;  %v1764_v49 = vadd.f32 %v1763_v0, %v6203_v24  ;;  %v6294_v0 = vpop.permute.xlu1 %1910 }
 0x37f   :  { %v1767_v1 = vpop.f32.mrf.mxu1  ;;  %v1931_v12 = vmul.f32 %v6294_v0, %v1891_v60 }
 0x380   :  { %v1915_v14 = vmul.f32 %v6205_v39, %v1875_v8  ;;  %v1876_v42 = vmax.f32 %v1764_v49, 0.0  ;;  %v1768_v45 = vadd.f32 %v1767_v1, %v6229_v56  ;;  %v1892_v49 = vmax.f32 %v1693_v28, 0.0 }
 0x381   :  { %v1769_v18 = vpop.f32.mrf.mxu1 }
 0x382   :  { %v6246_v37 = vadd.f32 %v6210_v33, %v1915_v14  ;;  %v1916_v27 = vmul.f32 %v6205_v39, %v1876_v42  ;;  %v1881_v7 = vmax.f32 %v1768_v45, 0.0  ;;  %v1770_v44 = vadd.f32 %v1769_v18, %v6229_v56 }
 0x383   :  { %v1773_v11 = vpop.f32.mrf.mxu1  ;;  %v6307_v45 = vadd.f32 %v6225_v35, %v1926_v16 }
 0x384   :  { %v6252_v26 = vadd.f32 %v6210_v33, %v1916_v27  ;;  %v1774_v32 = vadd.f32 %v1773_v11, %v6236_v36  ;;  %2001 = vrot.lane.b32.xlu1 %v6246_v37, %s4737_s1  ;;  %v1921_v61 = vmul.f32 %v6231_v63, %v1881_v7  ;;  %v1882_v53 = vmax.f32 %v1770_v44, 0.0 }
 0x385   :  { %v1775_v2 = vpop.f32.mrf.mxu1  ;;  %v1932_v44 = vmul.f32 %v6294_v0, %v1892_v49 }
 0x386   :  { %v1850_v5 = vpop.f32.mrf.mxu0  ;;  %2003 = vrot.lane.b32.xlu0 %v6252_v26, %s4737_s1  ;;  %v1887_v38 = vmax.f32 %v1774_v32, 0.0  ;;  %v1776_v43 = vadd.f32 %v1775_v2, %v6236_v36  ;;  %v6275_v21 = vadd.f32 %v6223_v19, %v1921_v61  ;;  %v1922_v57 = vmul.f32 %v6231_v63, %v1882_v53 }
 0x387   :  { %v1779_v47 = vpop.f32.mrf.mxu1  ;;  %v1851_v30 = vadd.f32 %v1850_v5, %v6203_v24  ;;  %v6322_v32 = vadd.f32 %v6227_v41, %v1931_v12  ;;  %v6329_v5 = vadd.f32 %v6227_v41, %v1932_v44 }
 0x388   :  { %v1852_v13 = vpop.f32.mrf.mxu0  ;;  %2007 = vrot.lane.b32.xlu1 %v6260_v51, %s4737_s1  ;;  %v1927_v34 = vmul.f32 %v6257_v46, %v1887_v38  ;;  %v1888_v17 = vmax.f32 %v1776_v43, 0.0  ;;  %v6288_v23 = vadd.f32 %v6223_v19, %v1922_v57  ;;  %v1780_v15 = vadd.f32 %v1779_v47, %v6239_v58 }
 0x389   :  { %v1781_v8 = vpop.f32.mrf.mxu1  ;;  %v1877_v18 = vmax.f32 %v1851_v30, 0.0  ;;  %v1853_v27 = vadd.f32 %v1852_v13, %v6203_v24 }
 0x38a   :  { %v1856_v9 = vpop.f32.mrf.mxu0  ;;  %2009 = vrot.lane.b32.xlu0 %v6267_v6, %s4737_s1  ;;  %v6298_v1 = vadd.f32 %v6225_v35, %v1927_v34  ;;  %v1928_v54 = vmul.f32 %v6257_v46, %v1888_v17  ;;  %v1893_v14 = vmax.f32 %v1780_v15, 0.0  ;;  %v1782_v42 = vadd.f32 %v1781_v8, %v6239_v58 }
 0x38b   :  { %v1857_v20 = vadd.f32 %v1856_v9, %v6229_v56  ;;  %v1917_v24 = vmul.f32 %v6205_v39, %v1877_v18  ;;  %v1878_v2 = vmax.f32 %v1853_v27, 0.0 }
 0x38c   :  { %2011 = vrot.lane.b32.xlu1 %v6275_v21, %s4737_s1  ;;  %v1858_v62 = vpop.f32.mrf.mxu0  ;;  %v6312_v7 = vadd.f32 %v6225_v35, %v1928_v54  ;;  %v1933_v31 = vmul.f32 %v6294_v0, %v1893_v14  ;;  %v1894_v29 = vmax.f32 %v1782_v42, 0.0 }
 0x38d   :  { %v1859_v40 = vadd.f32 %v1858_v62, %v6229_v56  ;;  %v1883_v53 = vmax.f32 %v1857_v20, 0.0  ;;  %v6339_v56 = vadd.f32 %v6210_v33, %v1917_v24  ;;  %v1918_v25 = vmul.f32 %v6205_v39, %v1878_v2 }
 0x38e   :  { %2017 = vrot.lane.b32.xlu0 %v6285_v3, %s4737_s1  ;;  %v1862_v50 = vpop.f32.mrf.mxu0  ;;  %v6332_v13 = vadd.f32 %v6227_v41, %v1933_v31  ;;  %v1934_v43 = vmul.f32 %v6294_v0, %v1894_v29 }
 0x38f   :  { %v1884_v48 = vmax.f32 %v1859_v40, 0.0  ;;  %v1863_v4 = vadd.f32 %v1862_v50, %v6236_v36  ;;  %v1923_v9 = vmul.f32 %v6231_v63, %v1883_v53  ;;  %v6353_v39 = vadd.f32 %v6210_v33, %v1918_v25 }
 0x390   :  { %2013 = vrot.lane.b32.xlu1 %v6288_v23, %s4737_s1  ;;  %v1864_v11 = vpop.f32.mrf.mxu0  ;;  %v6347_v28 = vadd.f32 %v6227_v41, %v1934_v43 }
 0x391   :  { %v1865_v38 = vadd.f32 %v1864_v11, %v6236_v36  ;;  %v1924_v36 = vmul.f32 %v6231_v63, %v1884_v48  ;;  %v1889_v17 = vmax.f32 %v1863_v4, 0.0  ;;  %v6360_v60 = vadd.f32 %v6223_v19, %v1923_v9 }
 0x392   :  { %2021 = vrot.lane.b32.xlu0 %v6298_v1, %s4737_s1  ;;  %v1868_v61 = vpop.f32.mrf.mxu0 }
 0x393   :  { %v1890_v47 = vmax.f32 %v1865_v38, 0.0  ;;  %v1869_v34 = vadd.f32 %v1868_v61, %v6239_v58  ;;  %v6366_v33 = vadd.f32 %v6223_v19, %v1924_v36  ;;  %v1929_v63 = vmul.f32 %v6257_v46, %v1889_v17 }
 0x394   :  { %2019 = vrot.lane.b32.xlu1 %v6307_v45, %s4737_s1  ;;  %v1870_v57 = vpop.f32.mrf.mxu0 }
 0x395   :  { %v1871_v62 = vadd.f32 %v1870_v57, %v6239_v58  ;;  %v1930_v15 = vmul.f32 %v6257_v46, %v1890_v47  ;;  %v1895_v16 = vmax.f32 %v1869_v34, 0.0  ;;  %v6378_v30 = vadd.f32 %v6225_v35, %v1929_v63 }
 0x396   :  { %2023 = vrot.lane.b32.xlu0 %v6312_v7, %s4737_s1 }
 0x397   :  { %v1896_v8 = vmax.f32 %v1871_v62, 0.0  ;;  %v6372_v58 = vadd.f32 %v6225_v35, %v1930_v15  ;;  %v1935_v49 = vmul.f32 %v6294_v0, %v1895_v16 }
 0x398   :  { %2027 = vrot.lane.b32.xlu1 %v6322_v32, %s4737_s1 }
 0x399   :  { %v1936_v19 = vmul.f32 %v6294_v0, %v1896_v8  ;;  %v6384_v46 = vadd.f32 %v6227_v41, %v1935_v49 }
 0x39a   :  { %2029 = vrot.lane.b32.xlu0 %v6329_v5, %s4737_s1 }
 0x39b   :  { %v6390_v42 = vadd.f32 %v6227_v41, %v1936_v19 }
 0x39c   :  { %2031 = vrot.lane.b32.xlu1 %v6332_v13, %s4737_s1 }
 0x39e   :  { %2005 = vrot.lane.b32.xlu0 %v6339_v56, %s4737_s1 }
 0x3a0   :  { %2033 = vrot.lane.b32.xlu1 %v6347_v28, %s4737_s1 }
 0x3a2   :  { %2097 = vrot.lane.b32.xlu0 %v6353_v39, %s4737_s1 }
 0x3a4   :  { %2015 = vrot.lane.b32.xlu1 %v6360_v60, %s4737_s1 }
 0x3a5   :  { %v1998_v50 = vpop.permute.xlu1 %1997 }
 0x3a6   :  { %2099 = vrot.lane.b32.xlu0 %v6366_v33, %s4737_s1 }
 0x3a7   :  { %v2000_v54 = vpop.permute.xlu0 %1999 }
 0x3a8   :  { %2101 = vrot.lane.b32.xlu1 %v6372_v58, %s4737_s1  ;;  %v2037_v14 = vsel %vm172_vm0, %v1998_v50, %v2000_v54 }
 0x3a9   :  { %v6395_v35 = vmax.f32 %v6213_v22, %v2037_v14 }
 0x3aa   :  { %2025 = vrot.lane.b32.xlu0 %v6378_v30, %s4737_s1 }
 0x3ac   :  { %2035 = vrot.lane.b32.xlu1 %v6384_v46, %s4737_s1 }
 0x3ae   :  { %2103 = vrot.lane.b32.xlu0 %v6390_v42, %s4737_s1 }
 0x3b0   :  { %2149 = vrot.lane.b32.xlu1 %v6395_v35, %s4739_s21 }
 0x3f6   :  { %v2002_v0 = vpop.permute.xlu1 %2001 }
 0x3f7   :  { %v2038_v12 = vsel %vm172_vm0, %v2000_v54, %v2002_v0 }
 0x3f8   :  { %v6403_v18 = vmax.f32 %v6217_v10, %v2038_v12  ;;  %v2004_v41 = vpop.permute.xlu0 %2003 }
 0x3f9   :  { %v2039_v27 = vsel %vm172_vm0, %v2002_v0, %v2004_v41 }
 0x3fa   :  { %v6407_v44 = vmax.f32 %v6246_v37, %v2039_v27  ;;  %2151 = vrot.lane.b32.xlu0 %v6403_v18, %s4739_s21  ;;  %v2008_v22 = vpop.permute.xlu1 %2007 }
 0x3fc   :  { %v2010_v11 = vpop.permute.xlu0 %2009  ;;  %2153 = vrot.lane.b32.xlu1 %v6407_v44, %s4739_s21 }
 0x3fd   :  { %v2041_v20 = vsel %vm172_vm0, %v2008_v22, %v2010_v11 }
 0x3fe   :  { %v6415_v31 = vmax.f32 %v6260_v51, %v2041_v20  ;;  %v2012_v10 = vpop.permute.xlu1 %2011 }
 0x3ff   :  { %v2042_v29 = vsel %vm172_vm0, %v2010_v11, %v2012_v10 }
 0x400   :  { %v6419_v24 = vmax.f32 %v6267_v6, %v2042_v29  ;;  %v2018_v37 = vpop.permute.xlu0 %2017  ;;  %2161 = vrot.lane.b32.xlu0 %v6415_v31, %s4739_s21 }
 0x402   :  { %2163 = vrot.lane.b32.xlu1 %v6419_v24, %s4739_s21  ;;  %v2014_v2 = vpop.permute.xlu1 %2013 }
 0x403   :  { %v2043_v40 = vsel %vm172_vm0, %v2012_v10, %v2014_v2 }
 0x404   :  { %v6427_v61 = vmax.f32 %v6275_v21, %v2043_v40  ;;  %v2022_v51 = vpop.permute.xlu0 %2021 }
 0x406   :  { %2165 = vrot.lane.b32.xlu1 %v6427_v61, %s4739_s21  ;;  %v2020_v53 = vpop.permute.xlu1 %2019 }
 0x407   :  { %v2045_v6 = vsel %vm172_vm0, %v2018_v37, %v2020_v53  ;;  %v2046_v38 = vsel %vm172_vm0, %v2020_v53, %v2022_v51 }
 0x408   :  { %v6434_v43 = vmax.f32 %v6285_v3, %v2045_v6  ;;  %v6437_v25 = vmax.f32 %v6307_v45, %v2046_v38  ;;  %v2024_v48 = vpop.permute.xlu0 %2023 }
 0x409   :  { %v2047_v4 = vsel %vm172_vm0, %v2022_v51, %v2024_v48 }
 0x40a   :  { %2175 = vrot.lane.b32.xlu1 %v6437_v25, %s4739_s21  ;;  %2173 = vrot.lane.b32.xlu0 %v6434_v43, %s4739_s21  ;;  %v2028_v21 = vpop.permute.xlu1 %2027  ;;  %v6445_v57 = vmax.f32 %v6298_v1, %v2047_v4 }
 0x40c   :  { %v2030_v9 = vpop.permute.xlu0 %2029 }
 0x40d   :  { %v2049_v3 = vsel %vm172_vm0, %v2028_v21, %v2030_v9 }
 0x40e   :  { %v6449_v47 = vmax.f32 %v6322_v32, %v2049_v3  ;;  %2177 = vrot.lane.b32.xlu1 %v6445_v57, %s4739_s21  ;;  %v2032_v45 = vpop.permute.xlu1 %2031 }
 0x40f   :  { %v2050_v34 = vsel %vm172_vm0, %v2030_v9, %v2032_v45 }
 0x410   :  { %v6455_v36 = vmax.f32 %v6329_v5, %v2050_v34  ;;  %v6457_v17 = vpop.permute.xlu0 %2005  ;;  %2185 = vrot.lane.b32.xlu0 %v6449_v47, %s4739_s21  ;;  %v4750_v34 = vmov 0.0  }
 0x411   :  { %v2040_v1 = vsel %vm172_vm0, %v2004_v41, %v6457_v17  ;;  %2738 = vst [vmem:[#allocation7] sm:$0xff] %v4750_v34  ;;  %2739 = vst.msk [vmem:[#allocation7 + $0x8] sm:$0xff] %vm354_vm2, %v4750_v34  ;;  %2633 = vmatprep.subr.mxu1 %v4750_v34  ;;  %2901 = vmatprep.mubr.f32.mxu0 %v4750_v34 }
 0x412   :  { %v6464_v32 = vmax.f32 %v6252_v26, %v2040_v1  ;;  %2187 = vrot.lane.b32.xlu1 %v6455_v36, %s4739_s21  ;;  %v2034_v62 = vpop.permute.xlu1 %2033  ;;  %2740 = vst [vmem:[#allocation7 + $0x10] sm:$0xff] %v4750_v34  ;;  %2741 = vst.msk [vmem:[#allocation7 + $0x18] sm:$0xff] %vm354_vm2, %v4750_v34  ;;  %v2605_v1 = vld [vmem:[%s7263_s7 + $0x70] sm:$0xff] }
 0x413   :  { %v2051_v15 = vsel %vm172_vm0, %v2032_v45, %v2034_v62  ;;  %2742 = vst [vmem:[#allocation7 + $0x20] sm:$0xff] %v4750_v34  ;;  %2743 = vst.msk [vmem:[#allocation7 + $0x28] sm:$0xff] %vm354_vm2, %v4750_v34 }
 0x414   :  { %v6470_v5 = vmax.f32 %v6332_v13, %v2051_v15  ;;  %v2098_v16 = vpop.permute.xlu0 %2097  ;;  %2155 = vrot.lane.b32.xlu0 %v6464_v32, %s4739_s21  ;;  %2744 = vst [vmem:[#allocation7 + $0x30] sm:$0xff] %v4750_v34  ;;  %2745 = vst.msk [vmem:[#allocation7 + $0x38] sm:$0xff] %vm354_vm2, %v4750_v34 }
 0x415   :  { %v2105_v63 = vsel %vm172_vm0, %v6457_v17, %v2098_v16  ;;  %v2118_v13 = vmax.f32 %v6353_v39, %v2098_v16  ;;  %3683 = vst.msk [vmem:[#allocation8] sm:$0xff] %vm354_vm2, %v4750_v34  ;;  %3684 = vst.msk [vmem:[#allocation8 + $0x8] sm:$0xff] %vm354_vm2, %v4750_v34 }
 0x416   :  { %v2117_v8 = vmax.f32 %v6339_v56, %v2105_v63  ;;  %2189 = vrot.lane.b32.xlu1 %v6470_v5, %s4739_s21  ;;  %v6479_v26 = vpop.permute.xlu1 %2015  ;;  %3685 = vst.msk [vmem:[#allocation8 + $0x10] sm:$0xff] %vm354_vm2, %v4750_v34  ;;  %3686 = vst.msk [vmem:[#allocation8 + $0x18] sm:$0xff] %vm354_vm2, %v4750_v34  ;;  %v2603_v63 = vld [vmem:[%s7263_s7 + $0x60] sm:$0xff] }
 0x417   :  { %v2044_v49 = vsel %vm172_vm0, %v2014_v2, %v6479_v26 }
 0x418   :  { %v2100_v19 = vpop.permute.xlu0 %2099  ;;  %2157 = vrot.lane.b32.xlu0 %v2117_v8, %s4739_s21  ;;  %v6486_v54 = vmax.f32 %v6288_v23, %v2044_v49  ;;  %v2601_v49 = vld [vmem:[%s7263_s7 + $0x50] sm:$0xff] }
 0x419   :  { %v2106_v14 = vsel %vm172_vm0, %v6479_v26, %v2100_v19  ;;  %v2120_v0 = vmax.f32 %v6366_v33, %v2100_v19 }
 0x41a   :  { %2159 = vrot.lane.b32.xlu1 %v2118_v13, %s4739_s21  ;;  %v2102_v50 = vpop.permute.xlu1 %2101  ;;  %v2119_v39 = vmax.f32 %v6360_v60, %v2106_v14  ;;  %v2600_v14 = vld [vmem:[%s7263_s7 + $0x48] sm:$0xff] }
 0x41b   :  { %v2122_v27 = vmax.f32 %v6372_v58, %v2102_v50 }
 0x41c   :  { %v6492_v12 = vpop.permute.xlu0 %2025  ;;  %2167 = vrot.lane.b32.xlu0 %v6486_v54, %s4739_s21 }
 0x41d   :  { %v2048_v23 = vsel %vm172_vm0, %v2024_v48, %v6492_v12  ;;  %v2107_v11 = vsel %vm172_vm0, %v6492_v12, %v2102_v50 }
 0x41e   :  { %2171 = vrot.lane.b32.xlu1 %v2120_v0, %s4739_s21  ;;  %v6498_v41 = vpop.permute.xlu1 %2035  ;;  %v6507_v22 = vmax.f32 %v6312_v7, %v2048_v23  ;;  %v2121_v58 = vmax.f32 %v6378_v30, %v2107_v11  ;;  %v2599_v23 = vld [vmem:[%s7263_s7 + $0x40] sm:$0xff] }
 0x41f   :  { %v2052_v33 = vsel %vm172_vm0, %v2034_v62, %v6498_v41  ;;  %v2604_v62 = vld [vmem:[%s7263_s7 + $0x68] sm:$0xff] }
 0x420   :  { %2169 = vrot.lane.b32.xlu0 %v2119_v39, %s4739_s21  ;;  %v6513_v20 = vmax.f32 %v6347_v28, %v2052_v33  ;;  %v2104_v10 = vpop.permute.xlu0 %2103  ;;  %v2596_v33 = vld [vmem:[%s7263_s7 + $0x28] sm:$0xff] }
 0x421   :  { %v2124_v7 = vmax.f32 %v6390_v42, %v2104_v10  ;;  %v2108_v29 = vsel %vm172_vm0, %v6498_v41, %v2104_v10 }
 0x422   :  { %2183 = vrot.lane.b32.xlu1 %v2122_v27, %s4739_s21  ;;  %v2123_v28 = vmax.f32 %v6384_v46, %v2108_v29  ;;  %v2150_v37 = vpop.permute.xlu1 %2149  ;;  %v2598_v27 = vld [vmem:[%s7263_s7 + $0x38] sm:$0xff] }
 0x424   :  { %2179 = vrot.lane.b32.xlu0 %v6507_v22, %s4739_s21 }
 0x426   :  { %2191 = vrot.lane.b32.xlu1 %v6513_v20, %s4739_s21 }
 0x428   :  { %2181 = vrot.lane.b32.xlu0 %v2121_v58, %s4739_s21  ;;  %v2595_v58 = vld [vmem:[%s7263_s7 + $0x20] sm:$0xff] }
 0x42c   :  { %2195 = vrot.lane.b32.xlu0 %v2124_v7, %s4739_s21  ;;  %v2594_v7 = vld [vmem:[%s7263_s7 + $0x18] sm:$0xff] }
 0x430   :  { %2193 = vrot.lane.b32.xlu0 %v2123_v28, %s4739_s21  ;;  %v2593_v28 = vld [vmem:[%s7263_s7 + $0x10] sm:$0xff] }
 0x46c   :  { %v2152_v2 = vpop.permute.xlu0 %2151 }
 0x46d   :  { %v2197_v40 = vsel %vm354_vm2, %v2150_v37, %v2152_v2  ;;  %v2592_v37 = vld [vmem:[%s7263_s7 + $0x8] sm:$0xff] }
 0x46e   :  { %v2237_v51 = vmax.f32 %v6395_v35, %v2197_v40  ;;  %v6529_v53 = vpop.permute.xlu1 %2153  ;;  %v2591_v40 = vld [vmem:[%s7263_s7] sm:$0xff] }
 0x46f   :  { %v2198_v42 = vsel %vm354_vm2, %v2152_v2, %v6529_v53 }
 0x470   :  { %2278 = vrot.lane.b32.xlu0 %v2237_v51, %s4742_s23  ;;  %2261 = vrot.lane.b32.xlu1 %v2237_v51, %s4739_s21  ;;  %v2238_v35 = vmax.f32 %v6403_v18, %v2198_v42  ;;  %v2607_v42 = vld [vmem:[%s7263_s7 + $0x80] sm:$0xff] }
 0x472   :  { %v2162_v6 = vpop.permute.xlu0 %2161 }
 0x474   :  { %2316 = vrot.lane.b32.xlu0 %v2237_v51, %s4745_s5  ;;  %2295 = vrot.lane.b32.xlu1 %v2237_v51, %s4746_s0  ;;  %v2164_v38 = vpop.permute.xlu1 %2163 }
 0x475   :  { %v2202_v48 = vsel %vm354_vm2, %v2162_v6, %v2164_v38 }
 0x476   :  { %v2242_v4 = vmax.f32 %v6415_v31, %v2202_v48  ;;  %v2606_v31 = vld [vmem:[%s7263_s7 + $0x78] sm:$0xff] }
 0x477   :  { %2634 = vmatpush1.msra.mxu1 %v2606_v31 }
 0x478   :  { %2318 = vrot.lane.b32.xlu1 %v2238_v35, %s4745_s5  ;;  %2263 = vrot.lane.b32.xlu0 %v2242_v4, %s4739_s21  ;;  %v6542_v21 = vpop.permute.xlu1 %2165 }
 0x479   :  { %v2203_v9 = vsel %vm354_vm2, %v2164_v38, %v6542_v21  ;;  %2635 = vmatprep.subr.mxu1 %v4750_v34 }
 0x47a   :  { %v2243_v18 = vmax.f32 %v6419_v24, %v2203_v9  ;;  %2636 = vmatpush1.msra.mxu1 %v2605_v1 }
 0x47b   :  { %2637 = vmatprep.subr.mxu1 %v4750_v34 }
 0x47c   :  { %2346 = vrot.lane.b32.xlu1 %v2238_v35, %s4747_s19  ;;  %2280 = vrot.lane.b32.xlu0 %v2242_v4, %s4742_s23  ;;  %v2174_v3 = vpop.permute.xlu0 %2173  ;;  %v2176_v45 = vpop.permute.xlu1 %2175 }
 0x47d   :  { %v2207_v24 = vsel %vm354_vm2, %v2174_v3, %v2176_v45  ;;  %2638 = vmatpush1.msra.mxu1 %v2604_v62 }
 0x47e   :  { %v2247_v15 = vmax.f32 %v6434_v43, %v2207_v24  ;;  %2639 = vmatprep.subr.mxu1 %v4750_v34  ;;  %v2602_v43 = vld [vmem:[%s7263_s7 + $0x58] sm:$0xff] }
 0x47f   :  { %2640 = vmatpush1.msra.mxu1 %v2603_v63 }
 0x480   :  { %2363 = vrot.lane.b32.xlu1 %v2238_v35, %s4748_s24  ;;  %2297 = vrot.lane.b32.xlu0 %v2242_v4, %s4746_s0  ;;  %v6589_v16 = vpop.permute.xlu1 %2177 }
 0x481   :  { %2641 = vmatprep.subr.mxu1 %v4750_v34  ;;  %v2208_v19 = vsel %vm354_vm2, %v2176_v45, %v6589_v16  ;;  %v2082_v45 = vmax.f32 %v6360_v60, %v6479_v26 }
 0x482   :  { %2642 = vmatpush1.msra.mxu1 %v2602_v43  ;;  %v2186_v13 = vpop.permute.xlu0 %2185  ;;  %v2248_v0 = vmax.f32 %v6437_v25, %v2208_v19  ;;  %v2597_v25 = vld [vmem:[%s7263_s7 + $0x30] sm:$0xff] }
 0x483   :  { %2643 = vmatprep.subr.mxu1 %v4750_v34 }
 0x484   :  { %2380 = vrot.lane.b32.xlu1 %v2238_v35, %s4749_s28  ;;  %2322 = vrot.lane.b32.xlu0 %v2243_v18, %s4745_s5  ;;  %v2188_v8 = vpop.permute.xlu1 %2187  ;;  %v2077_v35 = vmax.f32 %v6339_v56, %v6457_v17 }
 0x485   :  { %v2212_v50 = vsel %vm354_vm2, %v2186_v13, %v2188_v8  ;;  %2644 = vmatpush1.msra.mxu1 %v2601_v49 }
 0x486   :  { %2645 = vmatprep.subr.mxu1 %v4750_v34  ;;  %v2252_v39 = vmax.f32 %v6449_v47, %v2212_v50  ;;  %v2156_v29 = vpop.permute.xlu0 %2155 }
 0x487   :  { %2646 = vmatpush1.msra.mxu1 %v2600_v14 }
 0x488   :  { %2320 = vrot.lane.b32.xlu1 %v2242_v4, %s4745_s5  ;;  %2348 = vrot.lane.b32.xlu0 %v2243_v18, %s4747_s19  ;;  %v6632_v47 = vpop.permute.xlu1 %2189 }
 0x489   :  { %2647 = vmatprep.subr.mxu1 %v4750_v34  ;;  %v2213_v11 = vsel %vm354_vm2, %v2188_v8, %v6632_v47 }
 0x48a   :  { %2648 = vmatpush1.msra.mxu1 %v2599_v23  ;;  %v2253_v10 = vmax.f32 %v6455_v36, %v2213_v11  ;;  %v2199_v36 = vsel %vm354_vm2, %v6529_v53, %v2156_v29  ;;  %v2158_v51 = vpop.permute.xlu0 %2157 }
 0x48b   :  { %2649 = vmatprep.subr.mxu1 %v4750_v34  ;;  %v2239_v2 = vmax.f32 %v6407_v44, %v2199_v36  ;;  %v2608_v44 = vld [vmem:[%s7263_s7 + $0x88] sm:$0xff]  ;;  %v2200_v53 = vsel %vm354_vm2, %v2156_v29, %v2158_v51  ;;  %s4755_s7 = smov 6  }
 0x48c   :  { %2365 = vrot.lane.b32.xlu0 %v2243_v18, %s4748_s24  ;;  %2265 = vrot.lane.b32.xlu1 %v2247_v15, %s4739_s21  ;;  %v2240_v6 = vmax.f32 %v6464_v32, %v2200_v53  ;;  %v2160_v38 = vpop.permute.xlu1 %2159 }
 0x48d   :  { %2650 = vmatpush1.msra.mxu1 %v2598_v27  ;;  %v2201_v48 = vsel %vm354_vm2, %v2158_v51, %v2160_v38 }
 0x48e   :  { %2651 = vmatprep.subr.mxu1 %v4750_v34  ;;  %v2241_v32 = vmax.f32 %v2077_v35, %v2201_v48  ;;  %v2168_v4 = vpop.permute.xlu0 %2167 }
 0x48f   :  { %2652 = vmatpush1.msra.mxu1 %v2597_v25  ;;  %v2204_v9 = vsel %vm354_vm2, %v6542_v21, %v2168_v4 }
 0x490   :  { %2382 = vrot.lane.b32.xlu0 %v2243_v18, %s4749_s28  ;;  %2282 = vrot.lane.b32.xlu1 %v2247_v15, %s4742_s23  ;;  %v2244_v56 = vmax.f32 %v6427_v61, %v2204_v9  ;;  %v2172_v21 = vpop.permute.xlu1 %2171 }
 0x491   :  { %2653 = vmatprep.subr.mxu1 %v4750_v34 }
 0x492   :  { %2654 = vmatpush1.msra.mxu1 %v2596_v33  ;;  %v2170_v18 = vpop.permute.xlu0 %2169 }
 0x493   :  { %2655 = vmatprep.subr.mxu1 %v4750_v34  ;;  %v2205_v17 = vsel %vm354_vm2, %v2168_v4, %v2170_v18  ;;  %v2206_v3 = vsel %vm354_vm2, %v2170_v18, %v2172_v21 }
 0x494   :  { %2324 = vrot.lane.b32.xlu0 %v2247_v15, %s4745_s5  ;;  %2299 = vrot.lane.b32.xlu1 %v2247_v15, %s4746_s0  ;;  %v2245_v31 = vmax.f32 %v6486_v54, %v2205_v17  ;;  %v2246_v61 = vmax.f32 %v2082_v45, %v2206_v3  ;;  %v2184_v62 = vpop.permute.xlu1 %2183 }
 0x495   :  { %2656 = vmatpush1.msra.mxu1 %v2595_v58 }
 0x496   :  { %2657 = vmatprep.subr.mxu1 %v4750_v34  ;;  %v2180_v24 = vpop.permute.xlu0 %2179 }
 0x497   :  { %2658 = vmatpush1.msra.mxu1 %v2594_v7  ;;  %v2209_v1 = vsel %vm354_vm2, %v6589_v16, %v2180_v24 }
 0x498   :  { %2326 = vrot.lane.b32.xlu1 %v2248_v0, %s4745_s5  ;;  %2267 = vrot.lane.b32.xlu0 %v2252_v39, %s4739_s21  ;;  %v2249_v60 = vmax.f32 %v6445_v57, %v2209_v1  ;;  %v2192_v16 = vpop.permute.xlu1 %2191  ;;  %v2087_v57 = vmax.f32 %v6378_v30, %v6492_v12 }
 0x499   :  { %2659 = vmatprep.subr.mxu1 %v4750_v34  ;;  %v2214_v12 = vsel %vm354_vm2, %v6632_v47, %v2192_v16 }
 0x49a   :  { %2660 = vmatpush1.msra.mxu1 %v2593_v28  ;;  %v2182_v54 = vpop.permute.xlu0 %2181  ;;  %v2254_v50 = vmax.f32 %v6470_v5, %v2214_v12 }
 0x49b   :  { %2661 = vmatprep.subr.mxu1 %v4750_v34  ;;  %v2210_v26 = vsel %vm354_vm2, %v2180_v24, %v2182_v54  ;;  %v2211_v8 = vsel %vm354_vm2, %v2182_v54, %v2184_v62 }
 0x49c   :  { %2350 = vrot.lane.b32.xlu1 %v2248_v0, %s4747_s19  ;;  %2284 = vrot.lane.b32.xlu0 %v2252_v39, %s4742_s23  ;;  %v2250_v63 = vmax.f32 %v6507_v22, %v2210_v26  ;;  %v2251_v49 = vmax.f32 %v2087_v57, %v2211_v8 }
 0x49d   :  { %2662 = vmatpush1.msra.mxu1 %v2592_v37 }
 0x49e   :  { %2663 = vmatprep.subr.mxu1 %v4750_v34  ;;  %v2196_v15 = vpop.permute.xlu0 %2195 }
 0x49f   :  { %2664 = vmatpush1.msra.mxu1 %v2591_v40 }
 0x4a0   :  { %2367 = vrot.lane.b32.xlu1 %v2248_v0, %s4748_s24  ;;  %2301 = vrot.lane.b32.xlu0 %v2252_v39, %s4746_s0  ;;  %s4756_s0 = smov 98  }
 0x4a1   :  { %2693 = vmatprep.subr.mxu1 %v4750_v34 }
 0x4a2   :  { %2694 = vmatpush2.msra.mxu1 %v2608_v44  ;;  %v2194_v43 = vpop.permute.xlu0 %2193 }
 0x4a3   :  { %2695 = vmatprep.subr.mxu1 %v4750_v34  ;;  %v2216_v11 = vsel %vm354_vm2, %v2194_v43, %v2196_v15 }
 0x4a4   :  { %2384 = vrot.lane.b32.xlu1 %v2248_v0, %s4749_s28  ;;  %2330 = vrot.lane.b32.xlu0 %v2253_v10, %s4745_s5 }
 0x4a5   :  { %2696 = vmatpush2.msra.mxu1 %v2607_v42 }
 0x4a8   :  { %2328 = vrot.lane.b32.xlu1 %v2252_v39, %s4745_s5  ;;  %2386 = vrot.lane.b32.xlu0 %v2253_v10, %s4749_s28  ;;  %s4751_s5 = smov 112   ;;  %v2215_v39 = vsel %vm354_vm2, %v2192_v16, %v2194_v43  ;;  %s4765_s28 = smov 120  }
 0x4a9   :  { %v2255_v27 = vmax.f32 %v6513_v20, %v2215_v39  ;;  %v2092_v20 = vmax.f32 %v6384_v46, %v6498_v41 }
 0x4ab   :  { %v2256_v58 = vmax.f32 %v2092_v20, %v2216_v11 }
 0x4ac   :  { %2352 = vrot.lane.b32.xlu1 %v2253_v10, %s4747_s19  ;;  %2401 = vrot.lane.b32.xlu0 %v2239_v2, %s4751_s5 }
 0x4b0   :  { %2369 = vrot.lane.b32.xlu1 %v2253_v10, %s4748_s24  ;;  %2422 = vrot.lane.b32.xlu0 %v2239_v2, %s4752_s3  ;;  %s4754_s24 = smov 116  }
 0x4b4   :  { %2442 = vrot.lane.b32.xlu1 %v2239_v2, %s4753_s25  ;;  %2444 = vrot.lane.b32.xlu0 %v2240_v6, %s4753_s25 }
 0x4b8   :  { %2487 = vrot.lane.b32.xlu1 %v2240_v6, %s4754_s24  ;;  %2471 = vrot.lane.b32.xlu0 %v2240_v6, %s4755_s7 }
 0x4bc   :  { %2503 = vrot.lane.b32.xlu1 %v2240_v6, %s4756_s0  ;;  %2523 = vrot.lane.b32.xlu0 %v2241_v32, %s4757_s26 }
 0x4c0   :  { %2555 = vrot.lane.b32.xlu1 %v2241_v32, %s4758_s29  ;;  %2539 = vrot.lane.b32.xlu0 %v2241_v32, %s4759_s4 }
 0x4c4   :  { %2403 = vrot.lane.b32.xlu1 %v2244_v56, %s4751_s5  ;;  %2424 = vrot.lane.b32.xlu0 %v2244_v56, %s4752_s3 }
 0x4c8   :  { %2446 = vrot.lane.b32.xlu1 %v2244_v56, %s4753_s25  ;;  %2448 = vrot.lane.b32.xlu0 %v2245_v31, %s4753_s25 }
 0x4cc   :  { %2473 = vrot.lane.b32.xlu1 %v2245_v31, %s4755_s7  ;;  %2489 = vrot.lane.b32.xlu0 %v2245_v31, %s4754_s24 }
 0x4d0   :  { %2505 = vrot.lane.b32.xlu0 %v2245_v31, %s4756_s0  ;;  %2525 = vrot.lane.b32.xlu1 %v2246_v61, %s4757_s26 }
 0x4d4   :  { %2557 = vrot.lane.b32.xlu0 %v2246_v61, %s4758_s29  ;;  %2541 = vrot.lane.b32.xlu1 %v2246_v61, %s4759_s4 }
 0x4d8   :  { %2405 = vrot.lane.b32.xlu0 %v2249_v60, %s4751_s5  ;;  %2426 = vrot.lane.b32.xlu1 %v2249_v60, %s4752_s3 }
 0x4dc   :  { %2450 = vrot.lane.b32.xlu0 %v2249_v60, %s4753_s25  ;;  %2452 = vrot.lane.b32.xlu1 %v2250_v63, %s4753_s25 }
 0x4e0   :  { %2475 = vrot.lane.b32.xlu0 %v2250_v63, %s4755_s7  ;;  %2491 = vrot.lane.b32.xlu1 %v2250_v63, %s4754_s24 }
 0x4e2   :  { %v2279_v13 = vpop.permute.xlu0 %2278  ;;  %v2262_v22 = vpop.permute.xlu1 %2261 }
 0x4e3   :  { %2274 = vst.msk [vmem:[#allocation5] sm:$0xff] %vm2273_vm10, %v2262_v22 }
 0x4e4   :  { %2507 = vrot.lane.b32.xlu1 %v2250_v63, %s4756_s0  ;;  %2527 = vrot.lane.b32.xlu0 %v2251_v49, %s4757_s26  ;;  %2291 = vst.msk [vmem:[#allocation5] sm:$0xff] %vm2290_vm11, %v2279_v13 }
 0x4e6   :  { %v2317_v19 = vpop.permute.xlu0 %2316  ;;  %v2296_v30 = vpop.permute.xlu1 %2295 }
 0x4e7   :  { %2308 = vst.msk [vmem:[#allocation5] sm:$0xff] %vm2307_vm12, %v2296_v30 }
 0x4e8   :  { %2559 = vrot.lane.b32.xlu1 %v2251_v49, %s4758_s29  ;;  %2543 = vrot.lane.b32.xlu0 %v2251_v49, %s4759_s4 }
 0x4ea   :  { %v2264_v14 = vpop.permute.xlu0 %2263  ;;  %v2319_v0 = vpop.permute.xlu1 %2318 }
 0x4eb   :  { %2275 = vst.msk [vmem:[#allocation5 + $0x10] sm:$0xff] %vm2273_vm10, %v2264_v14  ;;  %v2333_v23 = vsel %vm2332_vm13, %v2317_v19, %v2319_v0 }
 0x4ec   :  { %2428 = vrot.lane.b32.xlu0 %v2254_v50, %s4752_s3  ;;  %2407 = vrot.lane.b32.xlu1 %v2254_v50, %s4751_s5  ;;  %2342 = vst.msk [vmem:[#allocation5] sm:$0xff] %vm2341_vm14, %v2333_v23  ;;  %s4764_s5 = smov 118  }
 0x4ee   :  { %v2281_v25 = vpop.permute.xlu0 %2280  ;;  %v2347_v47 = vpop.permute.xlu1 %2346 }
 0x4ef   :  { %2292 = vst.msk [vmem:[#allocation5 + $0x10] sm:$0xff] %vm2290_vm11, %v2281_v25 }
 0x4f0   :  { %2359 = vst.msk [vmem:[#allocation5] sm:$0xff] %vm2358_vm15, %v2347_v47  ;;  %2456 = vrot.lane.b32.xlu0 %v2255_v27, %s4753_s25  ;;  %2454 = vrot.lane.b32.xlu1 %v2254_v50, %s4753_s25 }
 0x4f2   :  { %v2298_v5 = vpop.permute.xlu0 %2297  ;;  %v2364_v33 = vpop.permute.xlu1 %2363 }
 0x4f3   :  { %2309 = vst.msk [vmem:[#allocation5 + $0x10] sm:$0xff] %vm2307_vm12, %v2298_v5 }
 0x4f4   :  { %2376 = vst.msk [vmem:[#allocation5] sm:$0xff] %vm2375_vm1, %v2364_v33  ;;  %2493 = vrot.lane.b32.xlu0 %v2255_v27, %s4754_s24  ;;  %2477 = vrot.lane.b32.xlu1 %v2255_v27, %s4755_s7 }
 0x4f6   :  { %v2323_v10 = vpop.permute.xlu0 %2322  ;;  %v2381_v7 = vpop.permute.xlu1 %2380 }
 0x4f7   :  { %2393 = vst.msk [vmem:[#allocation5] sm:$0xff] %vm2392_vm5, %v2381_v7 }
 0x4f8   :  { %2529 = vrot.lane.b32.xlu0 %v2256_v58, %s4757_s26  ;;  %2509 = vrot.lane.b32.xlu1 %v2255_v27, %s4756_s0  ;;  %s4774_s26 = smov 102  }
 0x4fa   :  { %v2349_v29 = vpop.permute.xlu0 %2348  ;;  %v2321_v28 = vpop.permute.xlu1 %2320 }
 0x4fb   :  { %v2334_v36 = vsel %vm2332_vm13, %v2321_v28, %v2323_v10 }
 0x4fc   :  { %2343 = vst.msk [vmem:[#allocation5 + $0x10] sm:$0xff] %vm2341_vm14, %v2334_v36  ;;  %2561 = vrot.lane.b32.xlu0 %v2256_v58, %s4758_s29  ;;  %2545 = vrot.lane.b32.xlu1 %v2256_v58, %s4759_s4  ;;  %s7355_s29 = sld [smem:[#allocation28_spill]]  ;;  %s4762_s4 = smov 99  }
 0x4fd   :  { %2360 = vst.msk [vmem:[#allocation5 + $0x10] sm:$0xff] %vm2358_vm15, %v2349_v29 }
 0x4fe   :  { %v2366_v46 = vpop.permute.xlu0 %2365  ;;  %v2266_v41 = vpop.permute.xlu1 %2265 }
 0x4ff   :  { %2377 = vst.msk [vmem:[#allocation5 + $0x10] sm:$0xff] %vm2375_vm1, %v2366_v46 }
 0x500   :  { %2276 = vst.msk [vmem:[#allocation5 + $0x20] sm:$0xff] %vm2273_vm10, %v2266_v41 }
 0x502   :  { %v2383_v37 = vpop.permute.xlu0 %2382  ;;  %v2283_v2 = vpop.permute.xlu1 %2282 }
 0x503   :  { %2394 = vst.msk [vmem:[#allocation5 + $0x10] sm:$0xff] %vm2392_vm5, %v2383_v37 }
 0x504   :  { %2293 = vst.msk [vmem:[#allocation5 + $0x20] sm:$0xff] %vm2290_vm11, %v2283_v2 }
 0x506   :  { %v2325_v40 = vpop.permute.xlu0 %2324  ;;  %v2300_v51 = vpop.permute.xlu1 %2299 }
 0x507   :  { %2310 = vst.msk [vmem:[#allocation5 + $0x20] sm:$0xff] %vm2307_vm12, %v2300_v51 }
 0x50a   :  { %v2268_v44 = vpop.permute.xlu0 %2267  ;;  %v2327_v53 = vpop.permute.xlu1 %2326 }
 0x50b   :  { %2277 = vst.msk [vmem:[#allocation5 + $0x30] sm:$0xff] %vm2273_vm10, %v2268_v44  ;;  %v2335_v42 = vsel %vm2332_vm13, %v2325_v40, %v2327_v53 }
 0x50c   :  { %2344 = vst.msk [vmem:[#allocation5 + $0x20] sm:$0xff] %vm2341_vm14, %v2335_v42 }
 0x50e   :  { %v2285_v6 = vpop.permute.xlu0 %2284  ;;  %v2351_v38 = vpop.permute.xlu1 %2350 }
 0x50f   :  { %2294 = vst.msk [vmem:[#allocation5 + $0x30] sm:$0xff] %vm2290_vm11, %v2285_v6 }
 0x510   :  { %2361 = vst.msk [vmem:[#allocation5 + $0x20] sm:$0xff] %vm2358_vm15, %v2351_v38 }
 0x512   :  { %v2302_v48 = vpop.permute.xlu0 %2301  ;;  %v2368_v35 = vpop.permute.xlu1 %2367 }
 0x513   :  { %2311 = vst.msk [vmem:[#allocation5 + $0x30] sm:$0xff] %vm2307_vm12, %v2302_v48 }
 0x514   :  { %2378 = vst.msk [vmem:[#allocation5 + $0x20] sm:$0xff] %vm2375_vm1, %v2368_v35 }
 0x516   :  { %v2331_v32 = vpop.permute.xlu0 %2330  ;;  %v2385_v4 = vpop.permute.xlu1 %2384 }
 0x517   :  { %2395 = vst.msk [vmem:[#allocation5 + $0x20] sm:$0xff] %vm2392_vm5, %v2385_v4 }
 0x51a   :  { %v2387_v9 = vpop.permute.xlu0 %2386  ;;  %v2329_v18 = vpop.permute.xlu1 %2328 }
 0x51b   :  { %v2336_v56 = vsel %vm2332_vm13, %v2329_v18, %v2331_v32  ;;  %vm3057_vm13 = vcmask 809984  }
 0x51c   :  { %2345 = vst.msk [vmem:[#allocation5 + $0x30] sm:$0xff] %vm2341_vm14, %v2336_v56 }
 0x51e   :  { %v2402_v17 = vpop.permute.xlu0 %2401  ;;  %v2353_v31 = vpop.permute.xlu1 %2352 }
 0x51f   :  { %2414 = vst.msk [vmem:[#allocation5] sm:$0xff] %vm2413_vm7, %v2402_v17 }
 0x520   :  { %2415 = vst.msk [vmem:[#allocation5 + $0x8] sm:$0xff] %vm1593_vm9, %v2402_v17 }
 0x521   :  { %2362 = vst.msk [vmem:[#allocation5 + $0x30] sm:$0xff] %vm2358_vm15, %v2353_v31 }
 0x522   :  { %v2423_v21 = vpop.permute.xlu0 %2422  ;;  %v2370_v3 = vpop.permute.xlu1 %2369 }
 0x523   :  { %2434 = vst.msk [vmem:[#allocation5 + $0x40] sm:$0xff] %vm2273_vm10, %v2423_v21 }
 0x524   :  { %2379 = vst.msk [vmem:[#allocation5 + $0x30] sm:$0xff] %vm2375_vm1, %v2370_v3 }
 0x525   :  { %2396 = vst.msk [vmem:[#allocation5 + $0x30] sm:$0xff] %vm2392_vm5, %v2387_v9 }
 0x526   :  { %v2445_v45 = vpop.permute.xlu0 %2444  ;;  %v2443_v24 = vpop.permute.xlu1 %2442  ;;  %v2575_v54 = vld [vmem:[#allocation5] sm:$0xff] }
 0x527   :  { %v2576_v61 = vld [vmem:[#allocation5 + $0x8] sm:$0xff]  ;;  %v2459_v1 = vsel %vm2458_vm8, %v2443_v24, %v2445_v45 }
 0x528   :  { %4452 = vmatprep.mubr.msk.f32.mxu1 %vm1593_vm9, %v2576_v61  ;;  %2467 = vst.msk [vmem:[#allocation5 + $0x40] sm:$0xff] %vm2290_vm11, %v2459_v1 }
 0x529   :  { %2698 = vmatmul.mubr.f32.vlgmr.msra.gmra.mxu1 %v2575_v54 }
 0x52a   :  { %v2472_v60 = vpop.permute.xlu0 %2471  ;;  %v2488_v26 = vpop.permute.xlu1 %2487 }
 0x52b   :  { %2483 = vst.msk [vmem:[#allocation5 + $0x40] sm:$0xff] %vm2307_vm12, %v2472_v60 }
 0x52c   :  { %2499 = vst.msk [vmem:[#allocation5 + $0x40] sm:$0xff] %vm2341_vm14, %v2488_v26 }
 0x52e   :  { %v2524_v62 = vpop.permute.xlu0 %2523  ;;  %v2504_v15 = vpop.permute.xlu1 %2503 }
 0x52f   :  { %2515 = vst.msk [vmem:[#allocation5 + $0x40] sm:$0xff] %vm2358_vm15, %v2504_v15 }
 0x530   :  { %2535 = vst.msk [vmem:[#allocation5 + $0x40] sm:$0xff] %vm2375_vm1, %v2524_v62 }
 0x532   :  { %v2540_v63 = vpop.permute.xlu0 %2539  ;;  %v2556_v16 = vpop.permute.xlu1 %2555 }
 0x533   :  { %2551 = vst.msk [vmem:[#allocation5 + $0x40] sm:$0xff] %vm2392_vm5, %v2540_v63 }
 0x534   :  { %2568 = vst.msk [vmem:[#allocation5 + $0x48] sm:$0xff] %vm1593_vm9, %v2556_v16 }
 0x535   :  { %2567 = vst.msk [vmem:[#allocation5 + $0x40] sm:$0xff] %vm2413_vm7, %v2556_v16 }
 0x536   :  { %v2425_v43 = vpop.permute.xlu0 %2424  ;;  %v2404_v8 = vpop.permute.xlu1 %2403 }
 0x537   :  { %2435 = vst.msk [vmem:[#allocation5 + $0x50] sm:$0xff] %vm2273_vm10, %v2425_v43 }
 0x538   :  { %2416 = vst.msk [vmem:[#allocation5 + $0x10] sm:$0xff] %vm2413_vm7, %v2404_v8 }
 0x539   :  { %2417 = vst.msk [vmem:[#allocation5 + $0x18] sm:$0xff] %vm1593_vm9, %v2404_v8 }
 0x53a   :  { %v2449_v57 = vpop.permute.xlu0 %2448  ;;  %v2447_v49 = vpop.permute.xlu1 %2446 }
 0x53b   :  { %v2460_v13 = vsel %vm2458_vm8, %v2447_v49, %v2449_v57  ;;  %v2584_v42 = vld [vmem:[#allocation5 + $0x48] sm:$0xff]  ;;  %v2802_v49 = vld [vmem:[%s7265_s9] sm:$0xff] }
 0x53c   :  { %2468 = vst.msk [vmem:[#allocation5 + $0x50] sm:$0xff] %vm2290_vm11, %v2460_v13  ;;  %v2583_v48 = vld [vmem:[#allocation5 + $0x40] sm:$0xff]  ;;  %v2803_v13 = vld [vmem:[%s7265_s9 + $0x8] sm:$0xff] }
 0x53e   :  { %v2490_v22 = vpop.permute.xlu0 %2489  ;;  %v2474_v19 = vpop.permute.xlu1 %2473 }
 0x53f   :  { %v2577_v12 = vld [vmem:[#allocation5 + $0x10] sm:$0xff]  ;;  %2484 = vst.msk [vmem:[#allocation5 + $0x50] sm:$0xff] %vm2307_vm12, %v2474_v19 }
 0x540   :  { %v2578_v30 = vld [vmem:[#allocation5 + $0x18] sm:$0xff]  ;;  %2500 = vst.msk [vmem:[#allocation5 + $0x50] sm:$0xff] %vm2341_vm14, %v2490_v22 }
 0x541   :  { %4453 = vmatprep.mubr.msk.f32.mxu1 %vm1593_vm9, %v2578_v30 }
 0x542   :  { %2703 = vmatmul.mubr.f32.gmra.mxu1 %v2577_v12  ;;  %v2506_v50 = vpop.permute.xlu0 %2505  ;;  %v2526_v14 = vpop.permute.xlu1 %2525 }
 0x543   :  { %2516 = vst.msk [vmem:[#allocation5 + $0x50] sm:$0xff] %vm2358_vm15, %v2506_v50 }
 0x544   :  { %2536 = vst.msk [vmem:[#allocation5 + $0x50] sm:$0xff] %vm2375_vm1, %v2526_v14 }
 0x546   :  { %v2558_v0 = vpop.permute.xlu0 %2557  ;;  %v2542_v39 = vpop.permute.xlu1 %2541 }
 0x547   :  { %2570 = vst.msk [vmem:[#allocation5 + $0x58] sm:$0xff] %vm1593_vm9, %v2558_v0 }
 0x548   :  { %2552 = vst.msk [vmem:[#allocation5 + $0x50] sm:$0xff] %vm2392_vm5, %v2542_v39 }
 0x549   :  { %2569 = vst.msk [vmem:[#allocation5 + $0x50] sm:$0xff] %vm2413_vm7, %v2558_v0 }
 0x54a   :  { %v2406_v23 = vpop.permute.xlu0 %2405  ;;  %v2427_v27 = vpop.permute.xlu1 %2426 }
 0x54b   :  { %2418 = vst.msk [vmem:[#allocation5 + $0x20] sm:$0xff] %vm2413_vm7, %v2406_v23 }
 0x54c   :  { %2419 = vst.msk [vmem:[#allocation5 + $0x28] sm:$0xff] %vm1593_vm9, %v2406_v23 }
 0x54d   :  { %2436 = vst.msk [vmem:[#allocation5 + $0x60] sm:$0xff] %vm2273_vm10, %v2427_v27 }
 0x54e   :  { %v2451_v25 = vpop.permute.xlu0 %2450  ;;  %v2453_v47 = vpop.permute.xlu1 %2452  ;;  %v2586_v35 = vld [vmem:[#allocation5 + $0x58] sm:$0xff] }
 0x54f   :  { %v2461_v5 = vsel %vm2458_vm8, %v2451_v25, %v2453_v47 }
 0x550   :  { %2469 = vst.msk [vmem:[#allocation5 + $0x60] sm:$0xff] %vm2290_vm11, %v2461_v5  ;;  %v2585_v9 = vld [vmem:[#allocation5 + $0x50] sm:$0xff] }
 0x552   :  { %v2476_v33 = vpop.permute.xlu0 %2475  ;;  %v2492_v11 = vpop.permute.xlu1 %2491  ;;  %v2579_v58 = vld [vmem:[#allocation5 + $0x20] sm:$0xff] }
 0x553   :  { %v2580_v20 = vld [vmem:[#allocation5 + $0x28] sm:$0xff]  ;;  %2485 = vst.msk [vmem:[#allocation5 + $0x60] sm:$0xff] %vm2307_vm12, %v2476_v33 }
 0x554   :  { %4454 = vmatprep.mubr.msk.f32.mxu1 %vm1593_vm9, %v2580_v20  ;;  %2501 = vst.msk [vmem:[#allocation5 + $0x60] sm:$0xff] %vm2341_vm14, %v2492_v11 }
 0x555   :  { %2708 = vmatmul.mubr.f32.gmra.mxu1 %v2579_v58  ;;  %v2792_v58 = vld [vmem:[%s7264_s8] sm:$0xff] }
 0x556   :  { %v2528_v10 = vpop.permute.xlu0 %2527  ;;  %v2508_v7 = vpop.permute.xlu1 %2507 }
 0x557   :  { %2517 = vst.msk [vmem:[#allocation5 + $0x60] sm:$0xff] %vm2358_vm15, %v2508_v7  ;;  %v2804_v7 = vld [vmem:[%s7355_s29] sm:$0x3] }
 0x558   :  { %2537 = vst.msk [vmem:[#allocation5 + $0x60] sm:$0xff] %vm2375_vm1, %v2528_v10  ;;  %v2793_v10 = vld [vmem:[%s7264_s8 + $0x8] sm:$0xff]  ;;  %s4763_s8 = smov 100  }
 0x55a   :  { %v2544_v29 = vpop.permute.xlu0 %2543  ;;  %v2560_v28 = vpop.permute.xlu1 %2559 }
 0x55b   :  { %2553 = vst.msk [vmem:[#allocation5 + $0x60] sm:$0xff] %vm2392_vm5, %v2544_v29  ;;  %v7356_v29 = vld [vmem:[#allocation14_spill] sm:$0xff] }
 0x55c   :  { %2572 = vst.msk [vmem:[#allocation5 + $0x68] sm:$0xff] %vm1593_vm9, %v2560_v28 }
 0x55d   :  { %2571 = vst.msk [vmem:[#allocation5 + $0x60] sm:$0xff] %vm2413_vm7, %v2560_v28  ;;  %v2819_v28 = vrot.slane %v2804_v7, %v7356_v29 }
 0x55e   :  { %v2429_v36 = vpop.permute.xlu0 %2428  ;;  %v2408_v46 = vpop.permute.xlu1 %2407 }
 0x55f   :  { %2437 = vst.msk [vmem:[#allocation5 + $0x70] sm:$0xff] %vm2273_vm10, %v2429_v36  ;;  %vm2762_vm10 = vcmask 973976  }
 0x560   :  { %2420 = vst.msk [vmem:[#allocation5 + $0x30] sm:$0xff] %vm2413_vm7, %v2408_v46 }
 0x561   :  { %2421 = vst.msk [vmem:[#allocation5 + $0x38] sm:$0xff] %vm1593_vm9, %v2408_v46  ;;  %v7357_v46 = vld [vmem:[#allocation13_spill] sm:$0xff] }
 0x562   :  { %v2457_v41 = vpop.permute.xlu0 %2456  ;;  %v2455_v37 = vpop.permute.xlu1 %2454 }
 0x563   :  { %v2462_v2 = vsel %vm2458_vm8, %v2455_v37, %v2457_v41  ;;  %v2588_v18 = vld [vmem:[#allocation5 + $0x68] sm:$0xff]  ;;  %v2823_v41 = vrot.slane %v2804_v7, %v7357_v46  ;;  %vm3553_vm8 = vcmask 326656  }
 0x564   :  { %2470 = vst.msk [vmem:[#allocation5 + $0x70] sm:$0xff] %vm2290_vm11, %v2462_v2  ;;  %v2587_v56 = vld [vmem:[#allocation5 + $0x60] sm:$0xff]  ;;  %vm2783_vm11 = vcmask 1048504  }
 0x566   :  { %v2494_v40 = vpop.permute.xlu0 %2493  ;;  %v2478_v51 = vpop.permute.xlu1 %2477 }
 0x567   :  { %v2581_v53 = vld [vmem:[#allocation5 + $0x30] sm:$0xff]  ;;  %2486 = vst.msk [vmem:[#allocation5 + $0x70] sm:$0xff] %vm2307_vm12, %v2478_v51  ;;  %vm2830_vm12 = vcmask 261120  }
 0x568   :  { %v2582_v44 = vld [vmem:[#allocation5 + $0x38] sm:$0xff]  ;;  %2502 = vst.msk [vmem:[#allocation5 + $0x70] sm:$0xff] %vm2341_vm14, %v2494_v40  ;;  %vm3038_vm14 = vcmask 818176  }
 0x569   :  { %4455 = vmatprep.mubr.msk.f32.mxu1 %vm1593_vm9, %v2582_v44 }
 0x56a   :  { %2713 = vmatmul.mubr.f32.gmra.mxu1 %v2581_v53  ;;  %v2530_v6 = vpop.permute.xlu0 %2529  ;;  %v2510_v38 = vpop.permute.xlu1 %2509 }
 0x56b   :  { %4456 = vmatprep.mubr.msk.f32.mxu1 %vm1593_vm9, %v2584_v42  ;;  %2518 = vst.msk [vmem:[#allocation5 + $0x70] sm:$0xff] %vm2358_vm15, %v2510_v38  ;;  %vm2965_vm15 = vcmask 965632  }
 0x56c   :  { %2538 = vst.msk [vmem:[#allocation5 + $0x70] sm:$0xff] %vm2375_vm1, %v2530_v6  ;;  %vm2946_vm1 = vcmask 973824  }
 0x56e   :  { %2718 = vmatmul.mubr.f32.gmra.mxu1 %v2583_v48  ;;  %v2562_v32 = vpop.permute.xlu0 %2561  ;;  %v2546_v4 = vpop.permute.xlu1 %2545 }
 0x56f   :  { %4457 = vmatprep.mubr.msk.f32.mxu1 %vm1593_vm9, %v2586_v35  ;;  %2574 = vst.msk [vmem:[#allocation5 + $0x78] sm:$0xff] %vm1593_vm9, %v2562_v32 }
 0x570   :  { %2554 = vst.msk [vmem:[#allocation5 + $0x70] sm:$0xff] %vm2392_vm5, %v2546_v4  ;;  %v3131_v4 = vld [vmem:[%s7267_s11] sm:$0xff]  ;;  %vm2926_vm5 = vcmask 982016  }
 0x571   :  { %2573 = vst.msk [vmem:[#allocation5 + $0x70] sm:$0xff] %vm2413_vm7, %v2562_v32  ;;  %vm3467_vm7 = vcmask 326896  }
 0x572   :  { %2723 = vmatmul.mubr.f32.gmra.mxu1 %v2585_v9  ;;  %v3133_v9 = vld [vmem:[%s7267_s11 + $0x10] sm:$0xff] }
 0x573   :  { %4458 = vmatprep.mubr.msk.f32.mxu1 %vm1593_vm9, %v2588_v18  ;;  %v3088_v18 = vld [vmem:[%s7266_s10 + $0x8] sm:$0xff] }
 0x576   :  { %2728 = vmatmul.mubr.f32.gmra.mxu1 %v2587_v56  ;;  %v2590_v17 = vld [vmem:[#allocation5 + $0x78] sm:$0xff] }
 0x577   :  { %4459 = vmatprep.mubr.msk.f32.mxu1 %vm1593_vm9, %v2590_v17  ;;  %v3134_v56 = vld [vmem:[%s7267_s11 + $0x18] sm:$0xff]  ;;  %v3132_v17 = vld [vmem:[%s7267_s11 + $0x8] sm:$0xff] }
 0x578   :  { %v2589_v31 = vld [vmem:[#allocation5 + $0x70] sm:$0xff] }
 0x57a   :  { %2733 = vmatmul.mubr.f32.gmra.mxu1 %v2589_v31 }
 0x57b   :  { %4462 = vmatprep.mubr.msk.f32.mxu1 %vm1593_vm9, %v3088_v18 }
 0x5e9   :  { %v2699_v21 = vpop.f32.mrf.mxu1 }
 0x5eb   :  { %v2701_v3 = vpop.f32.mrf.mxu1 }
 0x602   :  { %v2704_v45 = vpop.f32.mrf.mxu1 }
 0x604   :  { %v2706_v24 = vpop.f32.mrf.mxu1 }
 0x615   :  { %v2709_v61 = vpop.f32.mrf.mxu1 }
 0x616   :  { %2754 = vrot.lane.b32.xlu1 %v2709_v61, %s4760_s27 }
 0x617   :  { %v2711_v54 = vpop.f32.mrf.mxu1 }
 0x62a   :  { %v2714_v1 = vpop.f32.mrf.mxu1 }
 0x62b   :  { %2756 = vrot.lane.b32.xlu1 %v2714_v1, %s4760_s27 }
 0x62c   :  { %v2716_v60 = vpop.f32.mrf.mxu1 }
 0x62e   :  { %v2719_v26 = vpop.f32.mrf.mxu1 }
 0x62f   :  { %2752 = vrot.lane.b32.xlu1 %v2704_v45, %s4760_s27 }
 0x630   :  { %v2721_v62 = vpop.f32.mrf.mxu1 }
 0x632   :  { %v2724_v15 = vpop.f32.mrf.mxu1 }
 0x633   :  { %2750 = vrot.lane.b32.xlu1 %v2699_v21, %s4760_s27 }
 0x634   :  { %v2726_v63 = vpop.f32.mrf.mxu1 }
 0x636   :  { %v2729_v16 = vpop.f32.mrf.mxu1 }
 0x637   :  { %2775 = vrot.lane.b32.xlu0 %v2729_v16, %s4761_s30  ;;  %2812 = vperm.xlu1 %4686, %v2803_v13  }
 0x638   :  { %v2731_v43 = vpop.f32.mrf.mxu1 }
 0x63a   :  { %v2734_v8 = vpop.f32.mrf.mxu1 }
 0x63b   :  { %2777 = vrot.lane.b32.xlu0 %v2734_v8, %s4761_s30 }
 0x63c   :  { %v2736_v57 = vpop.f32.mrf.mxu1 }
 0x63f   :  { %2773 = vrot.lane.b32.xlu0 %v2724_v15, %s4761_s30 }
 0x643   :  { %2771 = vrot.lane.b32.xlu0 %v2719_v26, %s4761_s30 }
 0x647   :  { %2807 = vperm.xlu0 %4685, %v2802_v49  }
 0x688   :  { %v2755_v22 = vpop.permute.xlu1 %2754 }
 0x689   :  { %2765 = vst.msk [vmem:[#allocation7 + $0x20] sm:$0xff] %vm2762_vm10, %v2755_v22 }
 0x69d   :  { %v2757_v19 = vpop.permute.xlu1 %2756 }
 0x69e   :  { %2766 = vst.msk [vmem:[#allocation7 + $0x30] sm:$0xff] %vm2762_vm10, %v2757_v19 }
 0x6a1   :  { %v2753_v30 = vpop.permute.xlu1 %2752 }
 0x6a2   :  { %2764 = vst.msk [vmem:[#allocation7 + $0x10] sm:$0xff] %vm2762_vm10, %v2753_v30 }
 0x6a5   :  { %v2751_v12 = vpop.permute.xlu1 %2750 }
 0x6a6   :  { %2763 = vst.msk [vmem:[#allocation7] sm:$0xff] %vm2762_vm10, %v2751_v12  ;;  %vm3703_vm10 = vcmask 449688  }
 0x6a9   :  { %v2776_v50 = vpop.permute.xlu0 %2775 }
 0x6aa   :  { %2788 = vst.msk [vmem:[#allocation7 + $0x20] sm:$0xff] %vm2783_vm11, %v2776_v50 }
 0x6ab   :  { %2789 = vst.msk [vmem:[#allocation7 + $0x28] sm:$0xff] %vm718_vm6, %v2776_v50 }
 0x6ad   :  { %v2778_v14 = vpop.permute.xlu0 %2777 }
 0x6ae   :  { %2790 = vst.msk [vmem:[#allocation7 + $0x30] sm:$0xff] %vm2783_vm11, %v2778_v14 }
 0x6af   :  { %2791 = vst.msk [vmem:[#allocation7 + $0x38] sm:$0xff] %vm718_vm6, %v2778_v14 }
 0x6b1   :  { %v2774_v0 = vpop.permute.xlu0 %2773  ;;  %v2798_v47 = vld [vmem:[#allocation7 + $0x20] sm:$0xff] }
 0x6b2   :  { %2786 = vst.msk [vmem:[#allocation7 + $0x10] sm:$0xff] %vm2783_vm11, %v2774_v0  ;;  %v2799_v25 = vld [vmem:[#allocation7 + $0x28] sm:$0xff]  ;;  %v2813_v53 = vpop.permute.xlu1 %2812 }
 0x6b3   :  { %2787 = vst.msk [vmem:[#allocation7 + $0x18] sm:$0xff] %vm718_vm6, %v2774_v0  ;;  %v2828_v42 = vmul.f32 %v2819_v28, %v2813_v53  ;;  %v2829_v48 = vmul.f32 %v2823_v41, %v2813_v53 }
 0x6b5   :  { %v2772_v39 = vpop.permute.xlu0 %2771  ;;  %v2800_v27 = vld [vmem:[#allocation7 + $0x30] sm:$0xff] }
 0x6b6   :  { %v2801_v23 = vld [vmem:[#allocation7 + $0x38] sm:$0xff]  ;;  %2784 = vst.msk [vmem:[#allocation7] sm:$0xff] %vm2783_vm11, %v2772_v39  ;;  %vm3724_vm11 = vcmask 744888  }
 0x6b7   :  { %2785 = vst.msk [vmem:[#allocation7 + $0x8] sm:$0xff] %vm718_vm6, %v2772_v39  ;;  %2861 = vmatprep.subr.mxu0 %v2801_v23  ;;  %vm2934_vm6 = vcmask 588800  }
 0x6b8   :  { %2862 = vmatpush1.msra.mxu0 %v2800_v27 }
 0x6b9   :  { %2863 = vmatprep.subr.mxu0 %v2799_v25  ;;  %v2796_v33 = vld [vmem:[#allocation7 + $0x10] sm:$0xff] }
 0x6ba   :  { %2864 = vmatpush1.msra.mxu0 %v2798_v47  ;;  %v2797_v5 = vld [vmem:[#allocation7 + $0x18] sm:$0xff] }
 0x6bb   :  { %2865 = vmatprep.subr.mxu0 %v2797_v5 }
 0x6bc   :  { %2866 = vmatpush1.msra.mxu0 %v2796_v33 }
 0x6bd   :  { %v2794_v20 = vld [vmem:[#allocation7] sm:$0xff] }
 0x6be   :  { %v2795_v11 = vld [vmem:[#allocation7 + $0x8] sm:$0xff] }
 0x6bf   :  { %2867 = vmatprep.subr.mxu0 %v2795_v11 }
 0x6c0   :  { %2868 = vmatpush1.msra.mxu0 %v2794_v20 }
 0x6c1   :  { %4460 = vmatmul.mubr.msk.f32.vlgmr.msra.gmra.mxu0 %vm2830_vm12, %v2792_v58 }
 0x6c2   :  { %2907 = vmatprep.mubr.f32.mxu0 %v4750_v34  ;;  %v2808_v36 = vpop.permute.xlu0 %2807 }
 0x6c3   :  { %v2826_v37 = vmul.f32 %v2819_v28, %v2808_v36  ;;  %v2827_v51 = vmul.f32 %v2823_v41, %v2808_v36 }
 0x6c5   :  { %4461 = vmatmul.mubr.msk.f32.gmra.mxu0 %vm2830_vm12, %v2793_v10 }
 0x781   :  { %v2903_v2 = vpop.f32.mrf.mxu0 }
 0x782   :  { %v2904_v40 = vadd.f32 %v2903_v2, %v2826_v37 }
 0x783   :  { %v2905_v34 = vpop.f32.mrf.mxu0 }
 0x784   :  { %v2906_v44 = vadd.f32 %v2905_v34, %v2827_v51  ;;  %3049 = vrot.lane.b32.xlu0 %v2904_v40, %s4762_s4 }
 0x785   :  { %v2909_v6 = vpop.f32.mrf.mxu0 }
 0x786   :  { %3051 = vrot.lane.b32.xlu1 %v2906_v44, %s4762_s4  ;;  %v2910_v38 = vadd.f32 %v2909_v6, %v2828_v42 }
 0x787   :  { %v2911_v35 = vpop.f32.mrf.mxu0 }
 0x788   :  { %3030 = vrot.lane.b32.xlu0 %v2904_v40, %s4763_s8  ;;  %v2912_v32 = vadd.f32 %v2911_v35, %v2829_v48 }
 0x78a   :  { %3032 = vrot.lane.b32.xlu1 %v2906_v44, %s4763_s8 }
 0x78c   :  { %3012 = vrot.lane.b32.xlu0 %v2904_v40, %s4741_s2 }
 0x78e   :  { %3014 = vrot.lane.b32.xlu1 %v2906_v44, %s4741_s2 }
 0x790   :  { %2994 = vrot.lane.b32.xlu0 %v2904_v40, %s4740_s22 }
 0x792   :  { %2996 = vrot.lane.b32.xlu1 %v2906_v44, %s4740_s22 }
 0x794   :  { %2976 = vrot.lane.b32.xlu0 %v2904_v40, %s4739_s21 }
 0x796   :  { %2978 = vrot.lane.b32.xlu1 %v2906_v44, %s4739_s21 }
 0x798   :  { %2957 = vrot.lane.b32.xlu0 %v2904_v40, %s4764_s5 }
 0x79a   :  { %2959 = vrot.lane.b32.xlu1 %v2906_v44, %s4764_s5 }
 0x79c   :  { %2938 = vrot.lane.b32.xlu0 %v2904_v40, %s4761_s30 }
 0x79e   :  { %2940 = vrot.lane.b32.xlu1 %v2906_v44, %s4761_s30 }
 0x7a0   :  { %2918 = vrot.lane.b32.xlu0 %v2904_v40, %s4765_s28 }
 0x7a2   :  { %2920 = vrot.lane.b32.xlu1 %v2906_v44, %s4765_s28 }
 0x7a4   :  { %3034 = vrot.lane.b32.xlu0 %v2910_v38, %s4763_s8 }
 0x7a6   :  { %3053 = vrot.lane.b32.xlu1 %v2910_v38, %s4762_s4 }
 0x7a8   :  { %3016 = vrot.lane.b32.xlu0 %v2910_v38, %s4741_s2 }
 0x7aa   :  { %3055 = vrot.lane.b32.xlu1 %v2912_v32, %s4762_s4 }
 0x7ac   :  { %2998 = vrot.lane.b32.xlu0 %v2910_v38, %s4740_s22 }
 0x7ae   :  { %3036 = vrot.lane.b32.xlu1 %v2912_v32, %s4763_s8 }
 0x7b0   :  { %2980 = vrot.lane.b32.xlu0 %v2910_v38, %s4739_s21 }
 0x7b2   :  { %3018 = vrot.lane.b32.xlu1 %v2912_v32, %s4741_s2 }
 0x7b4   :  { %2961 = vrot.lane.b32.xlu0 %v2910_v38, %s4764_s5 }
 0x7b6   :  { %3000 = vrot.lane.b32.xlu1 %v2912_v32, %s4740_s22 }
 0x7b8   :  { %2942 = vrot.lane.b32.xlu0 %v2910_v38, %s4761_s30 }
 0x7ba   :  { %2982 = vrot.lane.b32.xlu1 %v2912_v32, %s4739_s21 }
 0x7bc   :  { %2922 = vrot.lane.b32.xlu0 %v2910_v38, %s4765_s28 }
 0x7be   :  { %2963 = vrot.lane.b32.xlu1 %v2912_v32, %s4764_s5 }
 0x7c0   :  { %3072 = vrot.lane.b32.xlu0 %v2910_v38, %s4756_s0 }
 0x7c2   :  { %2944 = vrot.lane.b32.xlu1 %v2912_v32, %s4761_s30 }
 0x7c4   :  { %3068 = vrot.lane.b32.xlu0 %v2904_v40, %s4756_s0 }
 0x7c6   :  { %2924 = vrot.lane.b32.xlu1 %v2912_v32, %s4765_s28  ;;  %s4767_s28 = smov 88  }
 0x7c8   :  { %3137 = vperm.xlu0 %4685, %v3131_v4  }
 0x7ca   :  { %3074 = vrot.lane.b32.xlu1 %v2912_v32, %s4756_s0 }
 0x7cc   :  { %3147 = vperm.xlu0 %4685, %v3133_v9  }
 0x7ce   :  { %3070 = vrot.lane.b32.xlu1 %v2906_v44, %s4756_s0 }
 0x7d0   :  { %3152 = vperm.xlu0 %4685, %v3134_v56  }
 0x7d2   :  { %3142 = vperm.xlu1 %4686, %v3132_v17  }
 0x7d4   :  { %4688 = vset.pattern.permute.xlu0 %v7353_v52 }
 0x7d5   :  { %3289 = vperm.xlu0 %4688, %v3131_v4  }
 0x7d6   :  { %4687 = vset.pattern.permute.xlu1 %v7352_v59 }
 0x7d7   :  { %3265 = vperm.xlu1 %4687, %v3131_v4  }
 0x7d9   :  { %4691 = vset.pattern.permute.xlu0 %v7352_v59 }
 0x7da   :  { %3277 = vperm.xlu0 %4691, %v3134_v56  }
 0x7db   :  { %3269 = vperm.xlu1 %4687, %v3132_v17  }
 0x7de   :  { %4693 = vset.pattern.permute.xlu0 %v7354_v55 }
 0x7df   :  { %4689 = vset.pattern.permute.xlu1 %v7353_v52 }
 0x7e0   :  { %3293 = vperm.xlu1 %4689, %v3132_v17  }
 0x7e4   :  { %4690 = vset.pattern.permute.xlu1 %v7352_v59 }
 0x7e5   :  { %3273 = vperm.xlu1 %4690, %v3133_v9  }
 0x7e9   :  { %4692 = vset.pattern.permute.xlu1 %v7353_v52 }
 0x7ea   :  { %3297 = vperm.xlu1 %4692, %v3133_v9  }
 0x7ee   :  { %3301 = vperm.xlu1 %4692, %v3134_v56  }
 0x7f2   :  { %4694 = vset.pattern.permute.xlu1 %v7354_v55 }
 0x7f6   :  { %v3050_v31 = vpop.permute.xlu0 %3049 }
 0x7f8   :  { %v3052_v21 = vpop.permute.xlu1 %3051 }
 0x7f9   :  { %v3058_v3 = vsel %vm3057_vm13, %v3050_v31, %v3052_v21  ;;  %3065 = vst.msk [vmem:[#allocation3 + $0xe8] sm:$0xff] %vm2934_vm6, %v3052_v21 }
 0x7fa   :  { %v3031_v45 = vpop.permute.xlu0 %3030 }
 0x7fc   :  { %v3033_v24 = vpop.permute.xlu1 %3032 }
 0x7fd   :  { %v3039_v61 = vsel %vm3038_vm14, %v3031_v45, %v3033_v24  ;;  %3046 = vst.msk [vmem:[#allocation3 + $0xc8] sm:$0xff] %vm2934_vm6, %v3033_v24 }
 0x7fe   :  { %v3013_v54 = vpop.permute.xlu0 %3012 }
 0x800   :  { %v3015_v1 = vpop.permute.xlu1 %3014  ;;  %v3124_v10 = vld [vmem:[#allocation3 + $0xe8] sm:$0xff] }
 0x801   :  { %v6929_v60 = vsel %vm536_vm4, %v3013_v54, %v3015_v1  ;;  %3027 = vst.msk [vmem:[#allocation3 + $0xa8] sm:$0xff] %vm2934_vm6, %v3015_v1 }
 0x802   :  { %v2995_v26 = vpop.permute.xlu0 %2994 }
 0x804   :  { %v2997_v62 = vpop.permute.xlu1 %2996  ;;  %v3120_v46 = vld [vmem:[#allocation3 + $0xc8] sm:$0xff] }
 0x805   :  { %v6933_v15 = vsel %vm445_vm3, %v2995_v26, %v2997_v62  ;;  %3009 = vst.msk [vmem:[#allocation3 + $0x88] sm:$0xff] %vm2934_vm6, %v2997_v62 }
 0x806   :  { %v2977_v63 = vpop.permute.xlu0 %2976 }
 0x808   :  { %v2979_v16 = vpop.permute.xlu1 %2978  ;;  %v3116_v51 = vld [vmem:[#allocation3 + $0xa8] sm:$0xff] }
 0x809   :  { %v6937_v43 = vsel %vm354_vm2, %v2977_v63, %v2979_v16  ;;  %2991 = vst.msk [vmem:[#allocation3 + $0x68] sm:$0xff] %vm2934_vm6, %v2979_v16  ;;  %v3090_v63 = vld [vmem:[%s7266_s10 + $0x18] sm:$0xff]  ;;  %v3089_v16 = vld [vmem:[%s7266_s10 + $0x10] sm:$0xff] }
 0x80a   :  { %v2958_v8 = vpop.permute.xlu0 %2957 }
 0x80c   :  { %v2960_v57 = vpop.permute.xlu1 %2959  ;;  %v3112_v42 = vld [vmem:[#allocation3 + $0x88] sm:$0xff] }
 0x80d   :  { %v6941_v49 = vsel %vm2965_vm15, %v2958_v8, %v2960_v57  ;;  %2973 = vst.msk [vmem:[#allocation3 + $0x48] sm:$0xff] %vm2934_vm6, %v2960_v57  ;;  %v3091_v8 = vld [vmem:[%s7266_s10 + $0x20] sm:$0xff]  ;;  %v3094_v57 = vld [vmem:[%s7266_s10 + $0x38] sm:$0xff] }
 0x80e   :  { %v2939_v13 = vpop.permute.xlu0 %2938 }
 0x810   :  { %v2941_v22 = vpop.permute.xlu1 %2940  ;;  %v3108_v32 = vld [vmem:[#allocation3 + $0x68] sm:$0xff] }
 0x811   :  { %v6945_v19 = vsel %vm2946_vm1, %v2939_v13, %v2941_v22  ;;  %2954 = vst.msk [vmem:[#allocation3 + $0x28] sm:$0xff] %vm2934_vm6, %v2941_v22 }
 0x812   :  { %v2919_v30 = vpop.permute.xlu0 %2918 }
 0x814   :  { %v2921_v12 = vpop.permute.xlu1 %2920  ;;  %v3104_v17 = vld [vmem:[#allocation3 + $0x48] sm:$0xff] }
 0x815   :  { %v6949_v50 = vsel %vm2926_vm5, %v2919_v30, %v2921_v12  ;;  %2935 = vst.msk [vmem:[#allocation3 + $0x8] sm:$0xff] %vm2934_vm6, %v2921_v12 }
 0x816   :  { %v3035_v14 = vpop.permute.xlu0 %3034 }
 0x818   :  { %v3054_v0 = vpop.permute.xlu1 %3053  ;;  %v3100_v45 = vld [vmem:[#allocation3 + $0x28] sm:$0xff] }
 0x81a   :  { %v3017_v39 = vpop.permute.xlu0 %3016 }
 0x81c   :  { %v3056_v23 = vpop.permute.xlu1 %3055 }
 0x81d   :  { %v3059_v27 = vsel %vm3057_vm13, %v3054_v0, %v3056_v23  ;;  %3067 = vst.msk [vmem:[#allocation3 + $0xf8] sm:$0xff] %vm2934_vm6, %v3056_v23 }
 0x81e   :  { %v2999_v25 = vpop.permute.xlu0 %2998 }
 0x820   :  { %v3037_v47 = vpop.permute.xlu1 %3036 }
 0x821   :  { %v3040_v5 = vsel %vm3038_vm14, %v3035_v14, %v3037_v47  ;;  %3048 = vst.msk [vmem:[#allocation3 + $0xd8] sm:$0xff] %vm2934_vm6, %v3037_v47 }
 0x822   :  { %v2981_v33 = vpop.permute.xlu0 %2980 }
 0x824   :  { %v3019_v11 = vpop.permute.xlu1 %3018  ;;  %v3126_v20 = vld [vmem:[#allocation3 + $0xf8] sm:$0xff] }
 0x825   :  { %v3021_v58 = vsel %vm536_vm4, %v3017_v39, %v3019_v11  ;;  %3029 = vst.msk [vmem:[#allocation3 + $0xb8] sm:$0xff] %vm2934_vm6, %v3019_v11  ;;  %3167 = vmatprep.subr.mxu1 %v3126_v20  ;;  %vm3450_vm4 = vcmask 244896  }
 0x826   :  { %3168 = vmatpush1.msra.mxu1 %v3059_v27  ;;  %v2962_v7 = vpop.permute.xlu0 %2961 }
 0x827   :  { %3169 = vmatprep.subr.mxu1 %v3124_v10 }
 0x828   :  { %3170 = vmatpush1.msra.mxu1 %v3058_v3  ;;  %v3001_v29 = vpop.permute.xlu1 %3000  ;;  %v3122_v28 = vld [vmem:[#allocation3 + $0xd8] sm:$0xff] }
 0x829   :  { %v3003_v36 = vsel %vm445_vm3, %v2999_v25, %v3001_v29  ;;  %3011 = vst.msk [vmem:[#allocation3 + $0x98] sm:$0xff] %vm2934_vm6, %v3001_v29  ;;  %3171 = vmatprep.subr.mxu1 %v3122_v28  ;;  %vm3433_vm3 = vcmask 162896  }
 0x82a   :  { %3172 = vmatpush1.msra.mxu1 %v3040_v5  ;;  %v2943_v40 = vpop.permute.xlu0 %2942 }
 0x82b   :  { %3173 = vmatprep.subr.mxu1 %v3120_v46 }
 0x82c   :  { %3174 = vmatpush1.msra.mxu1 %v3039_v61  ;;  %v2983_v41 = vpop.permute.xlu1 %2982  ;;  %v3118_v37 = vld [vmem:[#allocation3 + $0xb8] sm:$0xff] }
 0x82d   :  { %v2985_v2 = vsel %vm354_vm2, %v2981_v33, %v2983_v41  ;;  %2993 = vst.msk [vmem:[#allocation3 + $0x78] sm:$0xff] %vm2934_vm6, %v2983_v41  ;;  %3175 = vmatprep.subr.mxu1 %v3118_v37  ;;  %vm3076_vm2 = vcmask 801792  }
 0x82e   :  { %3176 = vmatpush1.msra.mxu1 %v3021_v58  ;;  %v2923_v6 = vpop.permute.xlu0 %2922 }
 0x82f   :  { %3177 = vmatprep.subr.mxu1 %v3116_v51 }
 0x830   :  { %3178 = vmatpush1.msra.mxu1 %v6929_v60  ;;  %v2964_v34 = vpop.permute.xlu1 %2963  ;;  %v3114_v44 = vld [vmem:[#allocation3 + $0x98] sm:$0xff]  ;;  %v3096_v60 = vld [vmem:[#allocation3 + $0x8] sm:$0xff] }
 0x831   :  { %v2967_v53 = vsel %vm2965_vm15, %v2962_v7, %v2964_v34  ;;  %2975 = vst.msk [vmem:[#allocation3 + $0x58] sm:$0xff] %vm2934_vm6, %v2964_v34  ;;  %3179 = vmatprep.subr.mxu1 %v3114_v44 }
 0x832   :  { %3180 = vmatpush1.msra.mxu1 %v3003_v36  ;;  %v3073_v56 = vpop.permute.xlu0 %3072 }
 0x833   :  { %3181 = vmatprep.subr.mxu1 %v3112_v42 }
 0x834   :  { %3182 = vmatpush1.msra.mxu1 %v6933_v15  ;;  %v2945_v38 = vpop.permute.xlu1 %2944  ;;  %v3110_v48 = vld [vmem:[#allocation3 + $0x78] sm:$0xff]  ;;  %v3087_v15 = vld [vmem:[%s7266_s10] sm:$0xff] }
 0x835   :  { %v2948_v35 = vsel %vm2946_vm1, %v2943_v40, %v2945_v38  ;;  %2956 = vst.msk [vmem:[#allocation3 + $0x38] sm:$0xff] %vm2934_vm6, %v2945_v38  ;;  %3183 = vmatprep.subr.mxu1 %v3110_v48 }
 0x836   :  { %3184 = vmatpush1.msra.mxu1 %v2985_v2  ;;  %v3069_v24 = vpop.permute.xlu0 %3068 }
 0x837   :  { %3185 = vmatprep.subr.mxu1 %v3108_v32 }
 0x838   :  { %3186 = vmatpush1.msra.mxu1 %v6937_v43  ;;  %v2925_v4 = vpop.permute.xlu1 %2924  ;;  %v3106_v9 = vld [vmem:[#allocation3 + $0x58] sm:$0xff]  ;;  %v3092_v43 = vld [vmem:[%s7266_s10 + $0x28] sm:$0xff] }
 0x839   :  { %v2928_v18 = vsel %vm2926_vm5, %v2923_v6, %v2925_v4  ;;  %2937 = vst.msk [vmem:[#allocation3 + $0x18] sm:$0xff] %vm2934_vm6, %v2925_v4  ;;  %3187 = vmatprep.subr.mxu1 %v3106_v9 }
 0x83a   :  { %3188 = vmatpush1.msra.mxu1 %v2967_v53 }
 0x83b   :  { %3189 = vmatprep.subr.mxu1 %v3104_v17 }
 0x83c   :  { %3190 = vmatpush1.msra.mxu1 %v6941_v49  ;;  %v3075_v31 = vpop.permute.xlu1 %3074  ;;  %v3102_v21 = vld [vmem:[#allocation3 + $0x38] sm:$0xff]  ;;  %v3093_v49 = vld [vmem:[%s7266_s10 + $0x30] sm:$0xff]  ;;  %s4766_s10 = smov 8  }
 0x83d   :  { %v3078_v3 = vsel %vm3076_vm2, %v3073_v56, %v3075_v31  ;;  %3086 = vst.msk [vmem:[#allocation3 + $0x118] sm:$0xff] %vm2934_vm6, %v3075_v31  ;;  %3191 = vmatprep.subr.mxu1 %v3102_v21 }
 0x83e   :  { %3192 = vmatpush1.msra.mxu1 %v2948_v35 }
 0x83f   :  { %3193 = vmatprep.subr.mxu1 %v3100_v45 }
 0x840   :  { %3194 = vmatpush1.msra.mxu1 %v6945_v19  ;;  %v3071_v61 = vpop.permute.xlu1 %3070  ;;  %v3098_v54 = vld [vmem:[#allocation3 + $0x18] sm:$0xff] }
 0x841   :  { %v3077_v1 = vsel %vm3076_vm2, %v3069_v24, %v3071_v61  ;;  %3084 = vst.msk [vmem:[#allocation3 + $0x108] sm:$0xff] %vm2934_vm6, %v3071_v61  ;;  %3195 = vmatprep.subr.mxu1 %v3098_v54 }
 0x842   :  { %3196 = vmatpush1.msra.mxu1 %v2928_v18 }
 0x843   :  { %3197 = vmatprep.subr.mxu1 %v3096_v60  ;;  %v3138_v19 = vpop.permute.xlu0 %3137 }
 0x844   :  { %3198 = vmatpush1.msra.mxu1 %v6949_v50  ;;  %v3130_v26 = vld [vmem:[#allocation3 + $0x118] sm:$0xff] }
 0x845   :  { %3227 = vmatprep.subr.mxu1 %v3130_v26 }
 0x846   :  { %3228 = vmatpush2.msra.mxu1 %v3078_v3 }
 0x847   :  { %v3148_v12 = vpop.permute.xlu0 %3147 }
 0x848   :  { %v3128_v62 = vld [vmem:[#allocation3 + $0x108] sm:$0xff] }
 0x849   :  { %3229 = vmatprep.subr.mxu1 %v3128_v62 }
 0x84a   :  { %3230 = vmatpush2.msra.mxu1 %v3077_v1 }
 0x84b   :  { %3232 = vmatmul.mubr.f32.vlgmr.msra.gmra.mxu1 %v3087_v15  ;;  %v3153_v14 = vpop.permute.xlu0 %3152 }
 0x84c   :  { %4463 = vmatprep.mubr.msk.f32.mxu1 %vm1593_vm9, %v3090_v63 }
 0x84d   :  { %v3143_v13 = vpop.permute.xlu1 %3142 }
 0x84f   :  { %3238 = vmatmul.mubr.f32.gmra.mxu1 %v3089_v16 }
 0x850   :  { %4464 = vmatprep.mubr.msk.f32.mxu1 %vm1593_vm9, %v3092_v43  ;;  %v3290_v47 = vpop.permute.xlu0 %3289 }
 0x852   :  { %v3266_v22 = vpop.permute.xlu1 %3265 }
 0x853   :  { %3244 = vmatmul.mubr.f32.gmra.mxu1 %v3091_v8 }
 0x854   :  { %4465 = vmatprep.mubr.msk.f32.mxu1 %vm1593_vm9, %v3094_v57 }
 0x855   :  { %v3278_v18 = vpop.permute.xlu0 %3277 }
 0x856   :  { %v3270_v30 = vpop.permute.xlu1 %3269 }
 0x857   :  { %3250 = vmatmul.mubr.f32.gmra.mxu1 %v3093_v49 }
 0x85b   :  { %v3294_v50 = vpop.permute.xlu1 %3293 }
 0x860   :  { %v3274_v33 = vpop.permute.xlu1 %3273 }
 0x865   :  { %v3298_v34 = vpop.permute.xlu1 %3297 }
 0x869   :  { %v3302_v3 = vpop.permute.xlu1 %3301 }
 0x90b   :  { %v3233_v0 = vpop.f32.mrf.mxu1 }
 0x90c   :  { %v3234_v39 = vadd.f32 %v3233_v0, %v3138_v19 }
 0x90d   :  { %v3235_v23 = vpop.f32.mrf.mxu1 }
 0x90e   :  { %v3256_v27 = vmax.f32 %v3234_v39, 0.0  ;;  %v3236_v25 = vadd.f32 %v3235_v23, %v3138_v19 }
 0x90f   :  { %v3239_v5 = vpop.f32.mrf.mxu1 }
 0x910   :  { %v3280_v11 = vmul.f32 %v3266_v22, %v3256_v27  ;;  %v3257_v20 = vmax.f32 %v3236_v25, 0.0  ;;  %v3240_v58 = vadd.f32 %v3239_v5, %v3143_v13 }
 0x911   :  { %v3241_v10 = vpop.f32.mrf.mxu1 }
 0x912   :  { %v3281_v7 = vmul.f32 %v3266_v22, %v3257_v20  ;;  %v3258_v29 = vmax.f32 %v3240_v58, 0.0  ;;  %v3304_v28 = vadd.f32 %v3290_v47, %v3280_v11  ;;  %v3242_v36 = vadd.f32 %v3241_v10, %v3143_v13 }
 0x913   :  { %v3245_v46 = vpop.f32.mrf.mxu1 }
 0x914   :  { %v3282_v41 = vmul.f32 %v3270_v30, %v3258_v29  ;;  %v3305_v37 = vadd.f32 %v3290_v47, %v3281_v7  ;;  %v3259_v2 = vmax.f32 %v3242_v36, 0.0  ;;  %v3246_v40 = vadd.f32 %v3245_v46, %v3148_v12  ;;  %3320 = vrot.lane.b32.xlu0 %v3304_v28, %s4737_s1 }
 0x915   :  { %v3247_v51 = vpop.f32.mrf.mxu1 }
 0x916   :  { %v3283_v44 = vmul.f32 %v3270_v30, %v3259_v2  ;;  %v3306_v53 = vadd.f32 %v3294_v50, %v3282_v41  ;;  %v3260_v42 = vmax.f32 %v3246_v40, 0.0  ;;  %v3248_v6 = vadd.f32 %v3247_v51, %v3148_v12  ;;  %3322 = vrot.lane.b32.xlu1 %v3305_v37, %s4737_s1  ;;  %v3550_v2 = vld [vmem:[%s7268_s12 + $0x10] sm:$0xff]  ;;  %v3549_v51 = vld [vmem:[%s7268_s12 + $0x8] sm:$0xff] }
 0x917   :  { %v3251_v38 = vpop.f32.mrf.mxu1 }
 0x918   :  { %v3307_v48 = vadd.f32 %v3294_v50, %v3283_v44  ;;  %v3261_v35 = vmax.f32 %v3248_v6, 0.0  ;;  %v3284_v32 = vmul.f32 %v3274_v33, %v3260_v42  ;;  %v3252_v4 = vadd.f32 %v3251_v38, %v3153_v14  ;;  %3324 = vrot.lane.b32.xlu0 %v3306_v53, %s4737_s1 }
 0x919   :  { %v3253_v9 = vpop.f32.mrf.mxu1 }
 0x91a   :  { %v3285_v56 = vmul.f32 %v3274_v33, %v3261_v35  ;;  %v3262_v17 = vmax.f32 %v3252_v4, 0.0  ;;  %v3254_v31 = vadd.f32 %v3253_v9, %v3153_v14  ;;  %v3308_v21 = vadd.f32 %v3298_v34, %v3284_v32  ;;  %3326 = vrot.lane.b32.xlu1 %v3307_v48, %s4737_s1 }
 0x91c   :  { %v3263_v45 = vmax.f32 %v3254_v31, 0.0  ;;  %v3309_v24 = vadd.f32 %v3298_v34, %v3285_v56  ;;  %v3286_v61 = vmul.f32 %v3278_v18, %v3262_v17  ;;  %3328 = vrot.lane.b32.xlu0 %v3308_v21, %s4737_s1  ;;  %v3548_v34 = vld [vmem:[%s7268_s12] sm:$0xff] }
 0x91e   :  { %v3287_v54 = vmul.f32 %v3278_v18, %v3263_v45  ;;  %v3310_v1 = vadd.f32 %v3302_v3, %v3286_v61  ;;  %3330 = vrot.lane.b32.xlu1 %v3309_v24, %s4737_s1 }
 0x920   :  { %v3311_v60 = vadd.f32 %v3302_v3, %v3287_v54  ;;  %3332 = vrot.lane.b32.xlu0 %v3310_v1, %s4737_s1 }
 0x922   :  { %3334 = vrot.lane.b32.xlu1 %v3311_v60, %s4737_s1 }
 0x986   :  { %v3321_v26 = vpop.permute.xlu0 %3320 }
 0x988   :  { %v3323_v62 = vpop.permute.xlu1 %3322 }
 0x989   :  { %v3336_v15 = vsel %vm172_vm0, %v3321_v26, %v3323_v62  ;;  %v3349_v63 = vmax.f32 %v3305_v37, %v3323_v62  ;;  %v3551_v37 = vld [vmem:[%s7268_s12 + $0x18] sm:$0xff] }
 0x98a   :  { %v3348_v16 = vmax.f32 %v3304_v28, %v3336_v15  ;;  %v3325_v43 = vpop.permute.xlu0 %3324  ;;  %v3552_v28 = vld [vmem:[%s7268_s12 + $0x20] sm:$0xff]  ;;  %s4769_s12 = smov 55  }
 0x98b   :  { %3366 = vrot.lane.b32.xlu1 %v3349_v63, %s4764_s5  ;;  %4552 = vmatprep.subr.mxu0 %v3552_v28 }
 0x98c   :  { %3364 = vrot.lane.b32.xlu0 %v3348_v16, %s4764_s5  ;;  %v3327_v8 = vpop.permute.xlu1 %3326  ;;  %4553 = vmatpush3.msra.mxu0 %v3552_v28 }
 0x98d   :  { %v3337_v57 = vsel %vm172_vm0, %v3325_v43, %v3327_v8  ;;  %v3351_v49 = vmax.f32 %v3307_v48, %v3327_v8  ;;  %4554 = vmatprep.subr.mxu0 %v3551_v37 }
 0x98e   :  { %v3350_v13 = vmax.f32 %v3306_v53, %v3337_v57  ;;  %v3329_v22 = vpop.permute.xlu0 %3328  ;;  %4555 = vmatpush3.msra.mxu0 %v3551_v37 }
 0x98f   :  { %3370 = vrot.lane.b32.xlu1 %v3351_v49, %s4764_s5  ;;  %4556 = vmatprep.subr.mxu0 %v3550_v2 }
 0x990   :  { %3368 = vrot.lane.b32.xlu0 %v3350_v13, %s4764_s5  ;;  %v3331_v19 = vpop.permute.xlu1 %3330  ;;  %4557 = vmatpush3.msra.mxu0 %v3550_v2 }
 0x991   :  { %v3338_v30 = vsel %vm172_vm0, %v3329_v22, %v3331_v19  ;;  %v7015_v12 = vmax.f32 %v3309_v24, %v3331_v19  ;;  %4558 = vmatprep.subr.mxu0 %v3549_v51 }
 0x992   :  { %v3352_v50 = vmax.f32 %v3308_v21, %v3338_v30  ;;  %v3333_v14 = vpop.permute.xlu0 %3332  ;;  %4559 = vmatpush3.msra.mxu0 %v3549_v51 }
 0x993   :  { %3374 = vrot.lane.b32.xlu1 %v7015_v12, %s4764_s5  ;;  %4560 = vmatprep.subr.mxu0 %v3548_v34 }
 0x994   :  { %3372 = vrot.lane.b32.xlu0 %v3352_v50, %s4764_s5  ;;  %v3335_v0 = vpop.permute.xlu1 %3334  ;;  %4561 = vmatpush3.msra.mxu0 %v3548_v34 }
 0x995   :  { %v3339_v39 = vsel %vm172_vm0, %v3333_v14, %v3335_v0  ;;  %v3355_v23 = vmax.f32 %v3311_v60, %v3335_v0  ;;  %vm3416_vm0 = vcmask 80896  }
 0x996   :  { %v3354_v27 = vmax.f32 %v3310_v1, %v3339_v39 }
 0x997   :  { %3378 = vrot.lane.b32.xlu1 %v3355_v23, %s4764_s5 }
 0x998   :  { %3376 = vrot.lane.b32.xlu0 %v3354_v27, %s4764_s5 }
 0x9fd   :  { %v3367_v25 = vpop.permute.xlu1 %3366 }
 0x9fe   :  { %v3393_v47 = vmax.f32 %v3349_v63, %v3367_v25  ;;  %v3365_v5 = vpop.permute.xlu0 %3364 }
 0x9ff   :  { %v3380_v58 = vsel %vm2965_vm15, %v3365_v5, %v3367_v25 }
 0xa00   :  { %3492 = vrot.lane.b32.xlu0 %v3393_v47, %s4766_s10  ;;  %v3392_v7 = vmax.f32 %v3348_v16, %v3380_v58 }
 0xa01   :  { %v3371_v33 = vpop.permute.xlu1 %3370 }
 0xa02   :  { %v3395_v11 = vmax.f32 %v3351_v49, %v3371_v33  ;;  %v3369_v20 = vpop.permute.xlu0 %3368 }
 0xa03   :  { %v3381_v10 = vsel %vm2965_vm15, %v3369_v20, %v3371_v33 }
 0xa04   :  { %3508 = vrot.lane.b32.xlu0 %v3393_v47, %s4738_s20  ;;  %3494 = vrot.lane.b32.xlu1 %v3395_v11, %s4766_s10  ;;  %v3394_v29 = vmax.f32 %v3350_v13, %v3381_v10 }
 0xa05   :  { %v3375_v36 = vpop.permute.xlu1 %3374 }
 0xa06   :  { %v3373_v46 = vpop.permute.xlu0 %3372  ;;  %v3397_v6 = vmax.f32 %v7015_v12, %v3375_v36 }
 0xa07   :  { %v3382_v41 = vsel %vm2965_vm15, %v3373_v46, %v3375_v36 }
 0xa08   :  { %3524 = vrot.lane.b32.xlu0 %v3393_v47, %s4754_s24  ;;  %3510 = vrot.lane.b32.xlu1 %v3395_v11, %s4738_s20  ;;  %v3396_v40 = vmax.f32 %v3352_v50, %v3382_v41 }
 0xa09   :  { %v3379_v44 = vpop.permute.xlu1 %3378 }
 0xa0a   :  { %v3399_v53 = vmax.f32 %v3355_v23, %v3379_v44  ;;  %v3377_v42 = vpop.permute.xlu0 %3376 }
 0xa0b   :  { %v3383_v38 = vsel %vm2965_vm15, %v3377_v42, %v3379_v44 }
 0xa0c   :  { %3404 = vrot.lane.b32.xlu0 %v3392_v7, %s4764_s5  ;;  %3406 = vrot.lane.b32.xlu1 %v3394_v29, %s4764_s5  ;;  %v3398_v48 = vmax.f32 %v3354_v27, %v3383_v38 }
 0xa10   :  { %3421 = vrot.lane.b32.xlu0 %v3392_v7, %s4741_s2  ;;  %3423 = vrot.lane.b32.xlu1 %v3394_v29, %s4741_s2 }
 0xa14   :  { %3438 = vrot.lane.b32.xlu0 %v3392_v7, %s4756_s0  ;;  %3440 = vrot.lane.b32.xlu1 %v3394_v29, %s4756_s0 }
 0xa18   :  { %3455 = vrot.lane.b32.xlu0 %v3392_v7, %s4767_s28  ;;  %3474 = vrot.lane.b32.xlu1 %v3394_v29, %s4768_s6 }
 0xa1c   :  { %3472 = vrot.lane.b32.xlu0 %v3392_v7, %s4768_s6  ;;  %3408 = vrot.lane.b32.xlu1 %v3396_v40, %s4764_s5 }
 0xa20   :  { %3526 = vrot.lane.b32.xlu0 %v3395_v11, %s4754_s24  ;;  %3476 = vrot.lane.b32.xlu1 %v3396_v40, %s4768_s6 }
 0xa24   :  { %3457 = vrot.lane.b32.xlu0 %v3394_v29, %s4767_s28  ;;  %3498 = vrot.lane.b32.xlu1 %v3399_v53, %s4766_s10 }
 0xa28   :  { %3496 = vrot.lane.b32.xlu0 %v3397_v6, %s4766_s10  ;;  %3514 = vrot.lane.b32.xlu1 %v3399_v53, %s4738_s20 }
 0xa2c   :  { %3425 = vrot.lane.b32.xlu0 %v3396_v40, %s4741_s2  ;;  %3410 = vrot.lane.b32.xlu1 %v3398_v48, %s4764_s5  ;;  %s4773_s5 = smov 115  }
 0xa30   :  { %3442 = vrot.lane.b32.xlu0 %v3396_v40, %s4756_s0  ;;  %3427 = vrot.lane.b32.xlu1 %v3398_v48, %s4741_s2 }
 0xa34   :  { %3459 = vrot.lane.b32.xlu0 %v3396_v40, %s4767_s28  ;;  %3444 = vrot.lane.b32.xlu1 %v3398_v48, %s4756_s0  ;;  %s4771_s0 = smov 104  }
 0xa38   :  { %3512 = vrot.lane.b32.xlu0 %v3397_v6, %s4738_s20  ;;  %3461 = vrot.lane.b32.xlu1 %v3398_v48, %s4767_s28  ;;  %s4770_s20 = smov 103  }
 0xa3c   :  { %3528 = vrot.lane.b32.xlu0 %v3397_v6, %s4754_s24  ;;  %3478 = vrot.lane.b32.xlu1 %v3398_v48, %s4768_s6  ;;  %v3946_v48 = vld [vmem:[%s7269_s13 + $0x8] sm:$0xff] }
 0xa40   :  { %3530 = vrot.lane.b32.xlu1 %v3399_v53, %s4754_s24 }
 0xa72   :  { %v3493_v35 = vpop.permute.xlu0 %3492 }
 0xa76   :  { %v3509_v32 = vpop.permute.xlu0 %3508  ;;  %v3495_v4 = vpop.permute.xlu1 %3494 }
 0xa7a   :  { %v3525_v9 = vpop.permute.xlu0 %3524  ;;  %v3511_v18 = vpop.permute.xlu1 %3510 }
 0xa7e   :  { %v3405_v56 = vpop.permute.xlu0 %3404  ;;  %v3407_v17 = vpop.permute.xlu1 %3406 }
 0xa7f   :  { %3417 = vst.msk [vmem:[#allocation6] sm:$0xff] %vm3416_vm0, %v3405_v56  ;;  %3418 = vst.msk [vmem:[#allocation6 + $0x8] sm:$0xff] %vm3416_vm0, %v3407_v17 }
 0xa82   :  { %v3422_v31 = vpop.permute.xlu0 %3421  ;;  %v3424_v21 = vpop.permute.xlu1 %3423 }
 0xa83   :  { %3434 = vst.msk [vmem:[#allocation6] sm:$0xff] %vm3433_vm3, %v3422_v31  ;;  %3435 = vst.msk [vmem:[#allocation6 + $0x8] sm:$0xff] %vm3433_vm3, %v3424_v21 }
 0xa86   :  { %v3439_v3 = vpop.permute.xlu0 %3438  ;;  %v3441_v45 = vpop.permute.xlu1 %3440 }
 0xa87   :  { %3451 = vst.msk [vmem:[#allocation6] sm:$0xff] %vm3450_vm4, %v3439_v3  ;;  %3452 = vst.msk [vmem:[#allocation6 + $0x8] sm:$0xff] %vm3450_vm4, %v3441_v45 }
 0xa8a   :  { %v3456_v24 = vpop.permute.xlu0 %3455  ;;  %v3475_v61 = vpop.permute.xlu1 %3474 }
 0xa8b   :  { %3468 = vst.msk [vmem:[#allocation6] sm:$0xff] %vm3467_vm7, %v3456_v24 }
 0xa8c   :  { %3485 = vst.msk [vmem:[#allocation6 + $0x28] sm:$0xff] %vm3416_vm0, %v3475_v61 }
 0xa8d   :  { %3505 = vst.msk [vmem:[#allocation6 + $0x28] sm:$0xff] %vm3433_vm3, %v3495_v4  ;;  %v3987_v4 = vld [vmem:[%s7270_s14] sm:$0xff] }
 0xa8e   :  { %3521 = vst.msk [vmem:[#allocation6 + $0x28] sm:$0xff] %vm3450_vm4, %v3511_v18  ;;  %v3473_v54 = vpop.permute.xlu0 %3472  ;;  %v3409_v1 = vpop.permute.xlu1 %3408 }
 0xa8f   :  { %3484 = vst.msk [vmem:[#allocation6 + $0x20] sm:$0xff] %vm3416_vm0, %v3473_v54  ;;  %3419 = vst.msk [vmem:[#allocation6 + $0x10] sm:$0xff] %vm3416_vm0, %v3409_v1 }
 0xa90   :  { %3504 = vst.msk [vmem:[#allocation6 + $0x20] sm:$0xff] %vm3433_vm3, %v3493_v35  ;;  %v3947_v35 = vld [vmem:[%s7269_s13 + $0x10] sm:$0xff] }
 0xa91   :  { %3520 = vst.msk [vmem:[#allocation6 + $0x20] sm:$0xff] %vm3450_vm4, %v3509_v32  ;;  %4582 = vmatprep.mubr.msk.f32.mxu1 %vm2830_vm12, %v3947_v35  ;;  %v3988_v32 = vld [vmem:[%s7270_s14 + $0x8] sm:$0xff] }
 0xa92   :  { %3536 = vst.msk [vmem:[#allocation6 + $0x20] sm:$0xff] %vm3467_vm7, %v3525_v9  ;;  %v3527_v60 = vpop.permute.xlu0 %3526  ;;  %v3477_v26 = vpop.permute.xlu1 %3476  ;;  %v3540_v62 = vld [vmem:[#allocation6] sm:$0xff] }
 0xa93   :  { %3537 = vst.msk [vmem:[#allocation6 + $0x28] sm:$0xff] %vm3467_vm7, %v3527_v60  ;;  %4562 = vmatprep.mubr.msk.f32.mxu0 %vm3553_vm8, %v3540_v62 }
 0xa94   :  { %3486 = vst.msk [vmem:[#allocation6 + $0x30] sm:$0xff] %vm3416_vm0, %v3477_v26 }
 0xa96   :  { %v3458_v15 = vpop.permute.xlu0 %3457  ;;  %v3499_v63 = vpop.permute.xlu1 %3498 }
 0xa97   :  { %3469 = vst.msk [vmem:[#allocation6 + $0x8] sm:$0xff] %vm3467_vm7, %v3458_v15 }
 0xa99   :  { %v3544_v25 = vld [vmem:[#allocation6 + $0x20] sm:$0xff] }
 0xa9a   :  { %v3497_v16 = vpop.permute.xlu0 %3496  ;;  %v3515_v43 = vpop.permute.xlu1 %3514  ;;  %v3545_v47 = vld [vmem:[#allocation6 + $0x28] sm:$0xff] }
 0xa9b   :  { %3506 = vst.msk [vmem:[#allocation6 + $0x30] sm:$0xff] %vm3433_vm3, %v3497_v16 }
 0xa9e   :  { %v3426_v8 = vpop.permute.xlu0 %3425  ;;  %v3411_v57 = vpop.permute.xlu1 %3410  ;;  %v3541_v49 = vld [vmem:[#allocation6 + $0x8] sm:$0xff] }
 0xa9f   :  { %3436 = vst.msk [vmem:[#allocation6 + $0x10] sm:$0xff] %vm3433_vm3, %v3426_v8  ;;  %4563 = vmatmul.mubr.msk.f32.vlgmr.msra.gmra.mxu0 %vm3553_vm8, %v3541_v49 }
 0xaa0   :  { %3420 = vst.msk [vmem:[#allocation6 + $0x18] sm:$0xff] %vm3416_vm0, %v3411_v57 }
 0xaa2   :  { %v3443_v13 = vpop.permute.xlu0 %3442  ;;  %v3428_v22 = vpop.permute.xlu1 %3427 }
 0xaa3   :  { %3453 = vst.msk [vmem:[#allocation6 + $0x10] sm:$0xff] %vm3450_vm4, %v3443_v13 }
 0xaa4   :  { %3437 = vst.msk [vmem:[#allocation6 + $0x18] sm:$0xff] %vm3433_vm3, %v3428_v22 }
 0xaa6   :  { %v3460_v19 = vpop.permute.xlu0 %3459  ;;  %v3445_v30 = vpop.permute.xlu1 %3444 }
 0xaa7   :  { %3470 = vst.msk [vmem:[#allocation6 + $0x10] sm:$0xff] %vm3467_vm7, %v3460_v19 }
 0xaa8   :  { %3454 = vst.msk [vmem:[#allocation6 + $0x18] sm:$0xff] %vm3450_vm4, %v3445_v30 }
 0xaaa   :  { %v3513_v12 = vpop.permute.xlu0 %3512  ;;  %v3462_v50 = vpop.permute.xlu1 %3461 }
 0xaab   :  { %3522 = vst.msk [vmem:[#allocation6 + $0x30] sm:$0xff] %vm3450_vm4, %v3513_v12 }
 0xaac   :  { %3471 = vst.msk [vmem:[#allocation6 + $0x18] sm:$0xff] %vm3467_vm7, %v3462_v50 }
 0xaae   :  { %v3529_v14 = vpop.permute.xlu0 %3528  ;;  %v3479_v0 = vpop.permute.xlu1 %3478  ;;  %v3542_v39 = vld [vmem:[#allocation6 + $0x10] sm:$0xff] }
 0xaaf   :  { %3538 = vst.msk [vmem:[#allocation6 + $0x30] sm:$0xff] %vm3467_vm7, %v3529_v14  ;;  %4565 = vmatprep.mubr.msk.f32.mxu0 %vm3553_vm8, %v3542_v39 }
 0xab0   :  { %3487 = vst.msk [vmem:[#allocation6 + $0x38] sm:$0xff] %vm3416_vm0, %v3479_v0 }
 0xab1   :  { %3507 = vst.msk [vmem:[#allocation6 + $0x38] sm:$0xff] %vm3433_vm3, %v3499_v63 }
 0xab2   :  { %3523 = vst.msk [vmem:[#allocation6 + $0x38] sm:$0xff] %vm3450_vm4, %v3515_v43  ;;  %v3531_v23 = vpop.permute.xlu1 %3530 }
 0xab3   :  { %v3543_v27 = vld [vmem:[#allocation6 + $0x18] sm:$0xff]  ;;  %3539 = vst.msk [vmem:[#allocation6 + $0x38] sm:$0xff] %vm3467_vm7, %v3531_v23 }
 0xab4   :  { %4566 = vmatmul.mubr.msk.f32.gmra.mxu0 %vm3553_vm8, %v3543_v27 }
 0xab5   :  { %4568 = vmatprep.mubr.msk.f32.mxu0 %vm3553_vm8, %v3544_v25 }
 0xab6   :  { %v3546_v5 = vld [vmem:[#allocation6 + $0x30] sm:$0xff] }
 0xab8   :  { %4569 = vmatmul.mubr.msk.f32.gmra.mxu0 %vm3553_vm8, %v3545_v47 }
 0xab9   :  { %4571 = vmatprep.mubr.msk.f32.mxu0 %vm3553_vm8, %v3546_v5 }
 0xaba   :  { %v3547_v33 = vld [vmem:[#allocation6 + $0x38] sm:$0xff] }
 0xabc   :  { %4572 = vmatmul.mubr.msk.f32.gmra.mxu0 %vm3553_vm8, %v3547_v33 }
 0xabd   :  { %4069 = vmatprep.mubr.f32.mxu0 %v3946_v48 }
 0xb5f   :  { %v4564_v11 = vpop.f32.mrf.mxu0 }
 0xb60   :  { %3693 = vrot.lane.b32.xlu0 %v4564_v11, %s4760_s27 }
 0xb61   :  { %v3644_v20 = vpop.f32.mrf.mxu0 }
 0xb74   :  { %v4567_v58 = vpop.f32.mrf.mxu0 }
 0xb75   :  { %3697 = vrot.lane.b32.xlu0 %v4567_v58, %s4760_s27 }
 0xb76   :  { %v3654_v10 = vpop.f32.mrf.mxu0 }
 0xb78   :  { %v4570_v7 = vpop.f32.mrf.mxu0 }
 0xb79   :  { %3695 = vrot.lane.b32.xlu0 %v3654_v10, %s4760_s27  ;;  %3714 = vrot.lane.b32.xlu1 %v4570_v7, %s4769_s12 }
 0xb7a   :  { %v3664_v29 = vpop.f32.mrf.mxu0 }
 0xb7c   :  { %v4573_v28 = vpop.f32.mrf.mxu0 }
 0xb7d   :  { %3691 = vrot.lane.b32.xlu0 %v3644_v20, %s4760_s27  ;;  %3718 = vrot.lane.b32.xlu1 %v4573_v28, %s4769_s12  ;;  %s4772_s27 = smov 114  }
 0xb7e   :  { %v3674_v36 = vpop.f32.mrf.mxu0 }
 0xb81   :  { %3716 = vrot.lane.b32.xlu1 %v3674_v36, %s4769_s12 }
 0xb85   :  { %3712 = vrot.lane.b32.xlu1 %v3664_v29, %s4769_s12 }
 0xbd2   :  { %v3694_v46 = vpop.permute.xlu0 %3693 }
 0xbd3   :  { %3705 = vst.msk [vmem:[#allocation8 + $0x8] sm:$0xff] %vm3703_vm10, %v3694_v46 }
 0xbe7   :  { %v3698_v41 = vpop.permute.xlu0 %3697 }
 0xbe8   :  { %3707 = vst.msk [vmem:[#allocation8 + $0x18] sm:$0xff] %vm3703_vm10, %v3698_v41 }
 0xbeb   :  { %v3696_v37 = vpop.permute.xlu0 %3695  ;;  %v3715_v2 = vpop.permute.xlu1 %3714 }
 0xbec   :  { %3706 = vst.msk [vmem:[#allocation8 + $0x10] sm:$0xff] %vm3703_vm10, %v3696_v37 }
 0xbed   :  { %3726 = vst.msk [vmem:[#allocation8 + $0x8] sm:$0xff] %vm3724_vm11, %v3715_v2 }
 0xbef   :  { %v3692_v40 = vpop.permute.xlu0 %3691  ;;  %v3719_v51 = vpop.permute.xlu1 %3718 }
 0xbf0   :  { %3704 = vst.msk [vmem:[#allocation8] sm:$0xff] %vm3703_vm10, %v3692_v40 }
 0xbf1   :  { %3728 = vst.msk [vmem:[#allocation8 + $0x18] sm:$0xff] %vm3724_vm11, %v3719_v51 }
 0xbf3   :  { %v3717_v34 = vpop.permute.xlu1 %3716 }
 0xbf4   :  { %v3898_v44 = vld [vmem:[#allocation8 + $0x8] sm:$0xff]  ;;  %3727 = vst.msk [vmem:[#allocation8 + $0x10] sm:$0xff] %vm3724_vm11, %v3717_v34 }
 0xbf5   :  { %3907 = vrot.lane.b32.xlu0 %v3898_v44, %s4770_s20  ;;  %3811 = vrot.lane.b32.xlu1 %v3898_v44, %s4739_s21 }
 0xbf7   :  { %v3713_v53 = vpop.permute.xlu1 %3712 }
 0xbf8   :  { %3725 = vst.msk [vmem:[#allocation8] sm:$0xff] %vm3724_vm11, %v3713_v53  ;;  %v3900_v6 = vld [vmem:[#allocation8 + $0x18] sm:$0xff] }
 0xbf9   :  { %3883 = vrot.lane.b32.xlu0 %v3898_v44, %s4771_s0  ;;  %3787 = vrot.lane.b32.xlu1 %v3898_v44, %s4772_s27 }
 0xbfb   :  { %v3899_v38 = vld [vmem:[#allocation8 + $0x10] sm:$0xff] }
 0xbfd   :  { %3859 = vrot.lane.b32.xlu0 %v3898_v44, %s4741_s2  ;;  %3763 = vrot.lane.b32.xlu1 %v3898_v44, %s4773_s5 }
 0xbff   :  { %v3897_v42 = vld [vmem:[#allocation8] sm:$0xff] }
 0xc01   :  { %3905 = vrot.lane.b32.xlu0 %v3897_v42, %s4770_s20  ;;  %3809 = vrot.lane.b32.xlu1 %v3897_v42, %s4739_s21 }
 0xc05   :  { %3881 = vrot.lane.b32.xlu0 %v3897_v42, %s4771_s0  ;;  %3785 = vrot.lane.b32.xlu1 %v3897_v42, %s4772_s27 }
 0xc09   :  { %3911 = vrot.lane.b32.xlu0 %v3900_v6, %s4770_s20  ;;  %3815 = vrot.lane.b32.xlu1 %v3900_v6, %s4739_s21 }
 0xc0d   :  { %3887 = vrot.lane.b32.xlu0 %v3900_v6, %s4771_s0  ;;  %3791 = vrot.lane.b32.xlu1 %v3900_v6, %s4772_s27 }
 0xc11   :  { %3863 = vrot.lane.b32.xlu0 %v3900_v6, %s4741_s2  ;;  %3767 = vrot.lane.b32.xlu1 %v3900_v6, %s4773_s5 }
 0xc15   :  { %3909 = vrot.lane.b32.xlu0 %v3899_v38, %s4770_s20  ;;  %3813 = vrot.lane.b32.xlu1 %v3899_v38, %s4739_s21 }
 0xc19   :  { %3857 = vrot.lane.b32.xlu0 %v3897_v42, %s4741_s2  ;;  %3761 = vrot.lane.b32.xlu1 %v3897_v42, %s4773_s5 }
 0xc1d   :  { %3885 = vrot.lane.b32.xlu0 %v3899_v38, %s4771_s0  ;;  %3789 = vrot.lane.b32.xlu1 %v3899_v38, %s4772_s27 }
 0xc21   :  { %3839 = vrot.lane.b32.xlu0 %v3900_v6, %s4740_s22  ;;  %3743 = vrot.lane.b32.xlu1 %v3900_v6, %s4754_s24 }
 0xc25   :  { %3861 = vrot.lane.b32.xlu0 %v3899_v38, %s4741_s2  ;;  %3765 = vrot.lane.b32.xlu1 %v3899_v38, %s4773_s5 }
 0xc29   :  { %3835 = vrot.lane.b32.xlu0 %v3898_v44, %s4740_s22  ;;  %3739 = vrot.lane.b32.xlu1 %v3898_v44, %s4754_s24 }
 0xc2d   :  { %3837 = vrot.lane.b32.xlu0 %v3899_v38, %s4740_s22  ;;  %3741 = vrot.lane.b32.xlu1 %v3899_v38, %s4754_s24 }
 0xc31   :  { %3833 = vrot.lane.b32.xlu0 %v3897_v42, %s4740_s22  ;;  %3737 = vrot.lane.b32.xlu1 %v3897_v42, %s4754_s24 }
 0xc35   :  { %3935 = vrot.lane.b32.xlu0 %v3900_v6, %s4774_s26  ;;  %3933 = vrot.lane.b32.xlu1 %v3899_v38, %s4774_s26 }
 0xc39   :  { %3931 = vrot.lane.b32.xlu0 %v3898_v44, %s4774_s26  ;;  %3929 = vrot.lane.b32.xlu1 %v3897_v42, %s4774_s26 }
 0xc3d   :  { %3996 = vperm.xlu1 %4694, %v3988_v32   ;;  %3991 = vperm.xlu0 %4693, %v3987_v4  }
 0xc41   :  { %4695 = vset.pattern.permute.xlu1 %v7352_v59  ;;  %4696 = vset.pattern.permute.xlu0 %v7352_v59 }
 0xc42   :  { %4158 = vperm.xlu1 %4695, %v3987_v4   ;;  %4162 = vperm.xlu0 %4696, %v3988_v32  }
 0xc46   :  { %4697 = vset.pattern.permute.xlu1 %v7353_v52  ;;  %4698 = vset.pattern.permute.xlu0 %v7354_v55 }
 0xc47   :  { %4168 = vperm.xlu1 %4697, %v3987_v4  }
 0xc4b   :  { %4172 = vperm.xlu1 %4697, %v3988_v32  }
 0xc4f   :  { %4699 = vset.pattern.permute.xlu1 %v7354_v55 }
 0xc67   :  { %v3908_v9 = vpop.permute.xlu0 %3907  ;;  %v3812_v18 = vpop.permute.xlu1 %3811 }
 0xc68   :  { %3918 = vst.msk [vmem:[#allocation4 + $0xe8] sm:$0xff] %vm2934_vm6, %v3908_v9  ;;  %3822 = vst.msk [vmem:[#allocation4 + $0x68] sm:$0xff] %vm2934_vm6, %v3812_v18 }
 0xc6b   :  { %v3884_v56 = vpop.permute.xlu0 %3883  ;;  %v3788_v17 = vpop.permute.xlu1 %3787 }
 0xc6c   :  { %3894 = vst.msk [vmem:[#allocation4 + $0xc8] sm:$0xff] %vm2934_vm6, %v3884_v56  ;;  %3798 = vst.msk [vmem:[#allocation4 + $0x48] sm:$0xff] %vm2934_vm6, %v3788_v17 }
 0xc6f   :  { %v3860_v59 = vpop.permute.xlu0 %3859  ;;  %v3764_v52 = vpop.permute.xlu1 %3763  ;;  %v3980_v22 = vld [vmem:[#allocation4 + $0xe8] sm:$0xff] }
 0xc70   :  { %3870 = vst.msk [vmem:[#allocation4 + $0xa8] sm:$0xff] %vm2934_vm6, %v3860_v59  ;;  %3774 = vst.msk [vmem:[#allocation4 + $0x28] sm:$0xff] %vm2934_vm6, %v3764_v52  ;;  %v3964_v19 = vld [vmem:[#allocation4 + $0x68] sm:$0xff]  ;;  %v3945_v59 = vld [vmem:[%s7269_s13] sm:$0xff] }
 0xc71   :  { %v3949_v52 = vld [vmem:[%s7269_s13 + $0x20] sm:$0xff] }
 0xc73   :  { %v3906_v31 = vpop.permute.xlu0 %3905  ;;  %v3810_v55 = vpop.permute.xlu1 %3809  ;;  %v3976_v5 = vld [vmem:[#allocation4 + $0xc8] sm:$0xff] }
 0xc74   :  { %3917 = vst.msk [vmem:[#allocation4 + $0xe0] sm:$0xff] %vm2934_vm6, %v3906_v31  ;;  %3821 = vst.msk [vmem:[#allocation4 + $0x60] sm:$0xff] %vm2934_vm6, %v3810_v55  ;;  %v3960_v33 = vld [vmem:[#allocation4 + $0x48] sm:$0xff]  ;;  %v3948_v55 = vld [vmem:[%s7269_s13 + $0x18] sm:$0xff] }
 0xc77   :  { %v3882_v21 = vpop.permute.xlu0 %3881  ;;  %v3786_v3 = vpop.permute.xlu1 %3785  ;;  %v3972_v37 = vld [vmem:[#allocation4 + $0xa8] sm:$0xff] }
 0xc78   :  { %3893 = vst.msk [vmem:[#allocation4 + $0xc0] sm:$0xff] %vm2934_vm6, %v3882_v21  ;;  %3797 = vst.msk [vmem:[#allocation4 + $0x40] sm:$0xff] %vm2934_vm6, %v3786_v3  ;;  %v3956_v2 = vld [vmem:[#allocation4 + $0x28] sm:$0xff] }
 0xc7b   :  { %v3912_v45 = vpop.permute.xlu0 %3911  ;;  %v3816_v24 = vpop.permute.xlu1 %3815  ;;  %v3979_v50 = vld [vmem:[#allocation4 + $0xe0] sm:$0xff] }
 0xc7c   :  { %3920 = vst.msk [vmem:[#allocation4 + $0xf8] sm:$0xff] %vm2934_vm6, %v3912_v45  ;;  %3824 = vst.msk [vmem:[#allocation4 + $0x78] sm:$0xff] %vm2934_vm6, %v3816_v24  ;;  %v3963_v14 = vld [vmem:[#allocation4 + $0x60] sm:$0xff]  ;;  %v3950_v24 = vld [vmem:[%s7269_s13 + $0x28] sm:$0xff] }
 0xc7f   :  { %v3888_v61 = vpop.permute.xlu0 %3887  ;;  %v3792_v54 = vpop.permute.xlu1 %3791  ;;  %v3975_v58 = vld [vmem:[#allocation4 + $0xc0] sm:$0xff] }
 0xc80   :  { %3896 = vst.msk [vmem:[#allocation4 + $0xd8] sm:$0xff] %vm2934_vm6, %v3888_v61  ;;  %3800 = vst.msk [vmem:[#allocation4 + $0x58] sm:$0xff] %vm2934_vm6, %v3792_v54  ;;  %v3959_v10 = vld [vmem:[#allocation4 + $0x40] sm:$0xff]  ;;  %v4184_v54 = vld [vmem:[%s7271_s15 + $0x38] sm:$0xff] }
 0xc81   :  { %v4185_v61 = vld [vmem:[%s7271_s15 + $0x40] sm:$0xff] }
 0xc83   :  { %v3864_v1 = vpop.permute.xlu0 %3863  ;;  %v3768_v60 = vpop.permute.xlu1 %3767  ;;  %v3982_v26 = vld [vmem:[#allocation4 + $0xf8] sm:$0xff] }
 0xc84   :  { %v3966_v62 = vld [vmem:[#allocation4 + $0x78] sm:$0xff]  ;;  %3872 = vst.msk [vmem:[#allocation4 + $0xb8] sm:$0xff] %vm2934_vm6, %v3864_v1  ;;  %3776 = vst.msk [vmem:[#allocation4 + $0x38] sm:$0xff] %vm2934_vm6, %v3768_v60  ;;  %4493 = vmatprep.subr.mxu0 %v3982_v26  ;;  %v4183_v1 = vld [vmem:[%s7271_s15 + $0x30] sm:$0xff] }
 0xc85   :  { %4494 = vmatpush3.msra.mxu0 %v3966_v62  ;;  %v4182_v60 = vld [vmem:[%s7271_s15 + $0x28] sm:$0xff]  ;;  %v4181_v26 = vld [vmem:[%s7271_s15 + $0x20] sm:$0xff]  ;;  %v4180_v62 = vld [vmem:[%s7271_s15 + $0x18] sm:$0xff] }
 0xc87   :  { %v3910_v15 = vpop.permute.xlu0 %3909  ;;  %v3814_v63 = vpop.permute.xlu1 %3813  ;;  %v3978_v0 = vld [vmem:[#allocation4 + $0xd8] sm:$0xff] }
 0xc88   :  { %3919 = vst.msk [vmem:[#allocation4 + $0xf0] sm:$0xff] %vm2934_vm6, %v3910_v15  ;;  %3823 = vst.msk [vmem:[#allocation4 + $0x70] sm:$0xff] %vm2934_vm6, %v3814_v63  ;;  %v3962_v39 = vld [vmem:[#allocation4 + $0x58] sm:$0xff]  ;;  %v4179_v15 = vld [vmem:[%s7271_s15 + $0x10] sm:$0xff] }
 0xc89   :  { %v4178_v63 = vld [vmem:[%s7271_s15 + $0x8] sm:$0xff] }
 0xc8b   :  { %v3858_v16 = vpop.permute.xlu0 %3857  ;;  %v3762_v43 = vpop.permute.xlu1 %3761  ;;  %v3974_v7 = vld [vmem:[#allocation4 + $0xb8] sm:$0xff] }
 0xc8c   :  { %3869 = vst.msk [vmem:[#allocation4 + $0xa0] sm:$0xff] %vm2934_vm6, %v3858_v16  ;;  %3773 = vst.msk [vmem:[#allocation4 + $0x20] sm:$0xff] %vm2934_vm6, %v3762_v43  ;;  %v3958_v29 = vld [vmem:[#allocation4 + $0x38] sm:$0xff]  ;;  %v4177_v16 = vld [vmem:[%s7271_s15] sm:$0xff] }
 0xc8f   :  { %v3886_v8 = vpop.permute.xlu0 %3885  ;;  %v3790_v57 = vpop.permute.xlu1 %3789  ;;  %v3981_v49 = vld [vmem:[#allocation4 + $0xf0] sm:$0xff] }
 0xc90   :  { %v3965_v13 = vld [vmem:[#allocation4 + $0x70] sm:$0xff]  ;;  %3895 = vst.msk [vmem:[#allocation4 + $0xd0] sm:$0xff] %vm2934_vm6, %v3886_v8  ;;  %3799 = vst.msk [vmem:[#allocation4 + $0x50] sm:$0xff] %vm2934_vm6, %v3790_v57  ;;  %4495 = vmatprep.subr.mxu0 %v3981_v49 }
 0xc91   :  { %4496 = vmatpush3.msra.mxu0 %v3965_v13 }
 0xc92   :  { %4497 = vmatprep.subr.mxu0 %v3980_v22 }
 0xc93   :  { %v3840_v30 = vpop.permute.xlu0 %3839  ;;  %4498 = vmatpush3.msra.mxu0 %v3964_v19  ;;  %v3744_v12 = vpop.permute.xlu1 %3743  ;;  %v3971_v34 = vld [vmem:[#allocation4 + $0xa0] sm:$0xff] }
 0xc94   :  { %3848 = vst.msk [vmem:[#allocation4 + $0x98] sm:$0xff] %vm2934_vm6, %v3840_v30  ;;  %3752 = vst.msk [vmem:[#allocation4 + $0x18] sm:$0xff] %vm2934_vm6, %v3744_v12  ;;  %4499 = vmatprep.subr.mxu0 %v3979_v50  ;;  %v3955_v44 = vld [vmem:[#allocation4 + $0x20] sm:$0xff] }
 0xc95   :  { %4500 = vmatpush3.msra.mxu0 %v3963_v14 }
 0xc96   :  { %4501 = vmatprep.subr.mxu0 %v3978_v0 }
 0xc97   :  { %v3862_v23 = vpop.permute.xlu0 %3861  ;;  %4502 = vmatpush3.msra.mxu0 %v3962_v39  ;;  %v3766_v27 = vpop.permute.xlu1 %3765  ;;  %v3977_v25 = vld [vmem:[#allocation4 + $0xd0] sm:$0xff] }
 0xc98   :  { %v3961_v47 = vld [vmem:[#allocation4 + $0x50] sm:$0xff]  ;;  %3871 = vst.msk [vmem:[#allocation4 + $0xb0] sm:$0xff] %vm2934_vm6, %v3862_v23  ;;  %3775 = vst.msk [vmem:[#allocation4 + $0x30] sm:$0xff] %vm2934_vm6, %v3766_v27  ;;  %4503 = vmatprep.subr.mxu0 %v3977_v25 }
 0xc99   :  { %4504 = vmatpush3.msra.mxu0 %v3961_v47 }
 0xc9a   :  { %4505 = vmatprep.subr.mxu0 %v3976_v5 }
 0xc9b   :  { %v3836_v11 = vpop.permute.xlu0 %3835  ;;  %4506 = vmatpush3.msra.mxu0 %v3960_v33  ;;  %v3740_v20 = vpop.permute.xlu1 %3739  ;;  %v3970_v53 = vld [vmem:[#allocation4 + $0x98] sm:$0xff] }
 0xc9c   :  { %3846 = vst.msk [vmem:[#allocation4 + $0x88] sm:$0xff] %vm2934_vm6, %v3836_v11  ;;  %3750 = vst.msk [vmem:[#allocation4 + $0x8] sm:$0xff] %vm2934_vm6, %v3740_v20  ;;  %4507 = vmatprep.subr.mxu0 %v3975_v58  ;;  %v3954_v42 = vld [vmem:[#allocation4 + $0x18] sm:$0xff] }
 0xc9d   :  { %4508 = vmatpush3.msra.mxu0 %v3959_v10 }
 0xc9e   :  { %4509 = vmatprep.subr.mxu0 %v3974_v7 }
 0xc9f   :  { %v3838_v28 = vpop.permute.xlu0 %3837  ;;  %4510 = vmatpush3.msra.mxu0 %v3958_v29  ;;  %v3742_v36 = vpop.permute.xlu1 %3741  ;;  %v3973_v46 = vld [vmem:[#allocation4 + $0xb0] sm:$0xff]  ;;  %v4267_v29 = vld [vmem:[%s7272_s16] sm:$0xff] }
 0xca0   :  { %v3957_v41 = vld [vmem:[#allocation4 + $0x30] sm:$0xff]  ;;  %3847 = vst.msk [vmem:[#allocation4 + $0x90] sm:$0xff] %vm2934_vm6, %v3838_v28  ;;  %3751 = vst.msk [vmem:[#allocation4 + $0x10] sm:$0xff] %vm2934_vm6, %v3742_v36  ;;  %4511 = vmatprep.subr.mxu0 %v3973_v46  ;;  %v4269_v28 = vld [vmem:[%s7273_s17] sm:$0xff] }
 0xca1   :  { %4512 = vmatpush3.msra.mxu0 %v3957_v41  ;;  %v4270_v36 = vld [vmem:[%s7273_s17 + $0x8] sm:$0x3]  ;;  %4273 = vperm.xlu0 %4698, %v4269_v28  }
 0xca2   :  { %4513 = vmatprep.subr.mxu0 %v3972_v37  ;;  %4278 = vperm.xlu1 %4699, %v4270_v36   ;;  %v4268_v37 = vld [vmem:[%s7272_s16 + $0x8] sm:$0x3]  ;;  %s4775_s16 = smov [#allocation9]  }
 0xca3   :  { %v3834_v40 = vpop.permute.xlu0 %3833  ;;  %4514 = vmatpush3.msra.mxu0 %v3956_v2  ;;  %v3738_v51 = vpop.permute.xlu1 %3737  ;;  %v3968_v32 = vld [vmem:[#allocation4 + $0x88] sm:$0xff]  ;;  %s4432_s17 = sshll.u32 %s4775_s16, 4  ;;  %s4433_s17 = int_to_ptr.vmem [resolvable:$true] %s4432_s17 }
 0xca4   :  { %3845 = vst.msk [vmem:[#allocation4 + $0x80] sm:$0xff] %vm2934_vm6, %v3834_v40  ;;  %3749 = vst.msk [vmem:[#allocation4] sm:$0xff] %vm2934_vm6, %v3738_v51  ;;  %4515 = vmatprep.subr.mxu0 %v3971_v34  ;;  %v3952_v4 = vld [vmem:[#allocation4 + $0x8] sm:$0xff]  ;;  %s4706_s3 = scalar_lea.vmem %s4433_s17, 32  ;;  %p4711_p1 = scmp.lt.s32.totalorder %s4433_s17, %s4433_s17 }
 0xca5   :  { %4516 = vmatpush3.msra.mxu0 %v3955_v44  ;;  %p4707_p0 = scmp.ne.s32.totalorder %s4433_s17, %s4706_s3  ;;  %p4712_p2 = scmp.lt.s32.totalorder %s4706_s3, %s4706_s3 }
 0xca6   :  { %4517 = vmatprep.subr.mxu0 %v3970_v53 }
 0xca7   :  { %v3936_v6 = vpop.permute.xlu0 %3935  ;;  %4518 = vmatpush3.msra.mxu0 %v3954_v42  ;;  %v3934_v38 = vpop.permute.xlu1 %3933  ;;  %v3969_v48 = vld [vmem:[#allocation4 + $0x90] sm:$0xff]  ;;  %p4713_p3 = por %p4712_p2, %p4711_p1 }
 0xca8   :  { %v3953_v35 = vld [vmem:[#allocation4 + $0x10] sm:$0xff]  ;;  %3944 = vst.msk [vmem:[#allocation4 + $0x118] sm:$0xff] %vm2934_vm6, %v3936_v6  ;;  %3943 = vst.msk [vmem:[#allocation4 + $0x110] sm:$0xff] %vm2934_vm6, %v3934_v38  ;;  %4519 = vmatprep.subr.mxu0 %v3969_v48 }
 0xca9   :  { %4520 = vmatpush3.msra.mxu0 %v3953_v35  ;;  %p4714_p4 = pnand %p4713_p3, %p4707_p0 }
 0xcaa   :  { %4521 = vmatprep.subr.mxu0 %v3968_v32 }
 0xcab   :  { %v3932_v9 = vpop.permute.xlu0 %3931  ;;  %4522 = vmatpush3.msra.mxu0 %v3952_v4  ;;  %v3930_v18 = vpop.permute.xlu1 %3929  ;;  %v3967_v56 = vld [vmem:[#allocation4 + $0x80] sm:$0xff] }
 0xcac   :  { %v3951_v17 = vld [vmem:[#allocation4] sm:$0xff]  ;;  %3942 = vst.msk [vmem:[#allocation4 + $0x108] sm:$0xff] %vm2934_vm6, %v3932_v9  ;;  %3941 = vst.msk [vmem:[#allocation4 + $0x100] sm:$0xff] %vm2934_vm6, %v3930_v18  ;;  %4523 = vmatprep.subr.mxu0 %v3967_v56 }
 0xcad   :  { %4524 = vmatpush3.msra.mxu0 %v3951_v17 }
 0xcae   :  { %4070 = vmatmul.mubr.f32.vlgmr.msra.gmra.mxu0 %v3945_v59 }
 0xcaf   :  { %v3986_v31 = vld [vmem:[#allocation4 + $0x118] sm:$0xff]  ;;  %4074 = vmatprep.mubr.f32.mxu0 %v3949_v52  ;;  %v3985_v21 = vld [vmem:[#allocation4 + $0x110] sm:$0xff] }
 0xcb0   :  { %4574 = vmatprep.subr.mxu1 %v3986_v31 }
 0xcb1   :  { %4575 = vmatpush3.msra.mxu1 %v3986_v31 }
 0xcb2   :  { %4576 = vmatprep.subr.mxu1 %v3985_v21  ;;  %4075 = vmatmul.mubr.f32.gmra.mxu0 %v3948_v55 }
 0xcb3   :  { %4577 = vmatpush3.msra.mxu1 %v3985_v21  ;;  %v3984_v3 = vld [vmem:[#allocation4 + $0x108] sm:$0xff]  ;;  %v3983_v45 = vld [vmem:[#allocation4 + $0x100] sm:$0xff]  ;;  %4610 = vmatprep.mubr.msk.f32.mxu0 %vm1593_vm9, %v4267_v29 }
 0xcb4   :  { %4578 = vmatprep.subr.mxu1 %v3984_v3 }
 0xcb5   :  { %4579 = vmatpush3.msra.mxu1 %v3984_v3 }
 0xcb6   :  { %4580 = vmatprep.subr.mxu1 %v3983_v45 }
 0xcb7   :  { %4581 = vmatpush3.msra.mxu1 %v3983_v45 }
 0xcb8   :  { %4583 = vmatmul.mubr.msk.f32.vlgmr.msra.gmra.mxu1 %vm2830_vm12, %v3950_v24  ;;  %4585 = vmatprep.subr.mxu1 %v4185_v61  ;;  %v3997_v43 = vpop.permute.xlu1 %3996  ;;  %v3992_v12 = vpop.permute.xlu0 %3991  ;;  %vm4362_vm12 = vcmask 15360  }
 0xcb9   :  { %4586 = vmatpush3.msra.mxu1 %v4185_v61 }
 0xcba   :  { %4587 = vmatprep.subr.mxu1 %v4184_v54 }
 0xcbb   :  { %4588 = vmatpush3.msra.mxu1 %v4184_v54 }
 0xcbc   :  { %4589 = vmatprep.subr.mxu1 %v4183_v1 }
 0xcbd   :  { %4590 = vmatpush3.msra.mxu1 %v4183_v1  ;;  %v4159_v13 = vpop.permute.xlu1 %4158  ;;  %v4163_v5 = vpop.permute.xlu0 %4162 }
 0xcbe   :  { %4591 = vmatprep.subr.mxu1 %v4182_v60 }
 0xcbf   :  { %4592 = vmatpush3.msra.mxu1 %v4182_v60 }
 0xcc0   :  { %4593 = vmatprep.subr.mxu1 %v4181_v26 }
 0xcc1   :  { %4594 = vmatpush3.msra.mxu1 %v4181_v26 }
 0xcc2   :  { %4595 = vmatprep.subr.mxu1 %v4180_v62  ;;  %v4169_v23 = vpop.permute.xlu1 %4168 }
 0xcc3   :  { %4596 = vmatpush3.msra.mxu1 %v4180_v62 }
 0xcc4   :  { %4597 = vmatprep.subr.mxu1 %v4179_v15 }
 0xcc5   :  { %4598 = vmatpush3.msra.mxu1 %v4179_v15 }
 0xcc6   :  { %4599 = vmatprep.subr.mxu1 %v4178_v63  ;;  %v4173_v58 = vpop.permute.xlu1 %4172 }
 0xcc7   :  { %4600 = vmatpush3.msra.mxu1 %v4178_v63 }
 0xcc8   :  { %4601 = vmatprep.subr.mxu1 %v4177_v16 }
 0xcc9   :  { %4602 = vmatpush3.msra.mxu1 %v4177_v16 }
 0xd1c   :  { %v4274_v51 = vpop.permute.xlu0 %4273 }
 0xd1d   :  { %v4279_v2 = vpop.permute.xlu1 %4278 }
 0xd6e   :  { %v4525_v8 = vpop.f32.mrf.mxu0 }
 0xd70   :  { %v4526_v57 = vpop.f32.mrf.mxu0 }
 0xd71   :  { %v4527_v19 = vadd.f32 %v4526_v57, %v4525_v8 }
 0xd72   :  { %v4528_v49 = vpop.f32.mrf.mxu0 }
 0xd73   :  { %v4072_v0 = vadd.f32 %v4527_v19, %v3992_v12 }
 0xd74   :  { %v4529_v22 = vpop.f32.mrf.mxu0 }
 0xd75   :  { %v4530_v30 = vadd.f32 %v4529_v22, %v4528_v49 }
 0xd77   :  { %v4077_v50 = vadd.f32 %v4530_v30, %v3997_v43 }
 0xd78   :  { %v4584_v14 = vpop.f32.mrf.mxu1 }
 0xd79   :  { %v4152_v39 = vadd.f32 %v4584_v14, %v4077_v50 }
 0xd7a   :  { %v4146_v27 = vpop.f32.mrf.mxu1 }
 0xd7b   :  { %v4156_v25 = vmax.f32 %v4152_v39, 0.0  ;;  %v4147_v47 = vadd.f32 %v4146_v27, %v4072_v0 }
 0xd7d   :  { %v4155_v33 = vmax.f32 %v4147_v47, 0.0  ;;  %v4166_v11 = vmul.f32 %v4163_v5, %v4156_v25 }
 0xd7f   :  { %v4165_v20 = vmul.f32 %v4159_v13, %v4155_v33  ;;  %v4176_v7 = vadd.f32 %v4173_v58, %v4166_v11 }
 0xd81   :  { %v4175_v10 = vadd.f32 %v4169_v23, %v4165_v20 }
 0xd83   :  { %4603 = vmatprep.mubr.msk.f32.mxu1 %vm2934_vm6, %v4175_v10 }
 0xd84   :  { %4604 = vmatmul.mubr.msk.f32.vlgmr.msra.gmra.mxu1 %vm2934_vm6, %v4176_v7  ;;  %vm4364_vm6 = vcmask 9216  }
 0xe44   :  { %v4605_v46 = vpop.f32.mrf.mxu1 }
 0xe45   :  { %4606 = vmatprep.subr.mxu0 %v4605_v46 }
 0xe46   :  { %v4258_v41 = vpop.f32.mrf.mxu1  ;;  %4607 = vmatpush3.msra.mxu0 %v4605_v46 }
 0xe47   :  { %4608 = vmatprep.subr.mxu0 %v4258_v41 }
 0xe48   :  { %4609 = vmatpush3.msra.mxu0 %v4258_v41 }
 0xe49   :  { %4611 = vmatmul.mubr.msk.f32.vlgmr.msra.gmra.mxu0 %vm1593_vm9, %v4268_v37  ;;  %vm4424_vm9 = vcmask 74752  }
 0xf09   :  { %v4612_v40 = vpop.f32.mrf.mxu0 }
 0xf0a   :  { %v4359_v34 = vadd.f32 %v4612_v40, %v4279_v2 }
 0xf0b   :  { %v4353_v44 = vpop.f32.mrf.mxu0 }
 0xf0c   :  { %v4354_v53 = vadd.f32 %v4353_v44, %v4274_v51  ;;  %v4365_v6 = vsel %vm4364_vm6, %v4359_v34, -inf }
 0xf0e   :  { %v4363_v42 = vsel %vm4362_vm12, %v4354_v53, -inf }
 0xf0f   :  { %v4366_v38 = vmax.f32 %v4363_v42, %v4365_v6 }
 0xf11   :  { %v4367_v48 = vrot.slane %v4366_v38, 4 }
 0xf13   :  { %v4368_v35 = vmax.f32 %v4366_v38, %v4367_v48 }
 0xf15   :  { %v4369_v32 = vrot.slane %v4368_v35, 2 }
 0xf17   :  { %v4370_v4 = vmax.f32 %v4368_v35, %v4369_v32 }
 0xf19   :  { %v4371_v9 = vrot.slane %v4370_v4, 1 }
 0xf1b   :  { %v4372_v18 = vmax.f32 %v4370_v4, %v4371_v9 }
 0xf1d   :  { %v4373_v56 = vsub.f32 %v4354_v53, %v4372_v18  ;;  %v4374_v17 = vsub.f32 %v4359_v34, %v4372_v18 }
 0xf1f   :  { %v4375_v59 = vmul.f32 1.442695, %v4373_v56  ;;  %v4377_v52 = vmul.f32 1.442695, %v4374_v17 }
 0xf21   :  { %4700 = vpow2.f32 %v4375_v59 }
 0xf22   :  { %4702 = vpow2.f32 %v4377_v52 }
 0xf2e   :  { %v4701_v31 = vpop.eup %4700 }
 0xf2f   :  { %v4703_v55 = vpop.eup %4702  ;;  %v4379_v21 = vsel %vm4362_vm12, %v4701_v31, 0.0 }
 0xf30   :  { %v4380_v3 = vsel %vm4364_vm6, %v4703_v55, 0.0 }
 0xf31   :  { %v4381_v45 = vadd.f32 %v4380_v3, %v4379_v21 }
 0xf33   :  { %v4382_v24 = vrot.slane %v4381_v45, 4 }
 0xf35   :  { %v4383_v61 = vadd.f32 %v4382_v24, %v4381_v45 }
 0xf37   :  { %v4384_v54 = vrot.slane %v4383_v61, 2 }
 0xf39   :  { %v4385_v1 = vadd.f32 %v4384_v54, %v4383_v61 }
 0xf3b   :  { %v4386_v60 = vrot.slane %v4385_v1, 1 }
 0xf3d   :  { %v4387_v26 = vadd.f32 %v4386_v60, %v4385_v1 }
 0xf3f   :  { %4704 = vlog2.f32 %v4387_v26 }
 0xf4c   :  { %v4705_v62 = vpop.eup %4704 }
 0xf4d   :  { %v4389_v15 = vmul.f32 0.6931472, %v4705_v62 }
 0xf4f   :  { %v4390_v63 = vsub.f32 %v4373_v56, %v4389_v15  ;;  %v4391_v16 = vsub.f32 %v4374_v17, %v4389_v15 }
 0xf51   :  { %4392 = vxpose.xlu1.b32.start [1/2] (short) (narrow) %v4390_v63, 8 }
 0xf55   :  { %4393 = vxpose.xlu1.b32.end [2/2] (short) (narrow) %v4391_v16, 8 }
 0xfcd   :  { %v4408_v43 = vpop.trf.xlu1 }
 0xfce   :  { %4425 = vst.msk [vmem:[#allocation9] sm:$0x3] %vm4424_vm9, %v4408_v43 }
 0xfcf   :  { %4717 = shalt.err (!%p4714_p4)
}
 0xfd0   :  { %4435 = dma.vmem_to_hbm [thread:$0]  %s4433_s17, 32, %s7274_s18, [#allocation10]  }
 0xfd1   :  { %4726 = dma.done.wait [#allocation10], 32  }
 0xfd2   :  { %4727 = vsyncadd [#allocation10], 4294967264 }
 0xfd3   :  { %4439 = vsyncpa [#allocation10], 1 }

</bundles_post_ra>
